<compile_context>
chip_gen: v6e
topology: v6e:2x2x1
jax: 0.10.0
libtpu: 0.0.40
codegen_flags: <defaults>
</compile_context>

<pallas_src>
import functools

import jax
import jax.numpy as jnp
from jax.experimental import pallas as pl
from jax.experimental.pallas import tpu as pltpu


def convlstm_kernel(x_ref, c_ref, w_ref, b_ref,
                    h_out_ref, c_out_ref, xmat_ref, gates_ref, *,
                    ksize, width, hw, cpad, hidden, b_tile, chunk):
    """One batch tile (B_TILE batch elements) per grid step.

    x_ref    : (B_TILE, cpad, XPAD)   bf16  channel-padded, halo-padded flat input
    c_ref    : (B_TILE, hidden, HW)   f32   previous cell state
    w_ref    : (4*hidden, K*K*cpad)   bf16  conv weights, tap-major columns
    b_ref    : (4*hidden, 1)          f32   conv bias
    h_out_ref: (B_TILE, hidden, HW)   module dtype
    c_out_ref: (B_TILE, hidden, HW)   f32
    xmat_ref : (K*K*cpad, B_TILE*HW)  bf16  VMEM scratch (im2col matrix)
    gates_ref: (4*hidden, B_TILE*HW)  f32   VMEM scratch (matmul result)
    """
    pad = ksize // 2

    # Per-dx column-validity masks (horizontal wrap across W boundaries),
    # generated once on the VPU and reused for every dy / batch element.
    col = jax.lax.broadcasted_iota(jnp.int32, (cpad, hw), 1) % width
    dx_mask = []
    for dx in range(ksize):
        if dx < pad:
            dx_mask.append(col >= (pad - dx))
        elif dx > pad:
            dx_mask.append(col < (width - (dx - pad)))
        else:
            dx_mask.append(None)
    zeros = jnp.zeros((cpad, hw), jnp.bfloat16)          # hoisted (no per-iter bcast)

    # ---- in-VMEM im2col: masked shifted copies, batches side-by-side on lanes
    for b in range(b_tile):
        xb = x_ref[b]                                    # (cpad, XPAD) value, loaded once
        for dy in range(ksize):
            for dx in range(ksize):
                t = dy * ksize + dx
                start = dy * width + dx                  # static lane offset
                slab = xb[:, start:start + hw]           # (cpad, hw) bf16
                if dx_mask[dx] is not None:              # pure select, no bf16 math
                    slab = jnp.where(dx_mask[dx], slab, zeros)
                xmat_ref[t * cpad:(t + 1) * cpad, b * hw:(b + 1) * hw] = slab

    # ---- single fat MXU matmul over all taps & batches, f32 accumulation ----
    gates_ref[...] = jnp.dot(w_ref[...], xmat_ref[...],
                             preferred_element_type=jnp.float32) + b_ref[...]

    # ---- chunked LSTM gating epilogue (bounds live vregs) --------------------
    for b in range(b_tile):
        for c0 in range(0, hw, chunk):
            off = b * hw + c0
            g = gates_ref[:, off:off + chunk]            # (4*hid, chunk) f32
            sig = jax.nn.sigmoid(g[:3 * hidden])         # fused 3x sigmoid (one EUP pass)
            in_gate = sig[:hidden]
            rem_gate = sig[hidden:2 * hidden]
            out_gate = sig[2 * hidden:]
            cell_gate = jnp.tanh(g[3 * hidden:])
            prev_cell = c_ref[b, :, c0:c0 + chunk]       # f32
            cell = rem_gate * prev_cell + in_gate * cell_gate
            c_out_ref[b, :, c0:c0 + chunk] = cell.astype(c_out_ref.dtype)
            h_out_ref[b, :, c0:c0 + chunk] = (out_gate * jnp.tanh(cell)).astype(
                h_out_ref.dtype)


def _round_up(x, m):
    return (x + m - 1) // m * m


def conv_lstm_forward(input_nchw, prev_state, weight_oihw, bias, hidden_size):
    """Matches ConvLSTM.forward: returns (hidden, cell), both NCHW."""
    N, Cx, H, W = input_nchw.shape
    Cout4, Cin, K, K2 = weight_oihw.shape
    assert Cout4 == 4 * hidden_size and Cin == Cx + hidden_size and K == K2
    # The halo + per-dx-mask im2col scheme assumes odd K with 'SAME' padding
    # K // 2, exactly what nn.Conv2d(..., padding=kernel_size // 2) does.
    assert K % 2 == 1, "odd kernel size expected (padding = K // 2)"
    pad = K // 2
    dtype = input_nchw.dtype
    HW = H * W
    halo = pad * (W + 1)                   # flat-index halo covering +-pad rows/cols
    xpad = _round_up(HW + 2 * halo, 128)   # lane-aligned flattened x extent
    cpad = _round_up(Cin, 16)              # bf16 sublane-tile aligned channel count

    if prev_state is None:
        prev_hidden = jnp.zeros((N, hidden_size, H, W), dtype)
        prev_cell = jnp.zeros((N, hidden_size, H, W), dtype)
    else:
        prev_hidden, prev_cell = prev_state

    h_bytes = jnp.dtype(dtype).itemsize

    def vmem_bytes(bt):
        b_x = 2 * bt * cpad * xpad * 2                    # input, double-buffered bf16
        b_c = 2 * bt * hidden_size * HW * 4               # prev cell, f32
        b_w = Cout4 * K * K * cpad * 2                    # weights, single-buffered
        b_b = Cout4 * 128 * 4                             # bias (lane-padded), single
        b_o = 2 * bt * hidden_size * HW * (h_bytes + 4)   # h + c outputs
        b_xm = K * K * cpad * bt * HW * 2                 # im2col scratch
        b_g = Cout4 * bt * HW * 4                         # gates scratch
        return b_x + b_c + b_w + b_b + b_o + b_xm + b_g

    # Largest batch tile dividing N that fits a v7x-safe ~24 MiB budget.
    budget = 24 * 1024 * 1024
    b_tile = 1
    for bt in range(1, N + 1):
        if N % bt == 0 and vmem_bytes(bt) <= budget:
            b_tile = bt
    n_blocks = N // b_tile
    vmem_limit = min(max(int(1.25 * vmem_bytes(b_tile)) + (1 << 20), 4 << 20), 64 << 20)
    chunk = 128 if HW % 128 == 0 else HW

    # ---- glue: stacked input, channels on sublanes, flat spatial on lanes ----
    stacked = jnp.concatenate([input_nchw, prev_hidden], axis=1)      # (N,Cin,H,W)
    x_flat = stacked.reshape(N, Cin, HW)
    x_ext = jnp.pad(x_flat, ((0, 0), (0, cpad - Cin),
                             (halo, xpad - HW - halo))).astype(jnp.bfloat16)

    # weights -> (4*hid, K*K*cpad); column index = (dy*K + dx)*cpad + c
    w = jnp.transpose(weight_oihw, (0, 2, 3, 1))          # (4*hid, K, K, Cin)
    w = jnp.pad(w, ((0, 0), (0, 0), (0, 0), (0, cpad - Cin)))
    w_mat = w.reshape(Cout4, K * K * cpad).astype(jnp.bfloat16)

    b2 = bias.reshape(Cout4, 1).astype(jnp.float32)
    c_flat = prev_cell.reshape(N, hidden_size, HW).astype(jnp.float32)

    kernel = functools.partial(
        convlstm_kernel, ksize=K, width=W, hw=HW, cpad=cpad,
        hidden=hidden_size, b_tile=b_tile, chunk=chunk)

    h_out, c_out = pl.pallas_call(
        kernel,
        out_shape=(
            jax.ShapeDtypeStruct((N, hidden_size, HW), dtype),         # hidden
            jax.ShapeDtypeStruct((N, hidden_size, HW), jnp.float32),   # cell (f32)
        ),
        grid_spec=pltpu.PrefetchScalarGridSpec(
            num_scalar_prefetch=0,
            grid=(n_blocks,),
            in_specs=[
                pl.BlockSpec((b_tile, cpad, xpad), lambda g: (g, 0, 0)),
                pl.BlockSpec((b_tile, hidden_size, HW), lambda g: (g, 0, 0)),
                pl.BlockSpec((Cout4, K * K * cpad), lambda g: (0, 0),
                             pipeline_mode=pl.Buffered(1)),
                pl.BlockSpec((Cout4, 1), lambda g: (0, 0),
                             pipeline_mode=pl.Buffered(1)),
            ],
            out_specs=(
                pl.BlockSpec((b_tile, hidden_size, HW), lambda g: (g, 0, 0)),
                pl.BlockSpec((b_tile, hidden_size, HW), lambda g: (g, 0, 0)),
            ),
            scratch_shapes=[
                pltpu.VMEM((K * K * cpad, b_tile * HW), jnp.bfloat16),  # im2col
                pltpu.VMEM((Cout4, b_tile * HW), jnp.float32),          # gates
            ],
        ),
        compiler_params=pltpu.CompilerParams(
            dimension_semantics=("parallel",),
            vmem_limit_bytes=vmem_limit),
    )(x_ext, c_flat, w_mat, b2)

    # ---- glue: outputs are already flattened NCHW; just reshape -------------
    hidden_nchw = h_out.reshape(N, hidden_size, H, W)
    # Cell math and the cell output are f32 inside the kernel; cast to the
    # module dtype only here.  When chaining steps in low precision, keep the
    # f32 cell instead of this cast.
    cell_nchw = c_out.reshape(N, hidden_size, H, W).astype(dtype)
    return hidden_nchw, cell_nchw


def conv_lstm_reference(input_nchw, prev_state, weight_oihw, bias, hidden_size):
    """Pure-JAX reference mirroring the PyTorch module (for validation)."""
    N, Cx, H, W = input_nchw.shape
    if prev_state is None:
        prev_hidden = jnp.zeros((N, hidden_size, H, W), input_nchw.dtype)
        prev_cell = jnp.zeros((N, hidden_size, H, W), input_nchw.dtype)
    else:
        prev_hidden, prev_cell = prev_state
    stacked = jnp.concatenate([input_nchw, prev_hidden], axis=1)
    gates = jax.lax.conv_general_dilated(
        stacked, weight_oihw, window_strides=(1, 1), padding="SAME",
        dimension_numbers=("NCHW", "OIHW", "NCHW"))
    gates = gates + bias[None, :, None, None]
    in_g, rem_g, out_g, cell_g = jnp.split(gates, 4, axis=1)
    cell = jax.nn.sigmoid(rem_g) * prev_cell + jax.nn.sigmoid(in_g) * jnp.tanh(cell_g)
    hidden = jax.nn.sigmoid(out_g) * jnp.tanh(cell)
    return hidden, cell


if __name__ == "__main__":
    # Small shapes consistent with the module: batch=2, input_size=4,
    # hidden_size=32, spatial 16x16, kernel_size=3.
    batch, input_size, hidden_size, H, W, K = 2, 4, 32, 16, 16, 3
    Cin = input_size + hidden_size

    key = jax.random.PRNGKey(0)
    k_x, k_w, k_b = jax.random.split(key, 3)
    x = jax.random.normal(k_x, (batch, input_size, H, W), dtype=jnp.float32)
    weight = 0.05 * jax.random.normal(k_w, (4 * hidden_size, Cin, K, K), jnp.float32)
    bias = 0.05 * jax.random.normal(k_b, (4 * hidden_size,), jnp.float32)

    # prev_state=None path (zero-initialized hidden/cell, like the PyTorch module).
    hidden_out, cell_out = conv_lstm_forward(x, None, weight, bias, hidden_size)
    hidden_out = jax.block_until_ready(hidden_out)
    cell_out = jax.block_until_ready(cell_out)

    h_ref, c_ref = conv_lstm_reference(x, None, weight, bias, hidden_size)
    assert hidden_out.shape == (batch, hidden_size, H, W)
    assert cell_out.shape == (batch, hidden_size, H, W)
    assert jnp.allclose(hidden_out, h_ref, atol=3e-2, rtol=3e-2)
    assert jnp.allclose(cell_out, c_ref, atol=3e-2, rtol=3e-2)

    # Second step with a non-None prev_state (same state fed to kernel & ref).
    hidden2, cell2 = conv_lstm_forward(x, (hidden_out, cell_out), weight, bias,
                                       hidden_size)
    h2_ref, c2_ref = conv_lstm_reference(x, (hidden_out, cell_out), weight, bias,
                                         hidden_size)
    hidden2 = jax.block_until_ready(hidden2)
    cell2 = jax.block_until_ready(cell2)
    assert jnp.allclose(hidden2, h2_ref, atol=3e-2, rtol=3e-2)
    assert jnp.allclose(cell2, c2_ref, atol=3e-2, rtol=3e-2)

    print("KERNEL_OK")
</pallas_src>

<mosaic_0001>
module attributes {stable_mosaic.version = 11 : i64} {
  func.func @convlstm_kernel(%arg0: i32, %arg1: memref<2x48x384xbf16, #tpu.memory_space<vmem>>, %arg2: memref<2x32x256xf32, #tpu.memory_space<vmem>>, %arg3: memref<128x432xbf16, #tpu.memory_space<vmem>>, %arg4: memref<128x1xf32, #tpu.memory_space<vmem>>, %arg5: memref<2x32x256xf32, #tpu.memory_space<vmem>>, %arg6: memref<2x32x256xf32, #tpu.memory_space<vmem>>, %arg7: memref<432x512xbf16, #tpu.memory_space<vmem>>, %arg8: memref<128x512xf32, #tpu.memory_space<vmem>>) attributes {dimension_semantics = [#tpu.dimension_semantics<parallel>], iteration_bounds = array<i64: 1>, scalar_prefetch = 0 : i64, scratch_operands = 2 : i64, tpu.core_type = #tpu.core_type<tc>, window_params = [{transform_indices = @transform_0, window_bounds = array<i64: 2, 48, 384>}, {transform_indices = @transform_1, window_bounds = array<i64: 2, 32, 256>}, {pipeline_mode = #tpu.pipeline_mode<synchronous>, transform_indices = @transform_2, window_bounds = array<i64: 128, 432>}, {pipeline_mode = #tpu.pipeline_mode<synchronous>, transform_indices = @transform_3, window_bounds = array<i64: 128, 1>}, {transform_indices = @transform_4, window_bounds = array<i64: 2, 32, 256>}, {transform_indices = @transform_5, window_bounds = array<i64: 2, 32, 256>}]} {
    %0 = tpu.iota {dimensions = array<i32: 1>} : vector<48x256xi32>
    %c16_i32 = arith.constant 16 : i32
    %c0_i32 = arith.constant 0 : i32
    %1 = arith.cmpi eq, %c16_i32, %c0_i32 : i32
    %c1_i32 = arith.constant 1 : i32
    %2 = arith.select %1, %c1_i32, %c16_i32 : i32
    %3 = vector.broadcast %2 : i32 to vector<48x256xi32>
    %4 = arith.remsi %0, %3 : vector<48x256xi32>
    %c0_i32_0 = arith.constant 0 : i32
    %5 = vector.broadcast %c0_i32_0 : i32 to vector<48x256xi32>
    %6 = arith.cmpi ne, %4, %5 : vector<48x256xi32>
    %c0_i32_1 = arith.constant 0 : i32
    %7 = vector.broadcast %c0_i32_1 : i32 to vector<48x256xi32>
    %8 = arith.cmpi slt, %4, %7 : vector<48x256xi32>
    %c0_i32_2 = arith.constant 0 : i32
    %9 = arith.cmpi slt, %2, %c0_i32_2 : i32
    %10 = vector.broadcast %9 : i1 to vector<48x256xi1>
    %11 = vector.broadcast %10 : vector<48x256xi1> to vector<48x256xi1>
    %12 = arith.xori %8, %11 : vector<48x256xi1>
    %13 = arith.andi %12, %6 : vector<48x256xi1>
    %14 = vector.broadcast %2 : i32 to vector<48x256xi32>
    %15 = arith.addi %4, %14 : vector<48x256xi32>
    %16 = arith.select %13, %15, %4 : vector<48x256xi1>, vector<48x256xi32>
    %c1_i32_3 = arith.constant 1 : i32
    %17 = vector.broadcast %c1_i32_3 : i32 to vector<48x256xi32>
    %18 = arith.cmpi sge, %16, %17 : vector<48x256xi32>
    %c15_i32 = arith.constant 15 : i32
    %19 = vector.broadcast %c15_i32 : i32 to vector<48x256xi32>
    %20 = arith.cmpi slt, %16, %19 : vector<48x256xi32>
    %cst = arith.constant 0.000000e+00 : bf16
    %21 = vector.broadcast %cst : bf16 to vector<48x256xbf16>
    %c0 = arith.constant 0 : index
    %c0_4 = arith.constant 0 : index
    %c0_5 = arith.constant 0 : index
    %22 = vector.load %arg1[%c0, %c0_4, %c0_5] : memref<2x48x384xbf16, #tpu.memory_space<vmem>>, vector<1x48x384xbf16>
    %23 = vector.shape_cast %22 : vector<1x48x384xbf16> to vector<48x384xbf16>
    %24 = vector.extract_strided_slice %23 {offsets = [0, 0], sizes = [48, 256], strides = [1, 1]} : vector<48x384xbf16> to vector<48x256xbf16>
    %25 = arith.select %18, %24, %21 : vector<48x256xi1>, vector<48x256xbf16>
    %c0_6 = arith.constant 0 : index
    %c0_7 = arith.constant 0 : index
    %26 = vector.load %arg7[%c0_6, %c0_7] : memref<432x512xbf16, #tpu.memory_space<vmem>>, vector<48x256xbf16>
    tpu.vector_store %arg7[%c0_6, %c0_7], %25 {strides = array<i32>} : memref<432x512xbf16, #tpu.memory_space<vmem>>, vector<48x256xbf16>,
    %27 = vector.extract_strided_slice %23 {offsets = [0, 1], sizes = [48, 256], strides = [1, 1]} : vector<48x384xbf16> to vector<48x256xbf16>
    %c48 = arith.constant 48 : index
    %c0_8 = arith.constant 0 : index
    %28 = vector.load %arg7[%c48, %c0_8] : memref<432x512xbf16, #tpu.memory_space<vmem>>, vector<48x256xbf16>
    tpu.vector_store %arg7[%c48, %c0_8], %27 {strides = array<i32>} : memref<432x512xbf16, #tpu.memory_space<vmem>>, vector<48x256xbf16>,
    %29 = vector.extract_strided_slice %23 {offsets = [0, 2], sizes = [48, 256], strides = [1, 1]} : vector<48x384xbf16> to vector<48x256xbf16>
    %30 = arith.select %20, %29, %21 : vector<48x256xi1>, vector<48x256xbf16>
    %c96 = arith.constant 96 : index
    %c0_9 = arith.constant 0 : index
    %31 = vector.load %arg7[%c96, %c0_9] : memref<432x512xbf16, #tpu.memory_space<vmem>>, vector<48x256xbf16>
    tpu.vector_store %arg7[%c96, %c0_9], %30 {strides = array<i32>} : memref<432x512xbf16, #tpu.memory_space<vmem>>, vector<48x256xbf16>,
    %32 = vector.extract_strided_slice %23 {offsets = [0, 16], sizes = [48, 256], strides = [1, 1]} : vector<48x384xbf16> to vector<48x256xbf16>
    %33 = arith.select %18, %32, %21 : vector<48x256xi1>, vector<48x256xbf16>
    %c144 = arith.constant 144 : index
    %c0_10 = arith.constant 0 : index
    %34 = vector.load %arg7[%c144, %c0_10] : memref<432x512xbf16, #tpu.memory_space<vmem>>, vector<48x256xbf16>
    tpu.vector_store %arg7[%c144, %c0_10], %33 {strides = array<i32>} : memref<432x512xbf16, #tpu.memory_space<vmem>>, vector<48x256xbf16>,
    %35 = vector.extract_strided_slice %23 {offsets = [0, 17], sizes = [48, 256], strides = [1, 1]} : vector<48x384xbf16> to vector<48x256xbf16>
    %c192 = arith.constant 192 : index
    %c0_11 = arith.constant 0 : index
    %36 = vector.load %arg7[%c192, %c0_11] : memref<432x512xbf16, #tpu.memory_space<vmem>>, vector<48x256xbf16>
    tpu.vector_store %arg7[%c192, %c0_11], %35 {strides = array<i32>} : memref<432x512xbf16, #tpu.memory_space<vmem>>, vector<48x256xbf16>,
    %37 = vector.extract_strided_slice %23 {offsets = [0, 18], sizes = [48, 256], strides = [1, 1]} : vector<48x384xbf16> to vector<48x256xbf16>
    %38 = arith.select %20, %37, %21 : vector<48x256xi1>, vector<48x256xbf16>
    %c240 = arith.constant 240 : index
    %c0_12 = arith.constant 0 : index
    %39 = vector.load %arg7[%c240, %c0_12] : memref<432x512xbf16, #tpu.memory_space<vmem>>, vector<48x256xbf16>
    tpu.vector_store %arg7[%c240, %c0_12], %38 {strides = array<i32>} : memref<432x512xbf16, #tpu.memory_space<vmem>>, vector<48x256xbf16>,
    %40 = vector.extract_strided_slice %23 {offsets = [0, 32], sizes = [48, 256], strides = [1, 1]} : vector<48x384xbf16> to vector<48x256xbf16>
    %41 = arith.select %18, %40, %21 : vector<48x256xi1>, vector<48x256xbf16>
    %c288 = arith.constant 288 : index
    %c0_13 = arith.constant 0 : index
    %42 = vector.load %arg7[%c288, %c0_13] : memref<432x512xbf16, #tpu.memory_space<vmem>>, vector<48x256xbf16>
    tpu.vector_store %arg7[%c288, %c0_13], %41 {strides = array<i32>} : memref<432x512xbf16, #tpu.memory_space<vmem>>, vector<48x256xbf16>,
    %43 = vector.extract_strided_slice %23 {offsets = [0, 33], sizes = [48, 256], strides = [1, 1]} : vector<48x384xbf16> to vector<48x256xbf16>
    %c336 = arith.constant 336 : index
    %c0_14 = arith.constant 0 : index
    %44 = vector.load %arg7[%c336, %c0_14] : memref<432x512xbf16, #tpu.memory_space<vmem>>, vector<48x256xbf16>
    tpu.vector_store %arg7[%c336, %c0_14], %43 {strides = array<i32>} : memref<432x512xbf16, #tpu.memory_space<vmem>>, vector<48x256xbf16>,
    %45 = vector.extract_strided_slice %23 {offsets = [0, 34], sizes = [48, 256], strides = [1, 1]} : vector<48x384xbf16> to vector<48x256xbf16>
    %46 = arith.select %20, %45, %21 : vector<48x256xi1>, vector<48x256xbf16>
    %c384 = arith.constant 384 : index
    %c0_15 = arith.constant 0 : index
    %47 = vector.load %arg7[%c384, %c0_15] : memref<432x512xbf16, #tpu.memory_space<vmem>>, vector<48x256xbf16>
    tpu.vector_store %arg7[%c384, %c0_15], %46 {strides = array<i32>} : memref<432x512xbf16, #tpu.memory_space<vmem>>, vector<48x256xbf16>,
    %c1 = arith.constant 1 : index
    %c0_16 = arith.constant 0 : index
    %c0_17 = arith.constant 0 : index
    %48 = vector.load %arg1[%c1, %c0_16, %c0_17] : memref<2x48x384xbf16, #tpu.memory_space<vmem>>, vector<1x48x384xbf16>
    %49 = vector.shape_cast %48 : vector<1x48x384xbf16> to vector<48x384xbf16>
    %50 = vector.extract_strided_slice %49 {offsets = [0, 0], sizes = [48, 256], strides = [1, 1]} : vector<48x384xbf16> to vector<48x256xbf16>
    %51 = arith.select %18, %50, %21 : vector<48x256xi1>, vector<48x256xbf16>
    %c0_18 = arith.constant 0 : index
    %c256 = arith.constant 256 : index
    %52 = vector.load %arg7[%c0_18, %c256] : memref<432x512xbf16, #tpu.memory_space<vmem>>, vector<48x256xbf16>
    tpu.vector_store %arg7[%c0_18, %c256], %51 {strides = array<i32>} : memref<432x512xbf16, #tpu.memory_space<vmem>>, vector<48x256xbf16>,
    %53 = vector.extract_strided_slice %49 {offsets = [0, 1], sizes = [48, 256], strides = [1, 1]} : vector<48x384xbf16> to vector<48x256xbf16>
    %c48_19 = arith.constant 48 : index
    %c256_20 = arith.constant 256 : index
    %54 = vector.load %arg7[%c48_19, %c256_20] : memref<432x512xbf16, #tpu.memory_space<vmem>>, vector<48x256xbf16>
    tpu.vector_store %arg7[%c48_19, %c256_20], %53 {strides = array<i32>} : memref<432x512xbf16, #tpu.memory_space<vmem>>, vector<48x256xbf16>,
    %55 = vector.extract_strided_slice %49 {offsets = [0, 2], sizes = [48, 256], strides = [1, 1]} : vector<48x384xbf16> to vector<48x256xbf16>
    %56 = arith.select %20, %55, %21 : vector<48x256xi1>, vector<48x256xbf16>
    %c96_21 = arith.constant 96 : index
    %c256_22 = arith.constant 256 : index
    %57 = vector.load %arg7[%c96_21, %c256_22] : memref<432x512xbf16, #tpu.memory_space<vmem>>, vector<48x256xbf16>
    tpu.vector_store %arg7[%c96_21, %c256_22], %56 {strides = array<i32>} : memref<432x512xbf16, #tpu.memory_space<vmem>>, vector<48x256xbf16>,
    %58 = vector.extract_strided_slice %49 {offsets = [0, 16], sizes = [48, 256], strides = [1, 1]} : vector<48x384xbf16> to vector<48x256xbf16>
    %59 = arith.select %18, %58, %21 : vector<48x256xi1>, vector<48x256xbf16>
    %c144_23 = arith.constant 144 : index
    %c256_24 = arith.constant 256 : index
    %60 = vector.load %arg7[%c144_23, %c256_24] : memref<432x512xbf16, #tpu.memory_space<vmem>>, vector<48x256xbf16>
    tpu.vector_store %arg7[%c144_23, %c256_24], %59 {strides = array<i32>} : memref<432x512xbf16, #tpu.memory_space<vmem>>, vector<48x256xbf16>,
    %61 = vector.extract_strided_slice %49 {offsets = [0, 17], sizes = [48, 256], strides = [1, 1]} : vector<48x384xbf16> to vector<48x256xbf16>
    %c192_25 = arith.constant 192 : index
    %c256_26 = arith.constant 256 : index
    %62 = vector.load %arg7[%c192_25, %c256_26] : memref<432x512xbf16, #tpu.memory_space<vmem>>, vector<48x256xbf16>
    tpu.vector_store %arg7[%c192_25, %c256_26], %61 {strides = array<i32>} : memref<432x512xbf16, #tpu.memory_space<vmem>>, vector<48x256xbf16>,
    %63 = vector.extract_strided_slice %49 {offsets = [0, 18], sizes = [48, 256], strides = [1, 1]} : vector<48x384xbf16> to vector<48x256xbf16>
    %64 = arith.select %20, %63, %21 : vector<48x256xi1>, vector<48x256xbf16>
    %c240_27 = arith.constant 240 : index
    %c256_28 = arith.constant 256 : index
    %65 = vector.load %arg7[%c240_27, %c256_28] : memref<432x512xbf16, #tpu.memory_space<vmem>>, vector<48x256xbf16>
    tpu.vector_store %arg7[%c240_27, %c256_28], %64 {strides = array<i32>} : memref<432x512xbf16, #tpu.memory_space<vmem>>, vector<48x256xbf16>,
    %66 = vector.extract_strided_slice %49 {offsets = [0, 32], sizes = [48, 256], strides = [1, 1]} : vector<48x384xbf16> to vector<48x256xbf16>
    %67 = arith.select %18, %66, %21 : vector<48x256xi1>, vector<48x256xbf16>
    %c288_29 = arith.constant 288 : index
    %c256_30 = arith.constant 256 : index
    %68 = vector.load %arg7[%c288_29, %c256_30] : memref<432x512xbf16, #tpu.memory_space<vmem>>, vector<48x256xbf16>
    tpu.vector_store %arg7[%c288_29, %c256_30], %67 {strides = array<i32>} : memref<432x512xbf16, #tpu.memory_space<vmem>>, vector<48x256xbf16>,
    %69 = vector.extract_strided_slice %49 {offsets = [0, 33], sizes = [48, 256], strides = [1, 1]} : vector<48x384xbf16> to vector<48x256xbf16>
    %c336_31 = arith.constant 336 : index
    %c256_32 = arith.constant 256 : index
    %70 = vector.load %arg7[%c336_31, %c256_32] : memref<432x512xbf16, #tpu.memory_space<vmem>>, vector<48x256xbf16>
    tpu.vector_store %arg7[%c336_31, %c256_32], %69 {strides = array<i32>} : memref<432x512xbf16, #tpu.memory_space<vmem>>, vector<48x256xbf16>,
    %71 = vector.extract_strided_slice %49 {offsets = [0, 34], sizes = [48, 256], strides = [1, 1]} : vector<48x384xbf16> to vector<48x256xbf16>
    %72 = arith.select %20, %71, %21 : vector<48x256xi1>, vector<48x256xbf16>
    %c384_33 = arith.constant 384 : index
    %c256_34 = arith.constant 256 : index
    %73 = vector.load %arg7[%c384_33, %c256_34] : memref<432x512xbf16, #tpu.memory_space<vmem>>, vector<48x256xbf16>
    tpu.vector_store %arg7[%c384_33, %c256_34], %72 {strides = array<i32>} : memref<432x512xbf16, #tpu.memory_space<vmem>>, vector<48x256xbf16>,
    %c0_35 = arith.constant 0 : index
    %c0_36 = arith.constant 0 : index
    %74 = vector.load %arg3[%c0_35, %c0_36] : memref<128x432xbf16, #tpu.memory_space<vmem>>, vector<128x432xbf16>
    %c0_37 = arith.constant 0 : index
    %c0_38 = arith.constant 0 : index
    %75 = vector.load %arg7[%c0_37, %c0_38] : memref<432x512xbf16, #tpu.memory_space<vmem>>, vector<432x512xbf16>
    %cst_39 = arith.constant dense<0.000000e+00> : vector<128x512xf32>
    %76 = tpu.matmul %74, %75, %cst_39 {dimension_numbers = #tpu.dot_dimension_numbers<[1], [0], [0], [1], [0, 0, 1, 1], [], []>} : vector<128x432xbf16>, vector<432x512xbf16>, vector<128x512xf32> -> vector<128x512xf32>
    %c0_40 = arith.constant 0 : index
    %c0_41 = arith.constant 0 : index
    %77 = vector.load %arg4[%c0_40, %c0_41] : memref<128x1xf32, #tpu.memory_space<vmem>>, vector<128x1xf32>
    %78 = vector.broadcast %77 : vector<128x1xf32> to vector<128x512xf32>
    %79 = arith.addf %76, %78 : vector<128x512xf32>
    %c0_42 = arith.constant 0 : index
    %c0_43 = arith.constant 0 : index
    %80 = vector.load %arg8[%c0_42, %c0_43] : memref<128x512xf32, #tpu.memory_space<vmem>>, vector<128x512xf32>
    tpu.vector_store %arg8[%c0_42, %c0_43], %79 {strides = array<i32>} : memref<128x512xf32, #tpu.memory_space<vmem>>, vector<128x512xf32>,
    %c0_44 = arith.constant 0 : index
    %c0_45 = arith.constant 0 : index
    %81 = vector.load %arg8[%c0_44, %c0_45] : memref<128x512xf32, #tpu.memory_space<vmem>>, vector<128x128xf32>
    %82 = vector.extract_strided_slice %81 {offsets = [0, 0], sizes = [96, 128], strides = [1, 1]} : vector<128x128xf32> to vector<96x128xf32>
    %83 = arith.negf %82 : vector<96x128xf32>
    %84 = math.exp %83 : vector<96x128xf32>
    %cst_46 = arith.constant 1.000000e+00 : f32
    %85 = vector.broadcast %cst_46 : f32 to vector<96x128xf32>
    %86 = arith.addf %85, %84 : vector<96x128xf32>
    %87 = arith.divf %85, %86 : vector<96x128xf32>
    %88 = vector.extract_strided_slice %87 {offsets = [0, 0], sizes = [32, 128], strides = [1, 1]} : vector<96x128xf32> to vector<32x128xf32>
    %89 = vector.extract_strided_slice %87 {offsets = [32, 0], sizes = [32, 128], strides = [1, 1]} : vector<96x128xf32> to vector<32x128xf32>
    %90 = vector.extract_strided_slice %87 {offsets = [64, 0], sizes = [32, 128], strides = [1, 1]} : vector<96x128xf32> to vector<32x128xf32>
    %91 = vector.extract_strided_slice %81 {offsets = [96, 0], sizes = [32, 128], strides = [1, 1]} : vector<128x128xf32> to vector<32x128xf32>
    %92 = math.tanh %91 : vector<32x128xf32>
    %c0_47 = arith.constant 0 : index
    %c0_48 = arith.constant 0 : index
    %c0_49 = arith.constant 0 : index
    %93 = vector.load %arg2[%c0_47, %c0_48, %c0_49] : memref<2x32x256xf32, #tpu.memory_space<vmem>>, vector<1x32x128xf32>
    %94 = vector.shape_cast %93 : vector<1x32x128xf32> to vector<32x128xf32>
    %95 = arith.mulf %89, %94 : vector<32x128xf32>
    %96 = arith.mulf %88, %92 : vector<32x128xf32>
    %97 = arith.addf %95, %96 : vector<32x128xf32>
    %c0_50 = arith.constant 0 : index
    %c0_51 = arith.constant 0 : index
    %c0_52 = arith.constant 0 : index
    %98 = vector.load %arg6[%c0_50, %c0_51, %c0_52] : memref<2x32x256xf32, #tpu.memory_space<vmem>>, vector<1x32x128xf32>
    %99 = vector.shape_cast %98 : vector<1x32x128xf32> to vector<32x128xf32>
    %100 = vector.shape_cast %97 : vector<32x128xf32> to vector<1x32x128xf32>
    tpu.vector_store %arg6[%c0_50, %c0_51, %c0_52], %100 {strides = array<i32>} : memref<2x32x256xf32, #tpu.memory_space<vmem>>, vector<1x32x128xf32>,
    %101 = math.tanh %97 : vector<32x128xf32>
    %102 = arith.mulf %90, %101 : vector<32x128xf32>
    %c0_53 = arith.constant 0 : index
    %c0_54 = arith.constant 0 : index
    %c0_55 = arith.constant 0 : index
    %103 = vector.load %arg5[%c0_53, %c0_54, %c0_55] : memref<2x32x256xf32, #tpu.memory_space<vmem>>, vector<1x32x128xf32>
    %104 = vector.shape_cast %103 : vector<1x32x128xf32> to vector<32x128xf32>
    %105 = vector.shape_cast %102 : vector<32x128xf32> to vector<1x32x128xf32>
    tpu.vector_store %arg5[%c0_53, %c0_54, %c0_55], %105 {strides = array<i32>} : memref<2x32x256xf32, #tpu.memory_space<vmem>>, vector<1x32x128xf32>,
    %c0_56 = arith.constant 0 : index
    %c128 = arith.constant 128 : index
    %106 = vector.load %arg8[%c0_56, %c128] : memref<128x512xf32, #tpu.memory_space<vmem>>, vector<128x128xf32>
    %107 = vector.extract_strided_slice %106 {offsets = [0, 0], sizes = [96, 128], strides = [1, 1]} : vector<128x128xf32> to vector<96x128xf32>
    %108 = arith.negf %107 : vector<96x128xf32>
    %109 = math.exp %108 : vector<96x128xf32>
    %cst_57 = arith.constant 1.000000e+00 : f32
    %110 = vector.broadcast %cst_57 : f32 to vector<96x128xf32>
    %111 = arith.addf %110, %109 : vector<96x128xf32>
    %112 = arith.divf %110, %111 : vector<96x128xf32>
    %113 = vector.extract_strided_slice %112 {offsets = [0, 0], sizes = [32, 128], strides = [1, 1]} : vector<96x128xf32> to vector<32x128xf32>
    %114 = vector.extract_strided_slice %112 {offsets = [32, 0], sizes = [32, 128], strides = [1, 1]} : vector<96x128xf32> to vector<32x128xf32>
    %115 = vector.extract_strided_slice %112 {offsets = [64, 0], sizes = [32, 128], strides = [1, 1]} : vector<96x128xf32> to vector<32x128xf32>
    %116 = vector.extract_strided_slice %106 {offsets = [96, 0], sizes = [32, 128], strides = [1, 1]} : vector<128x128xf32> to vector<32x128xf32>
    %117 = math.tanh %116 : vector<32x128xf32>
    %c0_58 = arith.constant 0 : index
    %c0_59 = arith.constant 0 : index
    %c128_60 = arith.constant 128 : index
    %118 = vector.load %arg2[%c0_58, %c0_59, %c128_60] : memref<2x32x256xf32, #tpu.memory_space<vmem>>, vector<1x32x128xf32>
    %119 = vector.shape_cast %118 : vector<1x32x128xf32> to vector<32x128xf32>
    %120 = arith.mulf %114, %119 : vector<32x128xf32>
    %121 = arith.mulf %113, %117 : vector<32x128xf32>
    %122 = arith.addf %120, %121 : vector<32x128xf32>
    %c0_61 = arith.constant 0 : index
    %c0_62 = arith.constant 0 : index
    %c128_63 = arith.constant 128 : index
    %123 = vector.load %arg6[%c0_61, %c0_62, %c128_63] : memref<2x32x256xf32, #tpu.memory_space<vmem>>, vector<1x32x128xf32>
    %124 = vector.shape_cast %123 : vector<1x32x128xf32> to vector<32x128xf32>
    %125 = vector.shape_cast %122 : vector<32x128xf32> to vector<1x32x128xf32>
    tpu.vector_store %arg6[%c0_61, %c0_62, %c128_63], %125 {strides = array<i32>} : memref<2x32x256xf32, #tpu.memory_space<vmem>>, vector<1x32x128xf32>,
    %126 = math.tanh %122 : vector<32x128xf32>
    %127 = arith.mulf %115, %126 : vector<32x128xf32>
    %c0_64 = arith.constant 0 : index
    %c0_65 = arith.constant 0 : index
    %c128_66 = arith.constant 128 : index
    %128 = vector.load %arg5[%c0_64, %c0_65, %c128_66] : memref<2x32x256xf32, #tpu.memory_space<vmem>>, vector<1x32x128xf32>
    %129 = vector.shape_cast %128 : vector<1x32x128xf32> to vector<32x128xf32>
    %130 = vector.shape_cast %127 : vector<32x128xf32> to vector<1x32x128xf32>
    tpu.vector_store %arg5[%c0_64, %c0_65, %c128_66], %130 {strides = array<i32>} : memref<2x32x256xf32, #tpu.memory_space<vmem>>, vector<1x32x128xf32>,
    %c0_67 = arith.constant 0 : index
    %c256_68 = arith.constant 256 : index
    %131 = vector.load %arg8[%c0_67, %c256_68] : memref<128x512xf32, #tpu.memory_space<vmem>>, vector<128x128xf32>
    %132 = vector.extract_strided_slice %131 {offsets = [0, 0], sizes = [96, 128], strides = [1, 1]} : vector<128x128xf32> to vector<96x128xf32>
    %133 = arith.negf %132 : vector<96x128xf32>
    %134 = math.exp %133 : vector<96x128xf32>
    %cst_69 = arith.constant 1.000000e+00 : f32
    %135 = vector.broadcast %cst_69 : f32 to vector<96x128xf32>
    %136 = arith.addf %135, %134 : vector<96x128xf32>
    %137 = arith.divf %135, %136 : vector<96x128xf32>
    %138 = vector.extract_strided_slice %137 {offsets = [0, 0], sizes = [32, 128], strides = [1, 1]} : vector<96x128xf32> to vector<32x128xf32>
    %139 = vector.extract_strided_slice %137 {offsets = [32, 0], sizes = [32, 128], strides = [1, 1]} : vector<96x128xf32> to vector<32x128xf32>
    %140 = vector.extract_strided_slice %137 {offsets = [64, 0], sizes = [32, 128], strides = [1, 1]} : vector<96x128xf32> to vector<32x128xf32>
    %141 = vector.extract_strided_slice %131 {offsets = [96, 0], sizes = [32, 128], strides = [1, 1]} : vector<128x128xf32> to vector<32x128xf32>
    %142 = math.tanh %141 : vector<32x128xf32>
    %c1_70 = arith.constant 1 : index
    %c0_71 = arith.constant 0 : index
    %c0_72 = arith.constant 0 : index
    %143 = vector.load %arg2[%c1_70, %c0_71, %c0_72] : memref<2x32x256xf32, #tpu.memory_space<vmem>>, vector<1x32x128xf32>
    %144 = vector.shape_cast %143 : vector<1x32x128xf32> to vector<32x128xf32>
    %145 = arith.mulf %139, %144 : vector<32x128xf32>
    %146 = arith.mulf %138, %142 : vector<32x128xf32>
    %147 = arith.addf %145, %146 : vector<32x128xf32>
    %c1_73 = arith.constant 1 : index
    %c0_74 = arith.constant 0 : index
    %c0_75 = arith.constant 0 : index
    %148 = vector.load %arg6[%c1_73, %c0_74, %c0_75] : memref<2x32x256xf32, #tpu.memory_space<vmem>>, vector<1x32x128xf32>
    %149 = vector.shape_cast %148 : vector<1x32x128xf32> to vector<32x128xf32>
    %150 = vector.shape_cast %147 : vector<32x128xf32> to vector<1x32x128xf32>
    tpu.vector_store %arg6[%c1_73, %c0_74, %c0_75], %150 {strides = array<i32>} : memref<2x32x256xf32, #tpu.memory_space<vmem>>, vector<1x32x128xf32>,
    %151 = math.tanh %147 : vector<32x128xf32>
    %152 = arith.mulf %140, %151 : vector<32x128xf32>
    %c1_76 = arith.constant 1 : index
    %c0_77 = arith.constant 0 : index
    %c0_78 = arith.constant 0 : index
    %153 = vector.load %arg5[%c1_76, %c0_77, %c0_78] : memref<2x32x256xf32, #tpu.memory_space<vmem>>, vector<1x32x128xf32>
    %154 = vector.shape_cast %153 : vector<1x32x128xf32> to vector<32x128xf32>
    %155 = vector.shape_cast %152 : vector<32x128xf32> to vector<1x32x128xf32>
    tpu.vector_store %arg5[%c1_76, %c0_77, %c0_78], %155 {strides = array<i32>} : memref<2x32x256xf32, #tpu.memory_space<vmem>>, vector<1x32x128xf32>,
    %c0_79 = arith.constant 0 : index
    %c384_80 = arith.constant 384 : index
    %156 = vector.load %arg8[%c0_79, %c384_80] : memref<128x512xf32, #tpu.memory_space<vmem>>, vector<128x128xf32>
    %157 = vector.extract_strided_slice %156 {offsets = [0, 0], sizes = [96, 128], strides = [1, 1]} : vector<128x128xf32> to vector<96x128xf32>
    %158 = arith.negf %157 : vector<96x128xf32>
    %159 = math.exp %158 : vector<96x128xf32>
    %cst_81 = arith.constant 1.000000e+00 : f32
    %160 = vector.broadcast %cst_81 : f32 to vector<96x128xf32>
    %161 = arith.addf %160, %159 : vector<96x128xf32>
    %162 = arith.divf %160, %161 : vector<96x128xf32>
    %163 = vector.extract_strided_slice %162 {offsets = [0, 0], sizes = [32, 128], strides = [1, 1]} : vector<96x128xf32> to vector<32x128xf32>
    %164 = vector.extract_strided_slice %162 {offsets = [32, 0], sizes = [32, 128], strides = [1, 1]} : vector<96x128xf32> to vector<32x128xf32>
    %165 = vector.extract_strided_slice %162 {offsets = [64, 0], sizes = [32, 128], strides = [1, 1]} : vector<96x128xf32> to vector<32x128xf32>
    %166 = vector.extract_strided_slice %156 {offsets = [96, 0], sizes = [32, 128], strides = [1, 1]} : vector<128x128xf32> to vector<32x128xf32>
    %167 = math.tanh %166 : vector<32x128xf32>
    %c1_82 = arith.constant 1 : index
    %c0_83 = arith.constant 0 : index
    %c128_84 = arith.constant 128 : index
    %168 = vector.load %arg2[%c1_82, %c0_83, %c128_84] : memref<2x32x256xf32, #tpu.memory_space<vmem>>, vector<1x32x128xf32>
    %169 = vector.shape_cast %168 : vector<1x32x128xf32> to vector<32x128xf32>
    %170 = arith.mulf %164, %169 : vector<32x128xf32>
    %171 = arith.mulf %163, %167 : vector<32x128xf32>
    %172 = arith.addf %170, %171 : vector<32x128xf32>
    %c1_85 = arith.constant 1 : index
    %c0_86 = arith.constant 0 : index
    %c128_87 = arith.constant 128 : index
    %173 = vector.load %arg6[%c1_85, %c0_86, %c128_87] : memref<2x32x256xf32, #tpu.memory_space<vmem>>, vector<1x32x128xf32>
    %174 = vector.shape_cast %173 : vector<1x32x128xf32> to vector<32x128xf32>
    %175 = vector.shape_cast %172 : vector<32x128xf32> to vector<1x32x128xf32>
    tpu.vector_store %arg6[%c1_85, %c0_86, %c128_87], %175 {strides = array<i32>} : memref<2x32x256xf32, #tpu.memory_space<vmem>>, vector<1x32x128xf32>,
    %176 = math.tanh %172 : vector<32x128xf32>
    %177 = arith.mulf %165, %176 : vector<32x128xf32>
    %c1_88 = arith.constant 1 : index
    %c0_89 = arith.constant 0 : index
    %c128_90 = arith.constant 128 : index
    %178 = vector.load %arg5[%c1_88, %c0_89, %c128_90] : memref<2x32x256xf32, #tpu.memory_space<vmem>>, vector<1x32x128xf32>
    %179 = vector.shape_cast %178 : vector<1x32x128xf32> to vector<32x128xf32>
    %180 = vector.shape_cast %177 : vector<32x128xf32> to vector<1x32x128xf32>
    tpu.vector_store %arg5[%c1_88, %c0_89, %c128_90], %180 {strides = array<i32>} : memref<2x32x256xf32, #tpu.memory_space<vmem>>, vector<1x32x128xf32>,
    return
  }
  func.func @transform_0(%arg0: i32) -> (i32, i32, i32) {
    %c0_i32 = arith.constant 0 : i32
    %c0_i32_0 = arith.constant 0 : i32
    %c0_i32_1 = arith.constant 0 : i32
    return %arg0, %c0_i32, %c0_i32_0 : i32, i32, i32
  }
  func.func @transform_1(%arg0: i32) -> (i32, i32, i32) {
    %c0_i32 = arith.constant 0 : i32
    %c0_i32_0 = arith.constant 0 : i32
    %c0_i32_1 = arith.constant 0 : i32
    return %arg0, %c0_i32, %c0_i32_0 : i32, i32, i32
  }
  func.func @transform_2(%arg0: i32) -> (i32, i32) {
    %c0_i32 = arith.constant 0 : i32
    %c0_i32_0 = arith.constant 0 : i32
    %c0_i32_1 = arith.constant 0 : i32
    return %c0_i32, %c0_i32_0 : i32, i32
  }
  func.func @transform_3(%arg0: i32) -> (i32, i32) {
    %c0_i32 = arith.constant 0 : i32
    %c0_i32_0 = arith.constant 0 : i32
    %c0_i32_1 = arith.constant 0 : i32
    return %c0_i32, %c0_i32_0 : i32, i32
  }
  func.func @transform_4(%arg0: i32) -> (i32, i32, i32) {
    %c0_i32 = arith.constant 0 : i32
    %c0_i32_0 = arith.constant 0 : i32
    %c0_i32_1 = arith.constant 0 : i32
    return %arg0, %c0_i32, %c0_i32_0 : i32, i32, i32
  }
  func.func @transform_5(%arg0: i32) -> (i32, i32, i32) {
    %c0_i32 = arith.constant 0 : i32
    %c0_i32_0 = arith.constant 0 : i32
    %c0_i32_1 = arith.constant 0 : i32
    return %arg0, %c0_i32, %c0_i32_0 : i32, i32, i32
  }
}

</mosaic_0001>

<bundles_post_ra>
// kernel: tpu_custom_call.1
= control target key start
LH: loop header
LB: loop body
LE: loop exit
PB: predicated region body
PF: predicated region fallthrough
CT: control target
= control target key end

     0   :  { %11 = vsyncpa [#allocation5], 0  ;;  %v24_v0 = vlaneseq  ;;  %v4017_v2 = vmov 0   ;;  %s4018_s20 = smov 95   ;;  %s4019_s21 = smov 2   ;;  %s5873_s0 = inlined_call_operand.vmem [shape: bf16[2,48,384], index: 0, kind: input, shape index: {}]   ;;  %s5874_s1 = inlined_call_operand.vmem [shape: f32[2,32,256], index: 1, kind: input, shape index: {}]   ;;  %s5875_s2 = inlined_call_operand.vmem [shape: bf16[128,432], index: 2, kind: input, shape index: {}]   ;;  %s5876_s3 = inlined_call_operand.vmem [shape: f32[128,1], index: 3, kind: input, shape index: {}]   ;;  %s5877_s4 = inlined_call_operand.hbm [shape: f32[2,32,256], index: 4, kind: output, shape index: {0}]   ;;  %s5878_s5 = inlined_call_operand.hbm [shape: f32[2,32,256], index: 5, kind: output, shape index: {1}]  }
   0x1   :  { %v4067_v1 = vld [vmem:[%s5873_s0 + $0x30] sm:$0xff]  ;;  %3639 = vset.pattern.permute.xlu1 %v4017_v2  ;;  %3640 = vset.pattern.permute.xlu0 %v4017_v2  ;;  %s4020_s22 = smov 18   ;;  %v4080_v10 = vld [vmem:[%s5873_s0 + $0x3c] sm:$0xff]  ;;  %s4021_s25 = smov 32  }
   0x2   :  { %v25_v3 = vand.u32 127, %v24_v0  ;;  %602 = vrot.lane.b32.xlu1 %v4067_v1, %s4018_s20  ;;  %s4022_s26 = smov 34  }
   0x4   :  { %v26_v4 = vadd.s32 128, %v25_v3  ;;  %v31_v5 = vand.u32 15, %v25_v3 }
   0x6   :  { %v38_v6 = vand.u32 15, %v26_v4  ;;  %vm53_vm0 = vcmp.lt.s32.totalorder %v31_v5, 15  ;;  %vm51_vm1 = vcmp.ge.s32.totalorder %v31_v5, 1 }
   0x8   :  { %vm54_vm2 = vcmp.lt.s32.totalorder %v38_v6, 15  ;;  %vm52_vm3 = vcmp.ge.s32.totalorder %v38_v6, 1 }
   0x9   :  { %vm154_vm4 = vmpackc.low %vm54_vm2, %vm53_vm0 }
   0xa   :  { %v155_v7 = vsel %vm154_vm4, 65537, %v4017_v2  ;;  %vm4071_vm5 = vmpackc.low %vm52_vm3, %vm51_vm1 }
   0xb   :  { %156 = vrot.lane.b32.xlu0 %v155_v7, %s4019_s21  ;;  %402 = vrot.lane.b32.xlu1 %v155_v7, %s4020_s22  ;;  %v248_v9 = vsel %vm4071_vm5, 65537, %v4017_v2 }
   0xf   :  { %494 = vrot.lane.b32.xlu0 %v248_v9, %s4021_s25  ;;  %647 = vrot.lane.b32.xlu1 %v155_v7, %s4022_s26 }
  0x10   :  { %12 = vsyncpa [#allocation7], 0  ;;  %s4023_s27 = smov 16   ;;  %v4088_v11 = vld [vmem:[%s5873_s0 + $0x38] sm:$0xf]  ;;  %s4024_s30 = smov 127  }
  0x11   :  { %v4097_v12 = vld [vmem:[%s5873_s0 + $0x44] sm:$0xf]  ;;  %v4106_v13 = vld [vmem:[%s5873_s0 + $0x18] sm:$0xff]  ;;  %v4124_v15 = vld [vmem:[%s5873_s0 + $0x20] sm:$0xf]  ;;  %s4025_s25 = smov 111  }
  0x12   :  { %v4115_v14 = vld [vmem:[%s5873_s0 + $0x24] sm:$0xff]  ;;  %v4133_v16 = vld [vmem:[%s5873_s0 + $0x2c] sm:$0xf]  ;;  %v4169_v20 = vld [vmem:[%s5873_s0 + $0x14] sm:$0xf]  ;;  %vm159_vm6 = vcmask 15360  }
  0x13   :  { %249 = vrot.lane.b32.xlu0 %v248_v9, %s4023_s27  ;;  %606 = vrot.lane.b32.xlu1 %v4080_v10, %s4018_s20  ;;  %v4142_v17 = vld [vmem:[%s5873_s0] sm:$0xff]  ;;  %v4151_v18 = vld [vmem:[%s5873_s0 + $0xc] sm:$0xff]  ;;  %s4026_s26 = smov 126   ;;  %vm497_vm9 = vcmask 261120   ;;  %vm128_vm10 = vcmask 1043456   ;;  %vm5879_vm11 = vcmask 777216  }
  0x14   :  { %v4160_v19 = vld [vmem:[%s5873_s0 + $0x8] sm:$0xf]  ;;  %s4027_s28 = smov 96   ;;  %vm405_vm14 = vcmask 146432   ;;  %s4028_s29 = smov 110   ;;  %vm650_vm1 = vcmask 277504  }
  0x15   :  { %s4029_s6 = smov 94   ;;  %vm252_vm4 = vcmask 130048   ;;  %s4030_s7 = smov 112   ;;  %v5015_v43 = vld [vmem:[%s5875_s2] ss:$16 sps:$4 sm:$0xff]  }
  0x16   :  { %v5051_v26 = vld [vmem:[%s5875_s2 + $0x20] ss:$16 sps:$4 sm:$0xff]   ;;  %s4031_s11 = smov [#allocation6]  }
  0x17   :  { %604 = vrot.lane.b32.xlu0 %v4088_v11, %s4018_s20  ;;  %108 = vrot.lane.b32.xlu1 %v4067_v1, %s4024_s30  ;;  %s3361_s12 = sshll.u32 %s4031_s11, 4  ;;  %s3362_s12 = int_to_ptr.vmem [resolvable:$true] %s3361_s12 }
  0x18   :  { %p3978_p1 = scmp.lt.s32.totalorder %s3362_s12, %s3362_s12 }
  0x1b   :  { %608 = vrot.lane.b32.xlu0 %v4097_v12, %s4018_s20  ;;  %112 = vrot.lane.b32.xlu1 %v4080_v10, %s4024_s30 }
  0x1f   :  { %110 = vrot.lane.b32.xlu0 %v4088_v11, %s4024_s30  ;;  %594 = vrot.lane.b32.xlu1 %v4106_v13, %s4018_s20 }
  0x23   :  { %114 = vrot.lane.b32.xlu0 %v4097_v12, %s4024_s30  ;;  %598 = vrot.lane.b32.xlu1 %v4115_v14, %s4018_s20 }
  0x27   :  { %596 = vrot.lane.b32.xlu0 %v4124_v15, %s4018_s20  ;;  %100 = vrot.lane.b32.xlu1 %v4106_v13, %s4024_s30 }
  0x2b   :  { %600 = vrot.lane.b32.xlu0 %v4133_v16, %s4018_s20  ;;  %104 = vrot.lane.b32.xlu1 %v4115_v14, %s4024_s30 }
  0x2f   :  { %102 = vrot.lane.b32.xlu0 %v4124_v15, %s4024_s30  ;;  %586 = vrot.lane.b32.xlu1 %v4142_v17, %s4018_s20 }
  0x33   :  { %106 = vrot.lane.b32.xlu0 %v4133_v16, %s4024_s30  ;;  %590 = vrot.lane.b32.xlu1 %v4151_v18, %s4018_s20 }
  0x37   :  { %588 = vrot.lane.b32.xlu0 %v4160_v19, %s4018_s20  ;;  %92 = vrot.lane.b32.xlu1 %v4142_v17, %s4024_s30 }
  0x3b   :  { %592 = vrot.lane.b32.xlu0 %v4169_v20, %s4018_s20  ;;  %96 = vrot.lane.b32.xlu1 %v4151_v18, %s4024_s30 }
  0x3f   :  { %94 = vrot.lane.b32.xlu0 %v4160_v19, %s4024_s30  ;;  %357 = vrot.lane.b32.xlu1 %v4067_v1, %s4025_s25 }
  0x43   :  { %98 = vrot.lane.b32.xlu0 %v4169_v20, %s4024_s30  ;;  %361 = vrot.lane.b32.xlu1 %v4080_v10, %s4025_s25 }
  0x47   :  { %359 = vrot.lane.b32.xlu0 %v4088_v11, %s4025_s25 }
  0x4b   :  { %363 = vrot.lane.b32.xlu0 %v4097_v12, %s4025_s25 }
  0x74   :  { %v603_v21 = vpop.permute.xlu1 %602 }
  0x75   :  { %v618_v36 = vrot.slane %v603_v21, 4 }
  0x7d   :  { %v157_v22 = vpop.permute.xlu0 %156  ;;  %v4187_v23 = vpop.permute.xlu1 %402 }
  0x7e   :  { %v158_v24 = vrot.slane %v157_v22, 4 }
  0x80   :  { %v4189_v25 = vsel %vm159_vm6, %v158_v24, %v157_v22  ;;  %vm4191_vm7 = vcmp.ne.s16.totalorder %v158_v24, 0 }
  0x81   :  { %vm161_vm8 = vcmp.ne.s16.totalorder %v4189_v25, 0  ;;  %v168_v27 = vsel %vm4191_vm7, %v4124_v15, 0  ;;  %v495_v28 = vpop.permute.xlu0 %494  ;;  %v4199_v29 = vpop.permute.xlu1 %647  ;;  %v170_v31 = vsel %vm4191_vm7, %v4133_v16, 0  ;;  %v164_v37 = vsel %vm4191_vm7, %v4160_v19, 0 }
  0x82   :  { %197 = vrot.lane.b32.xlu0 %v168_v27, %s4026_s26  ;;  %v167_v30 = vsel %vm161_vm8, %v4106_v13, 0  ;;  %v169_v34 = vsel %vm161_vm8, %v4115_v14, 0  ;;  %v496_v35 = vrot.slane %v495_v28, 4  ;;  %v163_v40 = vsel %vm161_vm8, %v4142_v17, 0 }
  0x83   :  { %195 = vrot.lane.b32.xlu1 %v167_v30, %s4026_s26  ;;  %v166_v46 = vsel %vm4191_vm7, %v4169_v20, 0  ;;  %v165_v49 = vsel %vm161_vm8, %v4151_v18, 0 }
  0x84   :  { %v4226_v42 = vsel %vm497_vm9, %v496_v35, %v495_v28  ;;  %vm4228_vm12 = vcmp.ne.s16.totalorder %v496_v35, 0 }
  0x85   :  { %v4209_v32 = vpop.permute.xlu0 %249  ;;  %v607_v33 = vpop.permute.xlu1 %606  ;;  %vm499_vm13 = vcmp.ne.s16.totalorder %v4226_v42, 0  ;;  %v510_v51 = vsel %vm4228_vm12, %v4088_v11, 0  ;;  %v512_v60 = vsel %vm4228_vm12, %v4097_v12, 0  ;;  %v506_v2 = vsel %vm4228_vm12, %v4124_v15, 0  ;;  %v3688_v42 = vld [vmem:[%s5875_s2 + $0xe8] ss:$16 sps:$4 sm:$0xff]  }
  0x86   :  { %201 = vrot.lane.b32.xlu0 %v170_v31, %s4026_s26  ;;  %v620_v44 = vrot.slane %v607_v33, 4  ;;  %v509_v57 = vsel %vm499_vm13, %v4067_v1, 0  ;;  %v511_v63 = vsel %vm499_vm13, %v4080_v10, 0  ;;  %v505_v5 = vsel %vm499_vm13, %v4106_v13, 0 }
  0x87   :  { %199 = vrot.lane.b32.xlu1 %v169_v34, %s4026_s26  ;;  %v507_v27 = vsel %vm499_vm13, %v4115_v14, 0  ;;  %v404_v31 = vrot.slane %v4187_v23, 4  ;;  %v502_v34 = vsel %vm4228_vm12, %v4160_v19, 0 }
  0x89   :  { %v605_v38 = vpop.permute.xlu0 %604  ;;  %v4219_v39 = vpop.permute.xlu1 %108  ;;  %vm4305_vm15 = vcmp.ne.s16.totalorder %v404_v31, 0 }
  0x8a   :  { %189 = vrot.lane.b32.xlu0 %v164_v37, %s4026_s26  ;;  %v619_v41 = vrot.slane %v605_v38, 4  ;;  %v501_v37 = vsel %vm499_vm13, %v4142_v17, 0 }
  0x8b   :  { %187 = vrot.lane.b32.xlu1 %v163_v40, %s4026_s26 }
  0x8c   :  { %v631_v45 = vsel %vm128_vm10, %v618_v36, %v619_v41 }
  0x8d   :  { %v609_v47 = vpop.permute.xlu0 %608  ;;  %v4236_v48 = vpop.permute.xlu1 %112  ;;  %v632_v52 = vsel %vm5879_vm11, %v603_v21, %v631_v45  ;;  %v508_v21 = vsel %vm4228_vm12, %v4133_v16, 0 }
  0x8e   :  { %193 = vrot.lane.b32.xlu0 %v166_v46, %s4026_s26  ;;  %v621_v50 = vrot.slane %v609_v47, 4  ;;  %v504_v46 = vsel %vm4228_vm12, %v4169_v20, 0 }
  0x8f   :  { %191 = vrot.lane.b32.xlu1 %v165_v49, %s4026_s26  ;;  %v503_v49 = vsel %vm499_vm13, %v4151_v18, 0 }
  0x90   :  { %v633_v53 = vsel %vm128_vm10, %v620_v44, %v621_v50  ;;  %v4303_v44 = vsel %vm405_vm14, %v404_v31, %v4187_v23  ;;  %v418_v23 = vsel %vm4305_vm15, %v4088_v11, 0  ;;  %vm2304_vm14 = vcmask 392192  }
  0x91   :  { %v634_v54 = vsel %vm5879_vm11, %v607_v33, %v633_v53  ;;  %v4250_v55 = vpop.permute.xlu0 %110  ;;  %v595_v56 = vpop.permute.xlu1 %594  ;;  %vm407_vm0 = vcmp.ne.s16.totalorder %v4303_v44, 0  ;;  %v3952_v44 = vld [vmem:[%s5873_s0 + $0x80] sm:$0xf] }
  0x92   :  { %543 = vrot.lane.b32.xlu0 %v510_v51, %s4027_s28  ;;  %v3513_v58 = vcombine.high %v632_v52, %v634_v54  ;;  %v3512_v59 = vcombine.low %v632_v52, %v634_v54  ;;  %v614_v0 = vrot.slane %v595_v56, 4  ;;  %v417_v53 = vsel %vm407_vm0, %v4067_v1, 0 }
  0x93   :  { %541 = vrot.lane.b32.xlu1 %v509_v57, %s4027_s28 }
  0x94   :  { %2442 = vmatprep.subr.bf16.mxu1 %v3513_v58  ;;  %v420_v58 = vsel %vm4305_vm15, %v4097_v12, 0 }
  0x95   :  { %2443 = vmatpush1.bf16.msra.mxu1 %v3512_v59  ;;  %v4260_v61 = vpop.permute.xlu0 %114  ;;  %v599_v62 = vpop.permute.xlu1 %598 }
  0x96   :  { %547 = vrot.lane.b32.xlu0 %v512_v60, %s4027_s28  ;;  %v616_v9 = vrot.slane %v599_v62, 4  ;;  %v419_v60 = vsel %vm407_vm0, %v4080_v10, 0 }
  0x97   :  { %545 = vrot.lane.b32.xlu1 %v511_v63, %s4027_s28 }
  0x99   :  { %v597_v3 = vpop.permute.xlu0 %596  ;;  %v4270_v4 = vpop.permute.xlu1 %100 }
  0x9a   :  { %535 = vrot.lane.b32.xlu0 %v506_v2, %s4027_s28  ;;  %v615_v6 = vrot.slane %v597_v3, 4  ;;  %v410_v2 = vsel %vm4305_vm15, %v4160_v19, 0 }
  0x9b   :  { %533 = vrot.lane.b32.xlu1 %v505_v5, %s4027_s28  ;;  %v409_v5 = vsel %vm407_vm0, %v4142_v17, 0 }
  0x9c   :  { %v627_v7 = vsel %vm128_vm10, %v614_v0, %v615_v6 }
  0x9d   :  { %v601_v22 = vpop.permute.xlu0 %600  ;;  %v4281_v24 = vpop.permute.xlu1 %104  ;;  %v628_v30 = vsel %vm5879_vm11, %v595_v56, %v627_v7 }
  0x9e   :  { %539 = vrot.lane.b32.xlu0 %v508_v21, %s4027_s28  ;;  %v617_v28 = vrot.slane %v601_v22, 4  ;;  %v411_v21 = vsel %vm407_vm0, %v4151_v18, 0  ;;  %v649_v22 = vrot.slane %v4199_v29, 4 }
  0x9f   :  { %537 = vrot.lane.b32.xlu1 %v507_v27, %s4027_s28  ;;  %v414_v27 = vsel %vm4305_vm15, %v4124_v15, 0 }
  0xa0   :  { %v629_v33 = vsel %vm128_vm10, %v616_v9, %v617_v28  ;;  %v412_v9 = vsel %vm4305_vm15, %v4169_v20, 0  ;;  %v413_v28 = vsel %vm407_vm0, %v4106_v13, 0  ;;  %vm4368_vm2 = vcmp.ne.s16.totalorder %v649_v22, 0 }
  0xa1   :  { %v4294_v35 = vpop.permute.xlu0 %102  ;;  %v630_v36 = vsel %vm5879_vm11, %v599_v62, %v629_v33  ;;  %v587_v41 = vpop.permute.xlu1 %586  ;;  %v416_v33 = vsel %vm4305_vm15, %v4133_v16, 0 }
  0xa2   :  { %527 = vrot.lane.b32.xlu0 %v502_v34, %s4027_s28  ;;  %v3509_v38 = vcombine.high %v628_v30, %v630_v36  ;;  %v3508_v40 = vcombine.low %v628_v30, %v630_v36  ;;  %v610_v50 = vrot.slane %v587_v41, 4  ;;  %v4366_v30 = vsel %vm650_vm1, %v649_v22, %v4199_v29  ;;  %v3643_v22 = vld [vmem:[%s5875_s2 + $0xc] ss:$16 sps:$4 sm:$0xff]  }
  0xa3   :  { %525 = vrot.lane.b32.xlu1 %v501_v37, %s4027_s28  ;;  %v415_v34 = vsel %vm407_vm0, %v4115_v14, 0  ;;  %vm5881_vm3 = vcmp.ne.s16.totalorder %v4366_v30, 0  ;;  %v663_v29 = vsel %vm4368_vm2, %v4088_v11, 0  ;;  %v665_v37 = vsel %vm4368_vm2, %v4097_v12, 0  ;;  %3528 = vmatprep.mubr.msk.bf16.mxu1 %vm2304_vm14, %v3643_v22 }
  0xa4   :  { %2444 = vmatprep.subr.bf16.mxu1 %v3509_v38  ;;  %v662_v36 = vsel %vm5881_vm3, %v4067_v1, 0  ;;  %v664_v38 = vsel %vm5881_vm3, %v4080_v10, 0  ;;  %vm224_vm1 = vcmask 1031168  }
  0xa5   :  { %2445 = vmatpush1.bf16.msra.mxu1 %v3508_v40  ;;  %v4312_v47 = vpop.permute.xlu0 %106  ;;  %v591_v52 = vpop.permute.xlu1 %590  ;;  %v659_v40 = vsel %vm4368_vm2, %v4124_v15, 0 }
  0xa6   :  { %531 = vrot.lane.b32.xlu0 %v504_v46, %s4027_s28  ;;  %v612_v57 = vrot.slane %v591_v52, 4  ;;  %v661_v46 = vsel %vm4368_vm2, %v4133_v16, 0 }
  0xa7   :  { %529 = vrot.lane.b32.xlu1 %v503_v49, %s4027_s28  ;;  %v660_v49 = vsel %vm5881_vm3, %v4115_v14, 0 }
  0xa9   :  { %v589_v51 = vpop.permute.xlu0 %588 }
  0xaa   :  { %451 = vrot.lane.b32.xlu0 %v418_v23, %s4028_s29  ;;  %v611_v54 = vrot.slane %v589_v51, 4  ;;  %v251_v51 = vrot.slane %v4209_v32, 4 }
  0xab   :  { %449 = vrot.lane.b32.xlu1 %v417_v53, %s4028_s29  ;;  %v654_v53 = vsel %vm5881_vm3, %v4142_v17, 0 }
  0xac   :  { %v622_v56 = vsel %vm128_vm10, %v610_v50, %v611_v54  ;;  %v4429_v50 = vpop.permute.xlu1 %92  ;;  %v4443_v54 = vsel %vm252_vm4, %v251_v51, %v4209_v32  ;;  %vm4452_vm6 = vcmp.ne.s16.totalorder %v251_v51, 0  ;;  %vm130_vm4 = vcmask 1039360  }
  0xad   :  { %v593_v59 = vpop.permute.xlu0 %592  ;;  %v624_v63 = vsel %vm5879_vm11, %v587_v41, %v622_v56  ;;  %v658_v41 = vsel %vm5881_vm3, %v4106_v13, 0  ;;  %vm254_vm9 = vcmp.ne.s16.totalorder %v4443_v54, 0  ;;  %v265_v32 = vsel %vm4452_vm6, %v4088_v11, 0 }
  0xae   :  { %455 = vrot.lane.b32.xlu0 %v420_v58, %s4028_s29  ;;  %v613_v62 = vrot.slane %v593_v59, 4  ;;  %v657_v58 = vsel %vm4368_vm2, %v4169_v20, 0  ;;  %v261_v51 = vsel %vm4452_vm6, %v4124_v15, 0  ;;  %v263_v22 = vsel %vm4452_vm6, %v4133_v16, 0  ;;  %v3682_v59 = vld [vmem:[%s5875_s2 + $0xc8] ss:$16 sps:$4 sm:$0xff]  }
  0xaf   :  { %453 = vrot.lane.b32.xlu1 %v419_v60, %s4028_s29  ;;  %v656_v60 = vsel %vm5881_vm3, %v4151_v18, 0  ;;  %vm378_vm3 = vcmask 908288  }
  0xb0   :  { %v625_v0 = vsel %vm128_vm10, %v612_v57, %v613_v62  ;;  %v4447_v57 = vpop.permute.xlu1 %96 }
  0xb1   :  { %v626_v3 = vsel %vm5879_vm11, %v591_v52, %v625_v0  ;;  %v4427_v23 = vpop.permute.xlu0 %94  ;;  %v655_v52 = vsel %vm4368_vm2, %v4160_v19, 0  ;;  %vm5880_vm11 = vcmask 785408  }
  0xb2   :  { %435 = vrot.lane.b32.xlu0 %v410_v2, %s4028_s29  ;;  %v3505_v6 = vcombine.high %v624_v63, %v626_v3  ;;  %v3504_v7 = vcombine.low %v624_v63, %v626_v3  ;;  %v264_v63 = vsel %vm254_vm9, %v4067_v1, 0  ;;  %v267_v2 = vsel %vm4452_vm6, %v4097_v12, 0 }
  0xb3   :  { %433 = vrot.lane.b32.xlu1 %v409_v5, %s4028_s29  ;;  %v266_v3 = vsel %vm254_vm9, %v4080_v10, 0  ;;  %v4484_v5 = vld [vmem:[%s5873_s0 + $0x68] sm:$0xf] }
  0xb4   :  { %2446 = vmatprep.subr.bf16.mxu1 %v3505_v6  ;;  %v4471_v0 = vpop.permute.xlu1 %357  ;;  %v4490_v6 = vld [vmem:[%s5873_s0 + $0x60] sm:$0xff] }
  0xb5   :  { %2447 = vmatpush1.bf16.msra.mxu1 %v3504_v7  ;;  %v4445_v56 = vpop.permute.xlu0 %98 }
  0xb6   :  { %439 = vrot.lane.b32.xlu0 %v412_v9, %s4028_s29 }
  0xb7   :  { %437 = vrot.lane.b32.xlu1 %v411_v21, %s4028_s29  ;;  %v841_v21 = vsel %vm4191_vm7, %v4484_v5, 0 }
  0xb8   :  { %v4494_v9 = vpop.permute.xlu1 %361 }
  0xb9   :  { %v4465_v62 = vpop.permute.xlu0 %359 }
  0xba   :  { %443 = vrot.lane.b32.xlu0 %v414_v27, %s4028_s29  ;;  %v840_v27 = vsel %vm161_vm8, %v4490_v6, 0 }
  0xbb   :  { %441 = vrot.lane.b32.xlu1 %v413_v28, %s4028_s29  ;;  %v4509_v28 = vld [vmem:[%s5873_s0 + $0x74] sm:$0xf] }
  0xbd   :  { %v4492_v7 = vpop.permute.xlu0 %363 }
  0xbe   :  { %447 = vrot.lane.b32.xlu0 %v416_v33, %s4028_s29  ;;  %v4515_v33 = vld [vmem:[%s5873_s0 + $0x6c] sm:$0xff] }
  0xbf   :  { %445 = vrot.lane.b32.xlu1 %v415_v34, %s4028_s29 }
  0xc2   :  { %696 = vrot.lane.b32.xlu0 %v663_v29, %s4029_s6 }
  0xc3   :  { %694 = vrot.lane.b32.xlu1 %v662_v36, %s4029_s6  ;;  %v843_v36 = vsel %vm4191_vm7, %v4509_v28, 0 }
  0xc6   :  { %700 = vrot.lane.b32.xlu0 %v665_v37, %s4029_s6 }
  0xc7   :  { %698 = vrot.lane.b32.xlu1 %v664_v38, %s4029_s6 }
  0xca   :  { %351 = vrot.lane.b32.xlu0 %v4124_v15, %s4025_s25  ;;  %v127_v15 = vrot.slane %v4260_v61, 4 }
  0xcb   :  { %349 = vrot.lane.b32.xlu1 %v4106_v13, %s4025_s25 }
  0xce   :  { %355 = vrot.lane.b32.xlu0 %v4133_v16, %s4025_s25  ;;  %v120_v16 = vrot.slane %v4270_v4, 4 }
  0xcf   :  { %353 = vrot.lane.b32.xlu1 %v4115_v14, %s4025_s25 }
  0xd2   :  { %688 = vrot.lane.b32.xlu0 %v659_v40, %s4029_s6  ;;  %v842_v40 = vsel %vm161_vm8, %v4515_v33, 0 }
  0xd3   :  { %686 = vrot.lane.b32.xlu1 %v658_v41, %s4029_s6 }
  0xd6   :  { %692 = vrot.lane.b32.xlu0 %v661_v46, %s4029_s6 }
  0xd7   :  { %690 = vrot.lane.b32.xlu1 %v660_v49, %s4029_s6 }
  0xda   :  { %343 = vrot.lane.b32.xlu0 %v4160_v19, %s4025_s25 }
  0xdb   :  { %341 = vrot.lane.b32.xlu1 %v4142_v17, %s4025_s25 }
  0xde   :  { %347 = vrot.lane.b32.xlu0 %v4169_v20, %s4025_s25 }
  0xdf   :  { %345 = vrot.lane.b32.xlu1 %v4151_v18, %s4025_s25 }
  0xe2   :  { %680 = vrot.lane.b32.xlu0 %v655_v52, %s4029_s6 }
  0xe3   :  { %678 = vrot.lane.b32.xlu1 %v654_v53, %s4029_s6  ;;  %v260_v53 = vsel %vm254_vm9, %v4106_v13, 0 }
  0xe6   :  { %684 = vrot.lane.b32.xlu0 %v657_v58, %s4029_s6 }
  0xe7   :  { %682 = vrot.lane.b32.xlu1 %v656_v60, %s4029_s6  ;;  %v124_v60 = vrot.slane %v4219_v39, 4 }
  0xea   :  { %298 = vrot.lane.b32.xlu0 %v265_v32, %s4030_s7  ;;  %v125_v32 = vrot.slane %v4250_v55, 4 }
  0xeb   :  { %296 = vrot.lane.b32.xlu1 %v264_v63, %s4030_s7  ;;  %v126_v63 = vrot.slane %v4236_v48, 4 }
  0xee   :  { %302 = vrot.lane.b32.xlu0 %v267_v2, %s4030_s7 }
  0xef   :  { %300 = vrot.lane.b32.xlu1 %v266_v3, %s4030_s7 }
  0xf2   :  { %870 = vrot.lane.b32.xlu0 %v841_v21, %s4026_s26 }
  0xf3   :  { %868 = vrot.lane.b32.xlu1 %v840_v27, %s4026_s26  ;;  %v262_v27 = vsel %vm254_vm9, %v4115_v14, 0 }
  0xf4   :  { %v198_v34 = vpop.permute.xlu0 %197 }
  0xf5   :  { %v196_v29 = vpop.permute.xlu1 %195  ;;  %v216_v37 = vrot.slane %v198_v34, 4 }
  0xf6   :  { %v215_v38 = vrot.slane %v196_v29, 4  ;;  %874 = vrot.lane.b32.xlu0 %v843_v36, %s4026_s26 }
  0xf7   :  { %872 = vrot.lane.b32.xlu1 %v842_v40, %s4026_s26  ;;  %v4552_v40 = vld [vmem:[%s5873_s0 + $0x50] sm:$0xf] }
  0xf8   :  { %v202_v41 = vpop.permute.xlu0 %201  ;;  %v228_v58 = vsel %vm128_vm10, %v215_v38, %v216_v37  ;;  %v1149_v54 = vsel %vm4228_vm12, %v4552_v40, 0 }
  0xf9   :  { %v218_v46 = vrot.slane %v202_v41, 4  ;;  %v200_v49 = vpop.permute.xlu1 %199  ;;  %v229_v34 = vsel %vm224_vm1, %v196_v29, %v228_v58  ;;  %v121_v41 = vrot.slane %v4294_v35, 4  ;;  %v4560_v29 = vld [vmem:[%s5873_s0 + $0x48] sm:$0xff]  ;;  %v123_v35 = vrot.slane %v4312_v47, 4  ;;  %v4574_v58 = vld [vmem:[%s5873_s0 + $0x54] sm:$0xff] }
  0xfa   :  { %v217_v52 = vrot.slane %v200_v49, 4  ;;  %290 = vrot.lane.b32.xlu0 %v261_v51, %s4030_s7  ;;  %v140_v51 = vsel %vm128_vm10, %v126_v63, %v127_v15  ;;  %v836_v47 = vsel %vm161_vm8, %v4560_v29, 0 }
  0xfb   :  { %288 = vrot.lane.b32.xlu1 %v260_v53, %s4030_s7 }
  0xfc   :  { %v190_v2 = vpop.permute.xlu0 %189  ;;  %v230_v3 = vsel %vm128_vm10, %v217_v52, %v218_v46  ;;  %v4565_v46 = vld [vmem:[%s5873_s0 + $0x5c] sm:$0xf]  ;;  %v122_v52 = vrot.slane %v4281_v24, 4 }
  0xfd   :  { %v188_v21 = vpop.permute.xlu1 %187  ;;  %v231_v55 = vsel %vm224_vm1, %v200_v49, %v230_v3  ;;  %v212_v36 = vrot.slane %v190_v2, 4  ;;  %v138_v49 = vsel %vm128_vm10, %v124_v60, %v125_v32  ;;  %v837_v60 = vsel %vm4191_vm7, %v4552_v40, 0 }
  0xfe   :  { %v211_v37 = vrot.slane %v188_v21, 4  ;;  %294 = vrot.lane.b32.xlu0 %v263_v22, %s4030_s7  ;;  %v3449_v61 = vcombine.high %v229_v34, %v231_v55  ;;  %v3448_v38 = vcombine.low %v229_v34, %v231_v55  ;;  %v839_v15 = vsel %vm4191_vm7, %v4565_v46, 0 }
  0xff   :  { %292 = vrot.lane.b32.xlu1 %v262_v27, %s4030_s7  ;;  %v134_v22 = vsel %vm128_vm10, %v120_v16, %v121_v41  ;;  %v838_v27 = vsel %vm161_vm8, %v4574_v58, 0  ;;  %v139_v34 = vsel %vm130_vm4, %v4219_v39, %v138_v49  ;;  %v141_v55 = vsel %vm130_vm4, %v4236_v48, %v140_v51 }
 0x100   :  { %2329 = vmatprep.subr.bf16.mxu0 %v3449_v61  ;;  %v194_v53 = vpop.permute.xlu0 %193  ;;  %v223_v32 = vsel %vm128_vm10, %v211_v37, %v212_v36  ;;  %v136_v36 = vsel %vm128_vm10, %v122_v52, %v123_v35  ;;  %v116_v37 = vrot.slane %v4429_v50, 4  ;;  %v118_v61 = vrot.slane %v4447_v57, 4 }
 0x101   :  { %v214_v2 = vrot.slane %v194_v53, 4  ;;  %v192_v3 = vpop.permute.xlu1 %191  ;;  %2330 = vmatpush1.bf16.msra.mxu0 %v3448_v38  ;;  %v117_v41 = vrot.slane %v4427_v23, 4  ;;  %v119_v53 = vrot.slane %v4445_v56, 4  ;;  %v257_v23 = vsel %vm4452_vm6, %v4160_v19, 0 }
 0x102   :  { %v213_v63 = vrot.slane %v192_v3, 4  ;;  %862 = vrot.lane.b32.xlu0 %v837_v60, %s4026_s26  ;;  %v225_v60 = vsel %vm224_vm1, %v188_v21, %v223_v32  ;;  %v3441_v56 = vcombine.high %v139_v34, %v141_v55  ;;  %v135_v32 = vsel %vm130_vm4, %v4270_v4, %v134_v22 }
 0x103   :  { %860 = vrot.lane.b32.xlu1 %v836_v47, %s4026_s26  ;;  %v259_v4 = vsel %vm4452_vm6, %v4169_v20, 0 }
 0x104   :  { %v226_v38 = vsel %vm128_vm10, %v213_v63, %v214_v2  ;;  %v544_v16 = vpop.permute.xlu0 %543  ;;  %v137_v63 = vsel %vm130_vm4, %v4281_v24, %v136_v36  ;;  %v258_v24 = vsel %vm254_vm9, %v4151_v18, 0 }
 0x105   :  { %v227_v39 = vsel %vm224_vm1, %v192_v3, %v226_v38  ;;  %v542_v49 = vpop.permute.xlu1 %541  ;;  %v558_v47 = vrot.slane %v544_v16, 4  ;;  %v256_v3 = vsel %vm254_vm9, %v4142_v17, 0  ;;  %v3440_v16 = vcombine.low %v139_v34, %v141_v55 }
 0x106   :  { %v557_v48 = vrot.slane %v542_v49, 4  ;;  %866 = vrot.lane.b32.xlu0 %v839_v15, %s4026_s26  ;;  %v3445_v51 = vcombine.high %v225_v60, %v227_v39  ;;  %v3444_v52 = vcombine.low %v225_v60, %v227_v39  ;;  %v129_v15 = vsel %vm128_vm10, %v116_v37, %v117_v41 }
 0x107   :  { %864 = vrot.lane.b32.xlu1 %v838_v27, %s4026_s26  ;;  %v132_v27 = vsel %vm128_vm10, %v118_v61, %v119_v53  ;;  %v3437_v37 = vcombine.high %v135_v32, %v137_v63  ;;  %v72_v61 = vsel %vm4071_vm5, %v4067_v1, 0  ;;  %v73_v34 = vsel %vm4071_vm5, %v4080_v10, 0 }
 0x108   :  { %2331 = vmatprep.subr.bf16.mxu0 %v3445_v51  ;;  %v548_v35 = vpop.permute.xlu0 %547  ;;  %v570_v19 = vsel %vm128_vm10, %v557_v48, %v558_v47  ;;  %v131_v53 = vsel %vm130_vm4, %v4429_v50, %v129_v15  ;;  %v133_v60 = vsel %vm130_vm4, %v4447_v57, %v132_v27  ;;  %v4645_v50 = vld [vmem:[%s5873_s0 + $0x80] sm:$0xf]  ;;  %v3429_v57 = vcombine.high %v72_v61, %v73_v34 }
 0x109   :  { %v560_v21 = vrot.slane %v548_v35, 4  ;;  %v546_v2 = vpop.permute.xlu1 %545  ;;  %2332 = vmatpush1.bf16.msra.mxu0 %v3444_v52  ;;  %v571_v55 = vsel %vm5880_vm11, %v542_v49, %v570_v19  ;;  %v3436_v49 = vcombine.low %v135_v32, %v137_v63  ;;  %v3433_v35 = vcombine.high %v131_v53, %v133_v60 }
 0x10a   :  { %v559_v38 = vrot.slane %v546_v2, 4  ;;  %282 = vrot.lane.b32.xlu0 %v257_v23, %s4030_s7  ;;  %2333 = vmatprep.subr.bf16.mxu0 %v3441_v56  ;;  %v70_v32 = vsel %vm4071_vm5, %v4106_v13, 0  ;;  %v71_v63 = vsel %vm4071_vm5, %v4115_v14, 0  ;;  %v3432_v15 = vcombine.low %v131_v53, %v133_v60  ;;  %v4669_v13 = vld [vmem:[%s5873_s0 + $0x8c] sm:$0xf] }
 0x10b   :  { %280 = vrot.lane.b32.xlu1 %v256_v3, %s4030_s7  ;;  %v4653_v3 = vld [vmem:[%s5873_s0 + $0x78] sm:$0xff]  ;;  %v3425_v14 = vcombine.high %v70_v32, %v71_v63 }
 0x10c   :  { %v572_v22 = vsel %vm128_vm10, %v559_v38, %v560_v21  ;;  %v536_v36 = vpop.permute.xlu0 %535 }
 0x10d   :  { %v573_v20 = vsel %vm5880_vm11, %v546_v2, %v572_v22  ;;  %v534_v41 = vpop.permute.xlu1 %533  ;;  %2334 = vmatpush1.bf16.msra.mxu0 %v3440_v16  ;;  %v554_v39 = vrot.slane %v536_v36, 4 }
 0x10e   :  { %v553_v47 = vrot.slane %v534_v41, 4  ;;  %286 = vrot.lane.b32.xlu0 %v259_v4, %s4030_s7  ;;  %2335 = vmatprep.subr.bf16.mxu0 %v3437_v37  ;;  %v3501_v48 = vcombine.high %v571_v55, %v573_v20  ;;  %v3500_v51 = vcombine.low %v571_v55, %v573_v20  ;;  %v4676_v37 = vld [vmem:[%s5873_s0 + $0x84] sm:$0xff] }
 0x10f   :  { %284 = vrot.lane.b32.xlu1 %v258_v24, %s4030_s7  ;;  %v3428_v24 = vcombine.low %v72_v61, %v73_v34  ;;  %v68_v61 = vsel %vm4071_vm5, %v4142_v17, 0  ;;  %v69_v34 = vsel %vm4071_vm5, %v4151_v18, 0  ;;  %v171_v17 = vsel %vm161_vm8, %v4067_v1, 0 }
 0x110   :  { %2448 = vmatprep.subr.bf16.mxu1 %v3501_v48  ;;  %v540_v52 = vpop.permute.xlu0 %539  ;;  %v566_v21 = vsel %vm128_vm10, %v553_v47, %v554_v39  ;;  %v172_v39 = vsel %vm4191_vm7, %v4088_v11, 0  ;;  %v3424_v47 = vcombine.low %v70_v32, %v71_v63  ;;  %v3421_v18 = vcombine.high %v68_v61, %v69_v34 }
 0x111   :  { %v556_v23 = vrot.slane %v540_v52, 4  ;;  %v538_v56 = vpop.permute.xlu1 %537  ;;  %2336 = vmatpush1.bf16.msra.mxu0 %v3436_v49  ;;  %2449 = vmatpush1.bf16.msra.mxu1 %v3500_v51  ;;  %v567_v38 = vsel %vm5880_vm11, %v534_v41, %v566_v21  ;;  %v174_v11 = vsel %vm4191_vm7, %v4097_v12, 0  ;;  %v173_v1 = vsel %vm161_vm8, %v4080_v10, 0 }
 0x112   :  { %v555_v2 = vrot.slane %v538_v56, 4  ;;  %794 = vrot.lane.b32.xlu0 %v4645_v50, %s4024_s30  ;;  %2337 = vmatprep.subr.bf16.mxu0 %v3433_v35 }
 0x113   :  { %792 = vrot.lane.b32.xlu1 %v4653_v3, %s4024_s30 }
 0x114   :  { %v568_v27 = vsel %vm128_vm10, %v555_v2, %v556_v23  ;;  %v528_v19 = vpop.permute.xlu0 %527 }
 0x115   :  { %v569_v16 = vsel %vm5880_vm11, %v538_v56, %v568_v27  ;;  %v526_v4 = vpop.permute.xlu1 %525  ;;  %2338 = vmatpush1.bf16.msra.mxu0 %v3432_v15  ;;  %v550_v22 = vrot.slane %v528_v19, 4 }
 0x116   :  { %v549_v36 = vrot.slane %v526_v4, 4  ;;  %798 = vrot.lane.b32.xlu0 %v4669_v13, %s4024_s30  ;;  %v3497_v55 = vcombine.high %v567_v38, %v569_v16  ;;  %v3496_v20 = vcombine.low %v567_v38, %v569_v16  ;;  %2339 = vmatprep.subr.bf16.mxu0 %v3429_v57  ;;  %v3420_v57 = vcombine.low %v68_v61, %v69_v34 }
 0x117   :  { %796 = vrot.lane.b32.xlu1 %v4676_v37, %s4024_s30  ;;  %v373_v38 = vrot.slane %v4471_v0, 4  ;;  %v375_v16 = vrot.slane %v4494_v9, 4 }
 0x118   :  { %2450 = vmatprep.subr.bf16.mxu1 %v3497_v55  ;;  %v532_v41 = vpop.permute.xlu0 %531  ;;  %v561_v48 = vsel %vm128_vm10, %v549_v36, %v550_v22  ;;  %v376_v22 = vrot.slane %v4492_v7, 4 }
 0x119   :  { %v552_v53 = vrot.slane %v532_v41, 4  ;;  %v530_v60 = vpop.permute.xlu1 %529  ;;  %2451 = vmatpush1.bf16.msra.mxu1 %v3496_v20  ;;  %2340 = vmatpush1.bf16.msra.mxu0 %v3428_v24  ;;  %v563_v35 = vsel %vm5880_vm11, %v526_v4, %v561_v48 }
 0x11a   :  { %v551_v51 = vrot.slane %v530_v60, 4  ;;  %205 = vrot.lane.b32.xlu0 %v172_v39, %s4026_s26  ;;  %2341 = vmatprep.subr.bf16.mxu0 %v3425_v14  ;;  %v374_v14 = vrot.slane %v4465_v62, 4 }
 0x11b   :  { %203 = vrot.lane.b32.xlu1 %v171_v17, %s4026_s26 }
 0x11c   :  { %v564_v49 = vsel %vm128_vm10, %v551_v51, %v552_v53  ;;  %v452_v52 = vpop.permute.xlu0 %451  ;;  %v386_v7 = vsel %vm128_vm10, %v373_v38, %v374_v14  ;;  %v1067_v14 = vsel %vm4305_vm15, %v4565_v46, 0 }
 0x11d   :  { %v565_v23 = vsel %vm5880_vm11, %v530_v60, %v564_v49  ;;  %v450_v56 = vpop.permute.xlu1 %449  ;;  %2342 = vmatpush1.bf16.msra.mxu0 %v3424_v47  ;;  %v466_v21 = vrot.slane %v452_v52, 4  ;;  %vm5882_vm11 = vcmask 900096   ;;  %v388_v47 = vsel %vm128_vm10, %v375_v16, %v376_v22 }
 0x11e   :  { %v465_v2 = vrot.slane %v450_v56, 4  ;;  %209 = vrot.lane.b32.xlu0 %v174_v11, %s4026_s26  ;;  %v3493_v32 = vcombine.high %v563_v35, %v565_v23  ;;  %v3492_v63 = vcombine.low %v563_v35, %v565_v23  ;;  %2343 = vmatprep.subr.bf16.mxu0 %v3421_v18  ;;  %v387_v35 = vsel %vm378_vm3, %v4471_v0, %v386_v7 }
 0x11f   :  { %207 = vrot.lane.b32.xlu1 %v173_v1, %s4026_s26  ;;  %v389_v23 = vsel %vm378_vm3, %v4494_v9, %v388_v47  ;;  %v1065_v0 = vsel %vm4305_vm15, %v4552_v40, 0  ;;  %v1066_v22 = vsel %vm407_vm0, %v4574_v58, 0 }
 0x120   :  { %2452 = vmatprep.subr.bf16.mxu1 %v3493_v32  ;;  %v456_v12 = vpop.permute.xlu0 %455  ;;  %v478_v10 = vsel %vm128_vm10, %v465_v2, %v466_v21  ;;  %v3477_v32 = vcombine.high %v387_v35, %v389_v23 }
 0x121   :  { %v468_v15 = vrot.slane %v456_v12, 4  ;;  %v454_v27 = vpop.permute.xlu1 %453  ;;  %2453 = vmatpush1.bf16.msra.mxu1 %v3492_v63  ;;  %2344 = vmatpush1.bf16.msra.mxu0 %v3420_v57  ;;  %v479_v36 = vsel %vm5882_vm11, %v450_v56, %v478_v10  ;;  %v3476_v10 = vcombine.low %v387_v35, %v389_v23 }
 0x122   :  { %v467_v19 = vrot.slane %v454_v27, 4  ;;  %786 = vrot.lane.b32.xlu0 %v4484_v5, %s4024_s30 }
 0x123   :  { %784 = vrot.lane.b32.xlu1 %v4490_v6, %s4024_s30 }
 0x124   :  { %v480_v4 = vsel %vm128_vm10, %v467_v19, %v468_v15  ;;  %v436_v24 = vpop.permute.xlu0 %435 }
 0x125   :  { %v481_v55 = vsel %vm5882_vm11, %v454_v27, %v480_v4  ;;  %v434_v20 = vpop.permute.xlu1 %433  ;;  %v458_v61 = vrot.slane %v436_v24, 4  ;;  %v1064_v27 = vsel %vm407_vm0, %v4560_v29, 0 }
 0x126   :  { %v457_v34 = vrot.slane %v434_v20, 4  ;;  %790 = vrot.lane.b32.xlu0 %v4509_v28, %s4024_s30  ;;  %v3489_v41 = vcombine.high %v479_v36, %v481_v55  ;;  %v3488_v53 = vcombine.low %v479_v36, %v481_v55 }
 0x127   :  { %788 = vrot.lane.b32.xlu1 %v4515_v33, %s4024_s30 }
 0x128   :  { %2454 = vmatprep.subr.bf16.mxu1 %v3489_v41  ;;  %v440_v60 = vpop.permute.xlu0 %439  ;;  %v469_v48 = vsel %vm128_vm10, %v457_v34, %v458_v61 }
 0x129   :  { %v460_v62 = vrot.slane %v440_v60, 4  ;;  %v438_v39 = vpop.permute.xlu1 %437  ;;  %2455 = vmatpush1.bf16.msra.mxu1 %v3488_v53  ;;  %v471_v49 = vsel %vm5882_vm11, %v434_v20, %v469_v48 }
 0x12a   :  { %v459_v51 = vrot.slane %v438_v39, 4  ;;  %778 = vrot.lane.b32.xlu0 %v4552_v40, %s4024_s30 }
 0x12b   :  { %776 = vrot.lane.b32.xlu1 %v4560_v29, %s4024_s30 }
 0x12c   :  { %v472_v17 = vsel %vm128_vm10, %v459_v51, %v460_v62  ;;  %v444_v18 = vpop.permute.xlu0 %443 }
 0x12d   :  { %v473_v52 = vsel %vm5882_vm11, %v438_v39, %v472_v17  ;;  %v442_v11 = vpop.permute.xlu1 %441  ;;  %v462_v56 = vrot.slane %v444_v18, 4 }
 0x12e   :  { %v461_v1 = vrot.slane %v442_v11, 4  ;;  %782 = vrot.lane.b32.xlu0 %v4565_v46, %s4024_s30  ;;  %v3481_v57 = vcombine.high %v471_v49, %v473_v52  ;;  %v3480_v21 = vcombine.low %v471_v49, %v473_v52 }
 0x12f   :  { %780 = vrot.lane.b32.xlu1 %v4574_v58, %s4024_s30 }
 0x130   :  { %v448_v2 = vpop.permute.xlu0 %447  ;;  %2345 = vmatprep.subr.bf16.mxu0 %v3481_v57  ;;  %v474_v9 = vsel %vm128_vm10, %v461_v1, %v462_v56  ;;  %v4775_v56 = vld [vmem:[%s5875_s2 + $0x4] ss:$16 sps:$4 sm:$0xff]  }
 0x131   :  { %v464_v63 = vrot.slane %v448_v2, 4  ;;  %v446_v12 = vpop.permute.xlu1 %445  ;;  %2346 = vmatpush2.bf16.msra.mxu0 %v3480_v21  ;;  %v475_v16 = vsel %vm5882_vm11, %v442_v11, %v474_v9  ;;  %2361 = vmatprep.mubr.bf16.mxu0 %v4775_v56 }
 0x132   :  { %v463_v15 = vrot.slane %v446_v12, 4  ;;  %1090 = vrot.lane.b32.xlu0 %v1065_v0, %s4028_s29  ;;  %2347 = vmatprep.subr.bf16.mxu0 %v3477_v32 }
 0x133   :  { %1088 = vrot.lane.b32.xlu1 %v1064_v27, %s4028_s29 }
 0x134   :  { %v476_v19 = vsel %vm128_vm10, %v463_v15, %v464_v63  ;;  %v697_v38 = vpop.permute.xlu0 %696 }
 0x135   :  { %v477_v4 = vsel %vm5882_vm11, %v446_v12, %v476_v19  ;;  %v695_v24 = vpop.permute.xlu1 %694  ;;  %2348 = vmatpush2.bf16.msra.mxu0 %v3476_v10  ;;  %v711_v36 = vrot.slane %v697_v38, 4  ;;  %vm5883_vm11 = vcmask 769024  }
 0x136   :  { %v710_v55 = vrot.slane %v695_v24, 4  ;;  %1094 = vrot.lane.b32.xlu0 %v1067_v14, %s4028_s29  ;;  %v3485_v20 = vcombine.high %v475_v16, %v477_v4  ;;  %v3484_v61 = vcombine.low %v475_v16, %v477_v4 }
 0x137   :  { %1092 = vrot.lane.b32.xlu1 %v1066_v22, %s4028_s29 }
 0x138   :  { %2456 = vmatprep.subr.bf16.mxu1 %v3485_v20  ;;  %v701_v34 = vpop.permute.xlu0 %700  ;;  %v723_v60 = vsel %vm128_vm10, %v710_v55, %v711_v36 }
 0x139   :  { %v713_v41 = vrot.slane %v701_v34, 4  ;;  %v699_v53 = vpop.permute.xlu1 %698  ;;  %2457 = vmatpush1.bf16.msra.mxu1 %v3484_v61  ;;  %v724_v47 = vsel %vm5883_vm11, %v695_v24, %v723_v60 }
 0x13a   :  { %v712_v62 = vrot.slane %v699_v53, 4  ;;  %1022 = vrot.lane.b32.xlu0 %v4645_v50, %s4025_s25 }
 0x13b   :  { %1020 = vrot.lane.b32.xlu1 %v4653_v3, %s4025_s25 }
 0x13c   :  { %v725_v39 = vsel %vm128_vm10, %v712_v62, %v713_v41  ;;  %v352_v7 = vpop.permute.xlu0 %351 }
 0x13d   :  { %v726_v48 = vsel %vm5883_vm11, %v699_v53, %v725_v39  ;;  %v350_v51 = vpop.permute.xlu1 %349  ;;  %v370_v17 = vrot.slane %v352_v7, 4 }
 0x13e   :  { %v369_v18 = vrot.slane %v350_v51, 4  ;;  %1026 = vrot.lane.b32.xlu0 %v4669_v13, %s4025_s25  ;;  %v3525_v49 = vcombine.high %v724_v47, %v726_v48  ;;  %v3524_v52 = vcombine.low %v724_v47, %v726_v48 }
 0x13f   :  { %1024 = vrot.lane.b32.xlu1 %v4676_v37, %s4025_s25 }
 0x140   :  { %2468 = vmatprep.subr.bf16.mxu1 %v3525_v49  ;;  %v356_v11 = vpop.permute.xlu0 %355  ;;  %v382_v1 = vsel %vm128_vm10, %v369_v18, %v370_v17 }
 0x141   :  { %v372_v35 = vrot.slane %v356_v11, 4  ;;  %v354_v23 = vpop.permute.xlu1 %353  ;;  %2469 = vmatpush2.bf16.msra.mxu1 %v3524_v52  ;;  %v383_v32 = vsel %vm378_vm3, %v350_v51, %v382_v1 }
 0x142   :  { %v371_v57 = vrot.slane %v354_v23, 4  ;;  %1250 = vrot.lane.b32.xlu0 %v4645_v50, %s4018_s20 }
 0x143   :  { %1248 = vrot.lane.b32.xlu1 %v4653_v3, %s4018_s20 }
 0x144   :  { %v384_v21 = vsel %vm128_vm10, %v371_v57, %v372_v35  ;;  %v689_v2 = vpop.permute.xlu0 %688 }
 0x145   :  { %v385_v63 = vsel %vm378_vm3, %v354_v23, %v384_v21  ;;  %v687_v12 = vpop.permute.xlu1 %686  ;;  %v707_v0 = vrot.slane %v689_v2, 4 }
 0x146   :  { %v706_v9 = vrot.slane %v687_v12, 4  ;;  %1254 = vrot.lane.b32.xlu0 %v4669_v13, %s4018_s20  ;;  %v3473_v15 = vcombine.high %v383_v32, %v385_v63  ;;  %v3472_v27 = vcombine.low %v383_v32, %v385_v63 }
 0x147   :  { %1252 = vrot.lane.b32.xlu1 %v4676_v37, %s4018_s20 }
 0x148   :  { %v693_v10 = vpop.permute.xlu0 %692  ;;  %2349 = vmatprep.subr.bf16.mxu0 %v3473_v15  ;;  %v719_v16 = vsel %vm128_vm10, %v706_v9, %v707_v0 }
 0x149   :  { %v709_v19 = vrot.slane %v693_v10, 4  ;;  %v691_v38 = vpop.permute.xlu1 %690  ;;  %2350 = vmatpush2.bf16.msra.mxu0 %v3472_v27  ;;  %v720_v22 = vsel %vm5883_vm11, %v687_v12, %v719_v16  ;;  %v3641_v16 = vld [vmem:[%s5875_s2 + $0x8] ss:$16 sps:$4 sm:$0xff]  }
 0x14a   :  { %v708_v4 = vrot.slane %v691_v38, 4  ;;  %1014 = vrot.lane.b32.xlu0 %v4484_v5, %s4025_s25 }
 0x14b   :  { %1012 = vrot.lane.b32.xlu1 %v4490_v6, %s4025_s25 }
 0x14c   :  { %v721_v24 = vsel %vm128_vm10, %v708_v4, %v709_v19  ;;  %v344_v14 = vpop.permute.xlu0 %343 }
 0x14d   :  { %v722_v36 = vsel %vm5883_vm11, %v691_v38, %v721_v24  ;;  %v342_v55 = vpop.permute.xlu1 %341  ;;  %v366_v20 = vrot.slane %v344_v14, 4  ;;  %v3650_v14 = vld [vmem:[%s5875_s2 + $0x2c] ss:$16 sps:$4 sm:$0xff]  }
 0x14e   :  { %v365_v61 = vrot.slane %v342_v55, 4  ;;  %1018 = vrot.lane.b32.xlu0 %v4509_v28, %s4025_s25  ;;  %v3521_v34 = vcombine.high %v720_v22, %v722_v36  ;;  %v3520_v41 = vcombine.low %v720_v22, %v722_v36 }
 0x14f   :  { %1016 = vrot.lane.b32.xlu1 %v4515_v33, %s4025_s25 }
 0x150   :  { %2470 = vmatprep.subr.bf16.mxu1 %v3521_v34  ;;  %v348_v53 = vpop.permute.xlu0 %347  ;;  %v377_v39 = vsel %vm128_vm10, %v365_v61, %v366_v20 }
 0x151   :  { %v368_v60 = vrot.slane %v348_v53, 4  ;;  %v346_v62 = vpop.permute.xlu1 %345  ;;  %2471 = vmatpush2.bf16.msra.mxu1 %v3520_v41  ;;  %v379_v51 = vsel %vm378_vm3, %v342_v55, %v377_v39 }
 0x152   :  { %v367_v7 = vrot.slane %v346_v62, 4  ;;  %1242 = vrot.lane.b32.xlu0 %v4484_v5, %s4018_s20 }
 0x153   :  { %1240 = vrot.lane.b32.xlu1 %v4490_v6, %s4018_s20 }
 0x154   :  { %v380_v47 = vsel %vm128_vm10, %v367_v7, %v368_v60  ;;  %v681_v48 = vpop.permute.xlu0 %680 }
 0x155   :  { %v381_v17 = vsel %vm378_vm3, %v346_v62, %v380_v47  ;;  %v679_v18 = vpop.permute.xlu1 %678  ;;  %v703_v49 = vrot.slane %v681_v48, 4  ;;  %v3652_v47 = vld [vmem:[%s5875_s2 + $0x28] ss:$16 sps:$4 sm:$0xff]  }
 0x156   :  { %v702_v52 = vrot.slane %v679_v18, 4  ;;  %1246 = vrot.lane.b32.xlu0 %v4509_v28, %s4018_s20  ;;  %v3469_v11 = vcombine.high %v379_v51, %v381_v17  ;;  %v3468_v35 = vcombine.low %v379_v51, %v381_v17  ;;  %v929_v17 = vsel %vm4452_vm6, %v4645_v50, 0 }
 0x157   :  { %1244 = vrot.lane.b32.xlu1 %v4515_v33, %s4018_s20 }
 0x158   :  { %v685_v23 = vpop.permute.xlu0 %684  ;;  %2351 = vmatprep.subr.bf16.mxu0 %v3469_v11  ;;  %v714_v21 = vsel %vm128_vm10, %v702_v52, %v703_v49  ;;  %v928_v11 = vsel %vm254_vm9, %v4653_v3, 0 }
 0x159   :  { %v705_v1 = vrot.slane %v685_v23, 4  ;;  %v683_v57 = vpop.permute.xlu1 %682  ;;  %2352 = vmatpush2.bf16.msra.mxu0 %v3468_v35  ;;  %v716_v12 = vsel %vm5883_vm11, %v679_v18, %v714_v21  ;;  %v3656_v18 = vld [vmem:[%s5875_s2 + $0x4c] ss:$16 sps:$4 sm:$0xff]  }
 0x15a   :  { %v704_v2 = vrot.slane %v683_v57, 4  ;;  %1006 = vrot.lane.b32.xlu0 %v4552_v40, %s4025_s25 }
 0x15b   :  { %1004 = vrot.lane.b32.xlu1 %v4560_v29, %s4025_s25 }
 0x15c   :  { %v717_v32 = vsel %vm128_vm10, %v704_v2, %v705_v1  ;;  %v299_v63 = vpop.permute.xlu0 %298  ;;  %v931_v2 = vsel %vm4452_vm6, %v4669_v13, 0 }
 0x15d   :  { %v718_v0 = vsel %vm5883_vm11, %v683_v57, %v717_v32  ;;  %v297_v9 = vpop.permute.xlu1 %296  ;;  %v313_v15 = vrot.slane %v299_v63, 4  ;;  %vm317_vm11 = vcmask 916480   ;;  %v930_v32 = vsel %vm254_vm9, %v4676_v37, 0 }
 0x15e   :  { %v312_v27 = vrot.slane %v297_v9, 4  ;;  %1010 = vrot.lane.b32.xlu0 %v4565_v46, %s4025_s25  ;;  %v3517_v10 = vcombine.high %v716_v12, %v718_v0  ;;  %v3516_v19 = vcombine.low %v716_v12, %v718_v0 }
 0x15f   :  { %1008 = vrot.lane.b32.xlu1 %v4574_v58, %s4025_s25 }
 0x160   :  { %2472 = vmatprep.subr.bf16.mxu1 %v3517_v10  ;;  %v303_v38 = vpop.permute.xlu0 %302  ;;  %v325_v22 = vsel %vm128_vm10, %v312_v27, %v313_v15  ;;  %v3658_v27 = vld [vmem:[%s5875_s2 + $0x48] ss:$16 sps:$4 sm:$0xff]  }
 0x161   :  { %v315_v4 = vrot.slane %v303_v38, 4  ;;  %v301_v24 = vpop.permute.xlu1 %300  ;;  %2473 = vmatpush2.bf16.msra.mxu1 %v3516_v19  ;;  %v326_v61 = vsel %vm317_vm11, %v297_v9, %v325_v22  ;;  %v1157_v38 = vsel %vm4228_vm12, %v4645_v50, 0 }
 0x162   :  { %v314_v36 = vrot.slane %v301_v24, 4  ;;  %1234 = vrot.lane.b32.xlu0 %v4552_v40, %s4018_s20 }
 0x163   :  { %1232 = vrot.lane.b32.xlu1 %v4560_v29, %s4018_s20 }
 0x164   :  { %v327_v55 = vsel %vm128_vm10, %v314_v36, %v315_v4  ;;  %v871_v20 = vpop.permute.xlu0 %870  ;;  %2475 = vmatmul.mubr.bf16.vlgmr.msra.gmra.mxu1 %v3641_v16  ;;  %v3662_v16 = vld [vmem:[%s5875_s2 + $0x6c] ss:$16 sps:$4 sm:$0xff]  }
 0x165   :  { %v328_v34 = vsel %vm317_vm11, %v301_v24, %v327_v55  ;;  %v869_v41 = vpop.permute.xlu1 %868  ;;  %3529 = vmatprep.mubr.msk.bf16.mxu1 %vm2304_vm14, %v3650_v14  ;;  %v889_v53 = vrot.slane %v871_v20, 4  ;;  %v1156_v14 = vsel %vm499_vm13, %v4653_v3, 0 }
 0x166   :  { %v888_v60 = vrot.slane %v869_v41, 4  ;;  %1238 = vrot.lane.b32.xlu0 %v4565_v46, %s4018_s20  ;;  %v3465_v62 = vcombine.high %v326_v61, %v328_v34  ;;  %v3464_v39 = vcombine.low %v326_v61, %v328_v34  ;;  %v1159_v34 = vsel %vm4228_vm12, %v4669_v13, 0 }
 0x167   :  { %1236 = vrot.lane.b32.xlu1 %v4574_v58, %s4018_s20 }
 0x168   :  { %v875_v7 = vpop.permute.xlu0 %874  ;;  %2353 = vmatprep.subr.bf16.mxu0 %v3465_v62  ;;  %v900_v49 = vsel %vm128_vm10, %v888_v60, %v889_v53 }
 0x169   :  { %v891_v48 = vrot.slane %v875_v7, 4  ;;  %v873_v51 = vpop.permute.xlu1 %872  ;;  %2354 = vmatpush2.bf16.msra.mxu0 %v3464_v39  ;;  %v901_v1 = vsel %vm224_vm1, %v869_v41, %v900_v49  ;;  %v1158_v41 = vsel %vm499_vm13, %v4676_v37, 0 }
 0x16a   :  { %v890_v52 = vrot.slane %v873_v51, 4  ;;  %962 = vrot.lane.b32.xlu0 %v929_v17, %s4030_s7  ;;  %v925_v17 = vsel %vm4452_vm6, %v4484_v5, 0 }
 0x16b   :  { %960 = vrot.lane.b32.xlu1 %v928_v11, %s4030_s7  ;;  %v924_v11 = vsel %vm254_vm9, %v4490_v6, 0 }
 0x16c   :  { %v902_v35 = vsel %vm128_vm10, %v890_v52, %v891_v48  ;;  %v291_v23 = vpop.permute.xlu0 %290  ;;  %2485 = vmatmul.mubr.bf16.gmra.mxu1 %v3652_v47  ;;  %v3664_v47 = vld [vmem:[%s5875_s2 + $0x68] ss:$16 sps:$4 sm:$0xff]  }
 0x16d   :  { %v903_v57 = vsel %vm224_vm1, %v873_v51, %v902_v35  ;;  %v289_v21 = vpop.permute.xlu1 %288  ;;  %3530 = vmatprep.mubr.msk.bf16.mxu1 %vm2304_vm14, %v3656_v18  ;;  %v309_v12 = vrot.slane %v291_v23, 4  ;;  %v3668_v18 = vld [vmem:[%s5875_s2 + $0x8c] ss:$16 sps:$4 sm:$0xff]  }
 0x16e   :  { %v3450_v63 = vcombine.low %v901_v1, %v903_v57  ;;  %v308_v0 = vrot.slane %v289_v21, 4  ;;  %966 = vrot.lane.b32.xlu0 %v931_v2, %s4030_s7  ;;  %v3451_v9 = vcombine.high %v901_v1, %v903_v57  ;;  %v927_v2 = vsel %vm4452_vm6, %v4509_v28, 0 }
 0x16f   :  { %964 = vrot.lane.b32.xlu1 %v930_v32, %s4030_s7  ;;  %v926_v32 = vsel %vm254_vm9, %v4515_v33, 0 }
 0x170   :  { %2555 = vmatprep.subr.bf16.mxu1 %v3451_v9  ;;  %v295_v15 = vpop.permute.xlu0 %294  ;;  %v321_v4 = vsel %vm128_vm10, %v308_v0, %v309_v12 }
 0x171   :  { %v311_v10 = vrot.slane %v295_v15, 4  ;;  %v293_v19 = vpop.permute.xlu1 %292  ;;  %2556 = vmatpush1.bf16.msra.mxu1 %v3450_v63  ;;  %v322_v55 = vsel %vm317_vm11, %v289_v21, %v321_v4 }
 0x172   :  { %v310_v24 = vrot.slane %v293_v19, 4  ;;  %1190 = vrot.lane.b32.xlu0 %v1157_v38, %s4027_s28  ;;  %v1153_v38 = vsel %vm4228_vm12, %v4484_v5, 0 }
 0x173   :  { %1188 = vrot.lane.b32.xlu1 %v1156_v14, %s4027_s28  ;;  %v1152_v14 = vsel %vm499_vm13, %v4490_v6, 0 }
 0x174   :  { %v323_v22 = vsel %vm128_vm10, %v310_v24, %v311_v10  ;;  %v863_v36 = vpop.permute.xlu0 %862  ;;  %2495 = vmatmul.mubr.bf16.gmra.mxu1 %v3658_v27  ;;  %v3670_v27 = vld [vmem:[%s5875_s2 + $0x88] ss:$16 sps:$4 sm:$0xff]  }
 0x175   :  { %v324_v20 = vsel %vm317_vm11, %v293_v19, %v323_v22  ;;  %v861_v61 = vpop.permute.xlu1 %860  ;;  %3531 = vmatprep.mubr.msk.bf16.mxu1 %vm2304_vm14, %v3662_v16  ;;  %v885_v53 = vrot.slane %v863_v36, 4  ;;  %v3674_v16 = vld [vmem:[%s5875_s2 + $0xac] ss:$16 sps:$4 sm:$0xff]  }
 0x176   :  { %v884_v60 = vrot.slane %v861_v61, 4  ;;  %1194 = vrot.lane.b32.xlu0 %v1159_v34, %s4027_s28  ;;  %v3461_v62 = vcombine.high %v322_v55, %v324_v20  ;;  %v3460_v39 = vcombine.low %v322_v55, %v324_v20  ;;  %v1154_v34 = vsel %vm499_vm13, %v4515_v33, 0 }
 0x177   :  { %1192 = vrot.lane.b32.xlu1 %v1158_v41, %s4027_s28  ;;  %v921_v33 = vsel %vm4452_vm6, %v4552_v40, 0 }
 0x178   :  { %v867_v7 = vpop.permute.xlu0 %866  ;;  %2355 = vmatprep.subr.bf16.mxu0 %v3461_v62  ;;  %v896_v49 = vsel %vm128_vm10, %v884_v60, %v885_v53 }
 0x179   :  { %v887_v48 = vrot.slane %v867_v7, 4  ;;  %v865_v51 = vpop.permute.xlu1 %864  ;;  %2356 = vmatpush2.bf16.msra.mxu0 %v3460_v39  ;;  %v897_v1 = vsel %vm224_vm1, %v861_v61, %v896_v49  ;;  %v1155_v61 = vsel %vm4228_vm12, %v4509_v28, 0  ;;  %v3676_v28 = vld [vmem:[%s5875_s2 + $0xa8] ss:$16 sps:$4 sm:$0xff]  }
 0x17a   :  { %v886_v52 = vrot.slane %v865_v51, 4  ;;  %954 = vrot.lane.b32.xlu0 %v925_v17, %s4030_s7  ;;  %v920_v17 = vsel %vm254_vm9, %v4560_v29, 0 }
 0x17b   :  { %952 = vrot.lane.b32.xlu1 %v924_v11, %s4030_s7 }
 0x17c   :  { %v898_v35 = vsel %vm128_vm10, %v886_v52, %v887_v48  ;;  %v283_v23 = vpop.permute.xlu0 %282  ;;  %2505 = vmatmul.mubr.bf16.gmra.mxu1 %v3664_v47  ;;  %v3680_v47 = vld [vmem:[%s5875_s2 + $0xcc] ss:$16 sps:$4 sm:$0xff]  }
 0x17d   :  { %v899_v57 = vsel %vm224_vm1, %v865_v51, %v898_v35  ;;  %v281_v21 = vpop.permute.xlu1 %280  ;;  %3532 = vmatprep.mubr.msk.bf16.mxu1 %vm2304_vm14, %v3668_v18  ;;  %v305_v12 = vrot.slane %v283_v23, 4  ;;  %v923_v23 = vsel %vm4452_vm6, %v4565_v46, 0 }
 0x17e   :  { %v3446_v63 = vcombine.low %v897_v1, %v899_v57  ;;  %v304_v0 = vrot.slane %v281_v21, 4  ;;  %958 = vrot.lane.b32.xlu0 %v927_v2, %s4030_s7  ;;  %v3447_v9 = vcombine.high %v897_v1, %v899_v57  ;;  %v922_v1 = vsel %vm254_vm9, %v4574_v58, 0 }
 0x17f   :  { %956 = vrot.lane.b32.xlu1 %v926_v32, %s4030_s7 }
 0x180   :  { %2557 = vmatprep.subr.bf16.mxu1 %v3447_v9  ;;  %v287_v15 = vpop.permute.xlu0 %286  ;;  %v316_v4 = vsel %vm128_vm10, %v304_v0, %v305_v12  ;;  %v3686_v0 = vld [vmem:[%s5875_s2 + $0xec] ss:$16 sps:$4 sm:$0xff]  }
 0x181   :  { %v307_v10 = vrot.slane %v287_v15, 4  ;;  %v285_v19 = vpop.permute.xlu1 %284  ;;  %2558 = vmatpush1.bf16.msra.mxu1 %v3446_v63  ;;  %v318_v5 = vsel %vm317_vm11, %v281_v21, %v316_v4  ;;  %v5001_v4 = vld [vmem:[%s5873_s0 + $0x5c] sm:$0xf] }
 0x182   :  { %v306_v24 = vrot.slane %v285_v19, 4  ;;  %1182 = vrot.lane.b32.xlu0 %v1153_v38, %s4027_s28 }
 0x183   :  { %1180 = vrot.lane.b32.xlu1 %v1152_v14, %s4027_s28 }
 0x184   :  { %v319_v22 = vsel %vm128_vm10, %v306_v24, %v307_v10  ;;  %v795_v36 = vpop.permute.xlu0 %794  ;;  %2515 = vmatmul.mubr.bf16.gmra.mxu1 %v3670_v27  ;;  %v1148_v27 = vsel %vm499_vm13, %v4560_v29, 0  ;;  %v1151_v29 = vsel %vm4228_vm12, %v5001_v4, 0  ;;  %v1150_v24 = vsel %vm499_vm13, %v4574_v58, 0 }
 0x185   :  { %v320_v55 = vsel %vm317_vm11, %v285_v19, %v319_v22  ;;  %v793_v20 = vpop.permute.xlu1 %792  ;;  %3533 = vmatprep.mubr.msk.bf16.mxu1 %vm2304_vm14, %v3674_v16  ;;  %v809_v6 = vrot.slane %v795_v36, 4 }
 0x186   :  { %v808_v41 = vrot.slane %v793_v20, 4  ;;  %1186 = vrot.lane.b32.xlu0 %v1155_v61, %s4027_s28  ;;  %v3457_v53 = vcombine.high %v318_v5, %v320_v55  ;;  %v3456_v60 = vcombine.low %v318_v5, %v320_v55  ;;  %v845_v61 = vsel %vm4191_vm7, %v4645_v50, 0 }
 0x187   :  { %1184 = vrot.lane.b32.xlu1 %v1154_v34, %s4027_s28  ;;  %v5026_v34 = vld [vmem:[%s5875_s2 + $0x24] ss:$16 sps:$4 sm:$0xff]  }
 0x188   :  { %v799_v62 = vpop.permute.xlu0 %798  ;;  %2357 = vmatprep.subr.bf16.mxu0 %v3457_v53  ;;  %v820_v48 = vsel %vm128_vm10, %v808_v41, %v809_v6  ;;  %v844_v53 = vsel %vm161_vm8, %v4653_v3, 0 }
 0x189   :  { %v811_v39 = vrot.slane %v799_v62, 4  ;;  %v797_v7 = vpop.permute.xlu1 %796  ;;  %2358 = vmatpush2.bf16.msra.mxu0 %v3456_v60  ;;  %v821_v52 = vsel %vm130_vm4, %v793_v20, %v820_v48 }
 0x18a   :  { %v810_v51 = vrot.slane %v797_v7, 4  ;;  %946 = vrot.lane.b32.xlu0 %v921_v33, %s4030_s7  ;;  %v847_v33 = vsel %vm4191_vm7, %v4669_v13, 0  ;;  %vm5897_vm7 = vcmp.ne.s16.totalorder %v4366_v30, 0  ;;  %v5282_v30 = vld [vmem:[%s5875_s2 + $0xc0] ss:$16 sps:$4 sm:$0xff]  }
 0x18b   :  { %944 = vrot.lane.b32.xlu1 %v920_v17, %s4030_s7  ;;  %vm5899_vm12 = vmmov %vm5897_vm7 }
 0x18c   :  { %v822_v18 = vsel %vm128_vm10, %v810_v51, %v811_v39  ;;  %v206_v49 = vpop.permute.xlu0 %205  ;;  %2525 = vmatmul.mubr.bf16.gmra.mxu1 %v3676_v28  ;;  %vm5900_vm13 = vmmov %vm5897_vm7 }
 0x18d   :  { %v823_v11 = vsel %vm130_vm4, %v797_v7, %v822_v18  ;;  %v204_v35 = vpop.permute.xlu1 %203  ;;  %3534 = vmatprep.mubr.msk.bf16.mxu1 %vm2304_vm14, %v3680_v47  ;;  %v220_v21 = vrot.slane %v206_v49, 4  ;;  %v846_v47 = vsel %vm161_vm8, %v4676_v37, 0  ;;  %vm5903_vm6 = vmmov %vm5897_vm7 }
 0x18e   :  { %v3442_v57 = vcombine.low %v821_v52, %v823_v11  ;;  %v219_v2 = vrot.slane %v204_v35, 4  ;;  %950 = vrot.lane.b32.xlu0 %v923_v23, %s4030_s7  ;;  %v3443_v32 = vcombine.high %v821_v52, %v823_v11  ;;  %v5059_v11 = vld [vmem:[%s5875_s2 + $0x44] ss:$16 sps:$4 sm:$0xff]   ;;  %vm5904_vm9 = vmmov %vm5903_vm6 }
 0x18f   :  { %948 = vrot.lane.b32.xlu1 %v922_v1, %s4030_s7  ;;  %v1072_v1 = vsel %vm407_vm0, %v4653_v3, 0 }
 0x190   :  { %2559 = vmatprep.subr.bf16.mxu1 %v3443_v32  ;;  %v210_v63 = vpop.permute.xlu0 %209  ;;  %v232_v9 = vsel %vm128_vm10, %v219_v2, %v220_v21 }
 0x191   :  { %v222_v46 = vrot.slane %v210_v63, 4  ;;  %v208_v12 = vpop.permute.xlu1 %207  ;;  %2560 = vmatpush1.bf16.msra.mxu1 %v3442_v57  ;;  %v233_v40 = vsel %vm224_vm1, %v204_v35, %v232_v9  ;;  %v757_v57 = vsel %vm4071_vm5, %v4676_v37, 0  ;;  %v5091_v9 = vld [vmem:[%s5873_s0 + $0x60] sm:$0xff] }
 0x192   :  { %v221_v15 = vrot.slane %v208_v12, 4  ;;  %1174 = vrot.lane.b32.xlu0 %v1149_v54, %s4027_s28  ;;  %v1074_v54 = vsel %vm407_vm0, %v4676_v37, 0 }
 0x193   :  { %1172 = vrot.lane.b32.xlu1 %v1148_v27, %s4027_s28 }
 0x194   :  { %v234_v10 = vsel %vm128_vm10, %v221_v15, %v222_v46  ;;  %v787_v19 = vpop.permute.xlu0 %786  ;;  %2535 = vmatmul.mubr.bf16.gmra.mxu1 %v3682_v59  ;;  %v1075_v46 = vsel %vm4305_vm15, %v4669_v13, 0  ;;  %v754_v13 = vsel %vm4071_vm5, %v5091_v9, 0  ;;  %v5099_v15 = vld [vmem:[%s5873_s0 + $0x6c] sm:$0xff] }
 0x195   :  { %v235_v38 = vsel %vm224_vm1, %v208_v12, %v234_v10  ;;  %v785_v16 = vpop.permute.xlu1 %784  ;;  %3535 = vmatprep.mubr.msk.bf16.mxu1 %vm2304_vm14, %v3686_v0  ;;  %v805_v14 = vrot.slane %v787_v19, 4  ;;  %v755_v37 = vsel %vm4071_vm5, %v5099_v15, 0  ;;  %v5107_v10 = vld [vmem:[%s5875_s2 + $0x40] ss:$16 sps:$4 sm:$0xff]  }
 0x196   :  { %v804_v22 = vrot.slane %v785_v16, 4  ;;  %1178 = vrot.lane.b32.xlu0 %v1151_v29, %s4027_s28  ;;  %v3453_v36 = vcombine.high %v233_v40, %v235_v38  ;;  %v3452_v5 = vcombine.low %v233_v40, %v235_v38  ;;  %v5112_v40 = vld [vmem:[%s5873_s0 + $0x68] sm:$0xf]  ;;  %v5120_v29 = vld [vmem:[%s5875_s2 + $0x64] ss:$16 sps:$4 sm:$0xff]  }
 0x197   :  { %1176 = vrot.lane.b32.xlu1 %v1150_v24, %s4027_s28  ;;  %v1069_v38 = vsel %vm4305_vm15, %v5112_v40, 0 }
 0x198   :  { %v791_v55 = vpop.permute.xlu0 %790  ;;  %2359 = vmatprep.subr.bf16.mxu0 %v3453_v36  ;;  %v816_v6 = vsel %vm128_vm10, %v804_v22, %v805_v14  ;;  %v1068_v22 = vsel %vm407_vm0, %v5091_v9, 0  ;;  %v3427_v36 = vcombine.high %v754_v13, %v755_v37 }
 0x199   :  { %v807_v58 = vrot.slane %v791_v55, 4  ;;  %v789_v20 = vpop.permute.xlu1 %788  ;;  %2360 = vmatpush2.bf16.msra.mxu0 %v3452_v5  ;;  %v817_v28 = vsel %vm130_vm4, %v785_v16, %v816_v6  ;;  %v5130_v5 = vld [vmem:[%s5873_s0 + $0x48] sm:$0xff] }
 0x19a   :  { %v806_v41 = vrot.slane %v789_v20, 4  ;;  %878 = vrot.lane.b32.xlu0 %v845_v61, %s4026_s26  ;;  %v752_v55 = vsel %vm4071_vm5, %v5130_v5, 0 }
 0x19b   :  { %876 = vrot.lane.b32.xlu1 %v844_v53, %s4026_s26  ;;  %v5148_v53 = vld [vmem:[%s5873_s0 + $0x74] sm:$0xf] }
 0x19c   :  { %v818_v60 = vsel %vm128_vm10, %v806_v41, %v807_v58  ;;  %v779_v62 = vpop.permute.xlu0 %778  ;;  %2362 = vmatmul.mubr.bf16.vlgmr.msra.gmra.mxu0 %v5015_v43  ;;  %2545 = vmatmul.mubr.bf16.gmra.mxu1 %v3688_v42  ;;  %v5138_v42 = vld [vmem:[%s5873_s0 + $0x54] sm:$0xff] }
 0x19d   :  { %v819_v39 = vsel %vm130_vm4, %v789_v20, %v818_v60  ;;  %v777_v7 = vpop.permute.xlu1 %776  ;;  %2371 = vmatprep.mubr.bf16.mxu0 %v5026_v34  ;;  %2587 = vmatprep.mubr.bf16.mxu1 %v4775_v56  ;;  %v801_v51 = vrot.slane %v779_v62, 4  ;;  %v1073_v56 = vsel %vm4305_vm15, %v4645_v50, 0  ;;  %v756_v50 = vsel %vm4071_vm5, %v4653_v3, 0 }
 0x19e   :  { %v3438_v48 = vcombine.low %v817_v28, %v819_v39  ;;  %v800_v17 = vrot.slane %v777_v7, 4  ;;  %882 = vrot.lane.b32.xlu0 %v847_v33, %s4026_s26  ;;  %v3439_v18 = vcombine.high %v817_v28, %v819_v39  ;;  %v3431_v0 = vcombine.high %v756_v50, %v757_v57 }
 0x19f   :  { %880 = vrot.lane.b32.xlu1 %v846_v47, %s4026_s26  ;;  %v3430_v16 = vcombine.low %v756_v50, %v757_v57  ;;  %v753_v58 = vsel %vm4071_vm5, %v5138_v42, 0  ;;  %v1071_v60 = vsel %vm4305_vm15, %v5148_v53, 0  ;;  %v3426_v62 = vcombine.low %v754_v13, %v755_v37 }
 0x1a0   :  { %2561 = vmatprep.subr.bf16.mxu1 %v3439_v18  ;;  %v783_v49 = vpop.permute.xlu0 %782  ;;  %v812_v35 = vsel %vm128_vm10, %v800_v17, %v801_v51  ;;  %v1070_v28 = vsel %vm407_vm0, %v5099_v15, 0  ;;  %v3423_v39 = vcombine.high %v752_v55, %v753_v58  ;;  %vm5896_vm5 = vcmask 900096  }
 0x1a1   :  { %v803_v25 = vrot.slane %v783_v49, 4  ;;  %v781_v52 = vpop.permute.xlu1 %780  ;;  %2562 = vmatpush1.bf16.msra.mxu1 %v3438_v48  ;;  %v813_v32 = vsel %vm130_vm4, %v777_v7, %v812_v35  ;;  %v5164_v48 = vld [vmem:[%s5875_s2 + $0x60] ss:$16 sps:$4 sm:$0xff]   ;;  %v1301_v49 = vsel %vm4368_vm2, %v3952_v44, 0  ;;  %v3953_v35 = vld [vmem:[%s5873_s0 + $0x78] sm:$0xff]  ;;  %vm5898_vm8 = vmmov %vm5896_vm5  ;;  %vm5901_vm15 = vcmask 777216  }
 0x1a2   :  { %v802_v23 = vrot.slane %v781_v52, 4  ;;  %1106 = vrot.lane.b32.xlu0 %v1073_v56, %s4028_s29  ;;  %vm5902_vm0 = vmmov %vm5901_vm15 }
 0x1a3   :  { %1104 = vrot.lane.b32.xlu1 %v1072_v1, %s4028_s29 }
 0x1a4   :  { %v814_v21 = vsel %vm128_vm10, %v802_v23, %v803_v25  ;;  %v1091_v2 = vpop.permute.xlu0 %1090  ;;  %2372 = vmatmul.mubr.bf16.gmra.mxu0 %v5051_v26  ;;  %v3422_v25 = vcombine.low %v752_v55, %v753_v58  ;;  %v1300_v23 = vsel %vm5897_vm7, %v3953_v35, 0  ;;  %v1296_v58 = vsel %vm5900_vm13, %v5091_v9, 0  ;;  %vm5909_vm7 = vmmov %vm5902_vm0 }
 0x1a5   :  { %v815_v63 = vsel %vm130_vm4, %v781_v52, %v814_v21  ;;  %v5077_v59 = vpop.permute.xlu1 %1088  ;;  %2381 = vmatprep.mubr.bf16.mxu0 %v5059_v11  ;;  %v1113_v20 = vrot.slane %v1091_v2, 4  ;;  %v5175_v52 = vld [vmem:[%s5875_s2 + $0x84] ss:$16 sps:$4 sm:$0xff]   ;;  %v1298_v9 = vsel %vm5903_vm6, %v5099_v15, 0  ;;  %vm5905_vm4 = vmmov %vm5903_vm6 }
 0x1a6   :  { %v3434_v3 = vcombine.low %v813_v32, %v815_v63  ;;  %v3435_v12 = vcombine.high %v813_v32, %v815_v63  ;;  %1110 = vrot.lane.b32.xlu0 %v1075_v46, %s4028_s29  ;;  %v1112_v61 = vrot.slane %v5077_v59, 4  ;;  %v3954_v46 = vld [vmem:[%s5873_s0 + $0x8c] sm:$0xf] }
 0x1a7   :  { %1108 = vrot.lane.b32.xlu1 %v1074_v54, %s4028_s29  ;;  %v3955_v54 = vld [vmem:[%s5873_s0 + $0x84] sm:$0xff] }
 0x1a8   :  { %2563 = vmatprep.subr.bf16.mxu1 %v3435_v12  ;;  %v1095_v27 = vpop.permute.xlu0 %1094  ;;  %v1124_v7 = vsel %vm128_vm10, %v1112_v61, %v1113_v20 }
 0x1a9   :  { %v1093_v19 = vpop.permute.xlu1 %1092  ;;  %2564 = vmatpush1.bf16.msra.mxu1 %v3434_v3  ;;  %v1115_v24 = vrot.slane %v1095_v27, 4  ;;  %v1125_v1 = vsel %vm5898_vm8, %v5077_v59, %v1124_v7  ;;  %v1303_v59 = vsel %vm4368_vm2, %v3954_v46, 0  ;;  %vm5910_vm8 = vcmask 785408  }
 0x1aa   :  { %v1114_v14 = vrot.slane %v1093_v19, 4  ;;  %1098 = vrot.lane.b32.xlu0 %v1069_v38, %s4028_s29  ;;  %2565 = vmatprep.subr.bf16.mxu1 %v3431_v0  ;;  %v1302_v0 = vsel %vm5899_vm12, %v3955_v54, 0  ;;  %v5207_v38 = vld [vmem:[%s5875_s2 + $0x80] ss:$16 sps:$4 sm:$0xff]   ;;  %vm5911_vm12 = vmmov %vm5910_vm8 }
 0x1ab   :  { %1096 = vrot.lane.b32.xlu1 %v1068_v22, %s4028_s29  ;;  %v5215_v22 = vld [vmem:[%s5875_s2 + $0xa4] ss:$16 sps:$4 sm:$0xff]   ;;  %vm5912_vm13 = vmmov %vm5910_vm8 }
 0x1ac   :  { %v1023_v6 = vpop.permute.xlu0 %1022  ;;  %2382 = vmatmul.mubr.bf16.gmra.mxu0 %v5107_v10  ;;  %v1126_v8 = vsel %vm128_vm10, %v1114_v14, %v1115_v24  ;;  %v1297_v14 = vsel %vm4368_vm2, %v5112_v40, 0  ;;  %v1520_v54 = vld [vmem:[%s5876_s3 + $0x20] sm:$0xff] }
 0x1ad   :  { %v1021_v41 = vpop.permute.xlu1 %1020  ;;  %2566 = vmatpush1.bf16.msra.mxu1 %v3430_v16  ;;  %2391 = vmatprep.mubr.bf16.mxu0 %v5120_v29  ;;  %v1037_v33 = vrot.slane %v1023_v6, 4  ;;  %v1127_v51 = vsel %vm5896_vm5, %v1093_v19, %v1126_v8  ;;  %vm5907_vm5 = vmmov %vm5902_vm0 }
 0x1ae   :  { %1102 = vrot.lane.b32.xlu0 %v1071_v60, %s4028_s29  ;;  %2567 = vmatprep.subr.bf16.mxu1 %v3427_v36  ;;  %v1036_v45 = vrot.slane %v1021_v41, 4  ;;  %v3483_v50 = vcombine.high %v1125_v1, %v1127_v51  ;;  %v3482_v13 = vcombine.low %v1125_v1, %v1127_v51 }
 0x1af   :  { %1100 = vrot.lane.b32.xlu1 %v1070_v28, %s4028_s29 }
 0x1b0   :  { %v1027_v47 = vpop.permute.xlu0 %1026  ;;  %v1048_v57 = vsel %vm128_vm10, %v1036_v45, %v1037_v33 }
 0x1b1   :  { %v1039_v17 = vrot.slane %v1027_v47, 4  ;;  %v1025_v18 = vpop.permute.xlu1 %1024  ;;  %2568 = vmatpush1.bf16.msra.mxu1 %v3426_v62  ;;  %v1049_v37 = vsel %vm378_vm3, %v1021_v41, %v1048_v57  ;;  %v1299_v62 = vsel %vm4368_vm2, %v5148_v53, 0  ;;  %v5244_v53 = vld [vmem:[%s5875_s2 + $0xa0] ss:$16 sps:$4 sm:$0xff]  }
 0x1b2   :  { %v1038_v56 = vrot.slane %v1025_v18, 4  ;;  %1334 = vrot.lane.b32.xlu0 %v1301_v49, %s4029_s6  ;;  %2569 = vmatprep.subr.bf16.mxu1 %v3423_v39  ;;  %v3956_v47 = vld [vmem:[%s5873_s0 + $0x50] sm:$0xf]  ;;  %v1292_v49 = vsel %vm5904_vm9, %v5130_v5, 0  ;;  %v1294_v5 = vsel %vm5905_vm4, %v5138_v42, 0 }
 0x1b3   :  { %1332 = vrot.lane.b32.xlu1 %v1300_v23, %s4029_s6  ;;  %v1293_v51 = vsel %vm4368_vm2, %v3956_v47, 0 }
 0x1b4   :  { %v1050_v21 = vsel %vm128_vm10, %v1038_v56, %v1039_v17  ;;  %v1251_v2 = vpop.permute.xlu0 %1250  ;;  %2392 = vmatmul.mubr.bf16.gmra.mxu0 %v5164_v48  ;;  %v5255_v17 = vld [vmem:[%s5875_s2 + $0xc4] ss:$16 sps:$4 sm:$0xff]  }
 0x1b5   :  { %v1051_v32 = vsel %vm378_vm3, %v1025_v18, %v1050_v21  ;;  %v1249_v63 = vpop.permute.xlu1 %1248  ;;  %2570 = vmatpush1.bf16.msra.mxu1 %v3422_v25  ;;  %2401 = vmatprep.mubr.bf16.mxu0 %v5175_v52  ;;  %v1265_v3 = vrot.slane %v1251_v2, 4 }
 0x1b6   :  { %v1264_v12 = vrot.slane %v1249_v63, 4  ;;  %1338 = vrot.lane.b32.xlu0 %v1303_v59, %s4029_s6  ;;  %2571 = vmatprep.subr.bf16.mxu1 %v3483_v50  ;;  %v3479_v27 = vcombine.high %v1049_v37, %v1051_v32  ;;  %v3478_v20 = vcombine.low %v1049_v37, %v1051_v32  ;;  %v1295_v50 = vsel %vm4368_vm2, %v5001_v4, 0  ;;  %v1516_v4 = vld [vmem:[%s5876_s3] sm:$0xff]  ;;  %v1518_v37 = vld [vmem:[%s5876_s3 + $0x10] sm:$0xff]  ;;  %vm5906_vm2 = vmmov %vm5902_vm0 }
 0x1b7   :  { %1336 = vrot.lane.b32.xlu1 %v1302_v0, %s4029_s6  ;;  %v5290_v59 = vld [vmem:[%s5875_s2 + $0xe4] ss:$16 sps:$4 sm:$0xff]  }
 0x1b8   :  { %v1255_v19 = vpop.permute.xlu0 %1254  ;;  %v1276_v36 = vsel %vm128_vm10, %v1264_v12, %v1265_v3 }
 0x1b9   :  { %v1267_v16 = vrot.slane %v1255_v19, 4  ;;  %v1253_v24 = vpop.permute.xlu1 %1252  ;;  %2572 = vmatpush2.bf16.msra.mxu1 %v3482_v13  ;;  %v1277_v6 = vsel %vm5901_vm15, %v1249_v63, %v1276_v36  ;;  %v1517_v63 = vld [vmem:[%s5876_s3 + $0x8] sm:$0xff]  ;;  %vm5913_vm15 = vmmov %vm5910_vm8 }
 0x1ba   :  { %v1266_v55 = vrot.slane %v1253_v24, 4  ;;  %1326 = vrot.lane.b32.xlu0 %v1297_v14, %s4029_s6  ;;  %2573 = vmatprep.subr.bf16.mxu1 %v3479_v27 }
 0x1bb   :  { %1324 = vrot.lane.b32.xlu1 %v1296_v58, %s4029_s6  ;;  %v1522_v58 = vld [vmem:[%s5876_s3 + $0x30] sm:$0xff] }
 0x1bc   :  { %v1278_v40 = vsel %vm128_vm10, %v1266_v55, %v1267_v16  ;;  %v1015_v61 = vpop.permute.xlu0 %1014  ;;  %2402 = vmatmul.mubr.bf16.gmra.mxu0 %v5207_v38 }
 0x1bd   :  { %v1279_v41 = vsel %vm5902_vm0, %v1253_v24, %v1278_v40  ;;  %v1013_v60 = vpop.permute.xlu1 %1012  ;;  %2574 = vmatpush2.bf16.msra.mxu1 %v3478_v20  ;;  %2411 = vmatprep.mubr.bf16.mxu0 %v5215_v22  ;;  %v1033_v39 = vrot.slane %v1015_v61, 4  ;;  %v5315_v40 = vld [vmem:[%s5875_s2 + $0xe0] ss:$16 sps:$4 sm:$0xff]   ;;  %v1519_v61 = vld [vmem:[%s5876_s3 + $0x18] sm:$0xff] }
 0x1be   :  { %v5234_v8 = vcombine.low %v1277_v6, %v1279_v41  ;;  %v5236_v28 = vcombine.high %v1277_v6, %v1279_v41  ;;  %v1032_v7 = vrot.slane %v1013_v60, 4  ;;  %1330 = vrot.lane.b32.xlu0 %v1299_v62, %s4029_s6 }
 0x1bf   :  { %1328 = vrot.lane.b32.xlu1 %v1298_v9, %s4029_s6  ;;  %v1524_v9 = vld [vmem:[%s5876_s3 + $0x40] sm:$0xff] }
 0x1c0   :  { %v1019_v33 = vpop.permute.xlu0 %1018  ;;  %2668 = vmatprep.subr.bf16.mxu0 %v5236_v28  ;;  %v1044_v18 = vsel %vm128_vm10, %v1032_v7, %v1033_v39 }
 0x1c1   :  { %v1035_v15 = vrot.slane %v1019_v33, 4  ;;  %v1017_v45 = vpop.permute.xlu1 %1016  ;;  %2669 = vmatpush1.bf16.msra.mxu0 %v5234_v8  ;;  %v1045_v35 = vsel %vm378_vm3, %v1013_v60, %v1044_v18  ;;  %v1521_v33 = vld [vmem:[%s5876_s3 + $0x28] sm:$0xff] }
 0x1c2   :  { %v1034_v44 = vrot.slane %v1017_v45, 4  ;;  %1318 = vrot.lane.b32.xlu0 %v1293_v51, %s4029_s6  ;;  %v3957_v51 = vld [vmem:[%s5875_s2 + $0xc] ss:$16 sps:$4 sm:$0xff]  }
 0x1c3   :  { %1316 = vrot.lane.b32.xlu1 %v1292_v49, %s4029_s6 }
 0x1c4   :  { %v1046_v25 = vsel %vm128_vm10, %v1034_v44, %v1035_v15  ;;  %v1243_v56 = vpop.permute.xlu0 %1242  ;;  %2412 = vmatmul.mubr.bf16.gmra.mxu0 %v5244_v53 }
 0x1c5   :  { %v1047_v23 = vsel %vm378_vm3, %v1017_v45, %v1046_v25  ;;  %v1241_v1 = vpop.permute.xlu1 %1240  ;;  %2421 = vmatprep.mubr.bf16.mxu0 %v5255_v17  ;;  %v1261_v2 = vrot.slane %v1243_v56, 4  ;;  %v1526_v56 = vld [vmem:[%s5876_s3 + $0x50] sm:$0xff] }
 0x1c6   :  { %v3474_v57 = vcombine.low %v1045_v35, %v1047_v23  ;;  %v3475_v21 = vcombine.high %v1045_v35, %v1047_v23  ;;  %v1260_v32 = vrot.slane %v1241_v1, 4  ;;  %1322 = vrot.lane.b32.xlu0 %v1295_v50, %s4029_s6  ;;  %v1523_v23 = vld [vmem:[%s5876_s3 + $0x38] sm:$0xff] }
 0x1c7   :  { %1320 = vrot.lane.b32.xlu1 %v1294_v5, %s4029_s6 }
 0x1c8   :  { %2575 = vmatprep.subr.bf16.mxu1 %v3475_v21  ;;  %v1247_v31 = vpop.permute.xlu0 %1246  ;;  %v1272_v3 = vsel %vm128_vm10, %v1260_v32, %v1261_v2  ;;  %v1528_v21 = vld [vmem:[%s5876_s3 + $0x60] sm:$0xff] }
 0x1c9   :  { %v1263_v42 = vrot.slane %v1247_v31, 4  ;;  %v1245_v46 = vpop.permute.xlu1 %1244  ;;  %2576 = vmatpush2.bf16.msra.mxu1 %v3474_v57  ;;  %v1273_v27 = vsel %vm5906_vm2, %v1241_v1, %v1272_v3  ;;  %vm5920_vm2 = vcmask 769024  }
 0x1ca   :  { %v1262_v12 = vrot.slane %v1245_v46, 4  ;;  %1539 = vperm.xlu0 %3640, %v1517_v63   ;;  %v1525_v63 = vld [vmem:[%s5876_s3 + $0x48] sm:$0xff] }
 0x1cb   :  { %1534 = vperm.xlu1 %3639, %v1516_v4  }
 0x1cc   :  { %v1274_v0 = vsel %vm128_vm10, %v1262_v12, %v1263_v42  ;;  %v1007_v13 = vpop.permute.xlu0 %1006  ;;  %2422 = vmatmul.mubr.bf16.gmra.mxu0 %v5282_v30 }
 0x1cd   :  { %v1275_v19 = vsel %vm5907_vm5, %v1245_v46, %v1274_v0  ;;  %v1005_v16 = vpop.permute.xlu1 %1004  ;;  %2431 = vmatprep.mubr.bf16.mxu0 %v5290_v59  ;;  %v1029_v36 = vrot.slane %v1007_v13, 4  ;;  %v1530_v0 = vld [vmem:[%s5876_s3 + $0x70] sm:$0xff]  ;;  %vm5921_vm5 = vmmov %vm5920_vm2 }
 0x1ce   :  { %v5304_v24 = vcombine.low %v1273_v27, %v1275_v19  ;;  %v5306_v14 = vcombine.high %v1273_v27, %v1275_v19  ;;  %v1028_v55 = vrot.slane %v1005_v16, 4  ;;  %1554 = vperm.xlu0 %3640, %v1520_v54  }
 0x1cf   :  { %1544 = vperm.xlu1 %3639, %v1518_v37   ;;  %v1527_v37 = vld [vmem:[%s5876_s3 + $0x58] sm:$0xff] }
 0x1d0   :  { %v1011_v20 = vpop.permute.xlu0 %1010  ;;  %2670 = vmatprep.subr.bf16.mxu0 %v5306_v14  ;;  %v1040_v60 = vsel %vm128_vm10, %v1028_v55, %v1029_v36 }
 0x1d1   :  { %v1031_v6 = vrot.slane %v1011_v20, 4  ;;  %v1009_v41 = vpop.permute.xlu1 %1008  ;;  %2671 = vmatpush1.bf16.msra.mxu0 %v5304_v24  ;;  %v1041_v15 = vsel %vm378_vm3, %v1005_v16, %v1040_v60  ;;  %v1529_v20 = vld [vmem:[%s5876_s3 + $0x68] sm:$0xff] }
 0x1d2   :  { %v1030_v62 = vrot.slane %v1009_v41, 4  ;;  %1564 = vperm.xlu0 %3640, %v1522_v58  }
 0x1d3   :  { %1549 = vperm.xlu1 %3639, %v1519_v61  }
 0x1d4   :  { %v1042_v39 = vsel %vm128_vm10, %v1030_v62, %v1031_v6  ;;  %v1235_v7 = vpop.permute.xlu0 %1234  ;;  %2432 = vmatmul.mubr.bf16.gmra.mxu0 %v5315_v40 }
 0x1d5   :  { %v1043_v45 = vsel %vm378_vm3, %v1009_v41, %v1042_v39  ;;  %v1233_v47 = vpop.permute.xlu1 %1232  ;;  %3536 = vmatprep.mubr.msk.bf16.mxu0 %vm2304_vm14, %v3957_v51  ;;  %v1257_v49 = vrot.slane %v1235_v7, 4  ;;  %vm5908_vm3 = vmmov %vm5902_vm0 }
 0x1d6   :  { %v3470_v18 = vcombine.low %v1041_v15, %v1043_v45  ;;  %v3471_v44 = vcombine.high %v1041_v15, %v1043_v45  ;;  %v1256_v25 = vrot.slane %v1233_v47, 4  ;;  %1574 = vperm.xlu0 %3640, %v1524_v9   ;;  %vm5914_vm0 = vmmov %vm5910_vm8 }
 0x1d7   :  { %1559 = vperm.xlu1 %3639, %v1521_v33   ;;  %v1531_v33 = vld [vmem:[%s5876_s3 + $0x78] sm:$0xff]  ;;  %vm5915_vm6 = vmmov %vm5914_vm0 }
 0x1d8   :  { %2577 = vmatprep.subr.bf16.mxu1 %v3471_v44  ;;  %v1239_v35 = vpop.permute.xlu0 %1238  ;;  %v1268_v5 = vsel %vm128_vm10, %v1256_v25, %v1257_v49 }
 0x1d9   :  { %v1259_v1 = vrot.slane %v1239_v35, 4  ;;  %v1237_v50 = vpop.permute.xlu1 %1236  ;;  %2578 = vmatpush2.bf16.msra.mxu1 %v3470_v18  ;;  %v1269_v31 = vsel %vm5908_vm3, %v1233_v47, %v1268_v5  ;;  %vm5922_vm3 = vmmov %vm5920_vm2 }
 0x1da   :  { %v1258_v57 = vrot.slane %v1237_v50, 4  ;;  %1584 = vperm.xlu0 %3640, %v1526_v56  }
 0x1db   :  { %1569 = vperm.xlu1 %3639, %v1523_v23  }
 0x1dc   :  { %v1270_v2 = vsel %vm128_vm10, %v1258_v57, %v1259_v1  ;;  %v963_v32 = vpop.permute.xlu0 %962 }
 0x1dd   :  { %v1271_v4 = vsel %vm5909_vm7, %v1237_v50, %v1270_v2  ;;  %v961_v42 = vpop.permute.xlu1 %960  ;;  %v977_v12 = vrot.slane %v963_v32, 4  ;;  %vm5923_vm7 = vmmov %vm5920_vm2 }
 0x1de   :  { %v5352_v46 = vcombine.low %v1269_v31, %v1271_v4  ;;  %v5354_v3 = vcombine.high %v1269_v31, %v1271_v4  ;;  %v976_v54 = vrot.slane %v961_v42, 4  ;;  %1594 = vperm.xlu0 %3640, %v1528_v21  }
 0x1df   :  { %1579 = vperm.xlu1 %3639, %v1525_v63  }
 0x1e0   :  { %v967_v13 = vpop.permute.xlu0 %966  ;;  %2672 = vmatprep.subr.bf16.mxu0 %v5354_v3  ;;  %v988_v16 = vsel %vm128_vm10, %v976_v54, %v977_v12 }
 0x1e1   :  { %v979_v27 = vrot.slane %v967_v13, 4  ;;  %v965_v19 = vpop.permute.xlu1 %964  ;;  %2673 = vmatpush1.bf16.msra.mxu0 %v5352_v46  ;;  %v989_v61 = vsel %vm317_vm11, %v961_v42, %v988_v16 }
 0x1e2   :  { %v978_v36 = vrot.slane %v965_v19, 4  ;;  %1604 = vperm.xlu0 %3640, %v1530_v0  }
 0x1e3   :  { %1589 = vperm.xlu1 %3639, %v1527_v37  }
 0x1e4   :  { %v990_v55 = vsel %vm128_vm10, %v978_v36, %v979_v27  ;;  %v1191_v58 = vpop.permute.xlu0 %1190 }
 0x1e5   :  { %v991_v6 = vsel %vm317_vm11, %v965_v19, %v990_v55  ;;  %v1189_v41 = vpop.permute.xlu1 %1188  ;;  %v1205_v9 = vrot.slane %v1191_v58, 4 }
 0x1e6   :  { %v3466_v60 = vcombine.low %v989_v61, %v991_v6  ;;  %v3467_v62 = vcombine.high %v989_v61, %v991_v6  ;;  %v1204_v39 = vrot.slane %v1189_v41, 4 }
 0x1e7   :  { %1599 = vperm.xlu1 %3639, %v1529_v20  }
 0x1e8   :  { %2579 = vmatprep.subr.bf16.mxu1 %v3467_v62  ;;  %v1195_v7 = vpop.permute.xlu0 %1194  ;;  %v1216_v47 = vsel %vm128_vm10, %v1204_v39, %v1205_v9 }
 0x1e9   :  { %v1207_v15 = vrot.slane %v1195_v7, 4  ;;  %v1193_v45 = vpop.permute.xlu1 %1192  ;;  %2580 = vmatpush2.bf16.msra.mxu1 %v3466_v60  ;;  %v1217_v49 = vsel %vm5910_vm8, %v1189_v41, %v1216_v47  ;;  %vm5924_vm8 = vmmov %vm5920_vm2 }
 0x1ea   :  { %v1206_v51 = vrot.slane %v1193_v45, 4 }
 0x1eb   :  { %1609 = vperm.xlu1 %3639, %v1531_v33  }
 0x1ec   :  { %v1218_v18 = vsel %vm128_vm10, %v1206_v51, %v1207_v15  ;;  %v955_v44 = vpop.permute.xlu0 %954 }
 0x1ed   :  { %v1219_v25 = vsel %vm5911_vm12, %v1193_v45, %v1218_v18  ;;  %v953_v56 = vpop.permute.xlu1 %952  ;;  %v973_v1 = vrot.slane %v955_v44, 4  ;;  %vm5925_vm12 = vmmov %vm5920_vm2 }
 0x1ee   :  { %v5378_v35 = vcombine.low %v1217_v49, %v1219_v25  ;;  %v5380_v23 = vcombine.high %v1217_v49, %v1219_v25  ;;  %v972_v50 = vrot.slane %v953_v56, 4 }
 0x1f0   :  { %v959_v5 = vpop.permute.xlu0 %958  ;;  %2674 = vmatprep.subr.bf16.mxu0 %v5380_v23  ;;  %v984_v2 = vsel %vm128_vm10, %v972_v50, %v973_v1 }
 0x1f1   :  { %v975_v57 = vrot.slane %v959_v5, 4  ;;  %v957_v21 = vpop.permute.xlu1 %956  ;;  %2675 = vmatpush1.bf16.msra.mxu0 %v5378_v35  ;;  %v985_v4 = vsel %vm317_vm11, %v953_v56, %v984_v2 }
 0x1f2   :  { %v974_v32 = vrot.slane %v957_v21, 4 }
 0x1f4   :  { %v986_v63 = vsel %vm128_vm10, %v974_v32, %v975_v57  ;;  %v1183_v31 = vpop.permute.xlu0 %1182 }
 0x1f5   :  { %v987_v42 = vsel %vm317_vm11, %v957_v21, %v986_v63  ;;  %v1181_v12 = vpop.permute.xlu1 %1180  ;;  %v1201_v13 = vrot.slane %v1183_v31, 4 }
 0x1f6   :  { %v3462_v54 = vcombine.low %v985_v4, %v987_v42  ;;  %v3463_v0 = vcombine.high %v985_v4, %v987_v42  ;;  %v1200_v37 = vrot.slane %v1181_v12, 4 }
 0x1f8   :  { %2581 = vmatprep.subr.bf16.mxu1 %v3463_v0  ;;  %v1187_v27 = vpop.permute.xlu0 %1186  ;;  %v1212_v36 = vsel %vm128_vm10, %v1200_v37, %v1201_v13 }
 0x1f9   :  { %v1203_v19 = vrot.slane %v1187_v27, 4  ;;  %v1185_v16 = vpop.permute.xlu1 %1184  ;;  %2582 = vmatpush2.bf16.msra.mxu1 %v3462_v54  ;;  %v1213_v61 = vsel %vm5912_vm13, %v1181_v12, %v1212_v36 }
 0x1fa   :  { %v1202_v55 = vrot.slane %v1185_v16, 4 }
 0x1fc   :  { %v1214_v58 = vsel %vm128_vm10, %v1202_v55, %v1203_v19  ;;  %v947_v20 = vpop.permute.xlu0 %946 }
 0x1fd   :  { %v1215_v6 = vsel %vm5913_vm15, %v1185_v16, %v1214_v58  ;;  %v945_v41 = vpop.permute.xlu1 %944  ;;  %v969_v9 = vrot.slane %v947_v20, 4 }
 0x1fe   :  { %v5392_v60 = vcombine.low %v1213_v61, %v1215_v6  ;;  %v5394_v62 = vcombine.high %v1213_v61, %v1215_v6  ;;  %v968_v39 = vrot.slane %v945_v41, 4 }
 0x200   :  { %v951_v7 = vpop.permute.xlu0 %950  ;;  %2676 = vmatprep.subr.bf16.mxu0 %v5394_v62  ;;  %v980_v45 = vsel %vm128_vm10, %v968_v39, %v969_v9 }
 0x201   :  { %v971_v33 = vrot.slane %v951_v7, 4  ;;  %v949_v15 = vpop.permute.xlu1 %948  ;;  %2677 = vmatpush1.bf16.msra.mxu0 %v5392_v60  ;;  %v981_v44 = vsel %vm317_vm11, %v945_v41, %v980_v45 }
 0x202   :  { %v970_v47 = vrot.slane %v949_v15, 4 }
 0x204   :  { %v982_v51 = vsel %vm128_vm10, %v970_v47, %v971_v33  ;;  %v1175_v18 = vpop.permute.xlu0 %1174 }
 0x205   :  { %v983_v49 = vsel %vm317_vm11, %v949_v15, %v982_v51  ;;  %v1173_v25 = vpop.permute.xlu1 %1172  ;;  %v1197_v50 = vrot.slane %v1175_v18, 4  ;;  %vm5916_vm11 = vcmask 900096  }
 0x206   :  { %v3458_v56 = vcombine.low %v981_v44, %v983_v49  ;;  %v3459_v1 = vcombine.high %v981_v44, %v983_v49  ;;  %v1196_v5 = vrot.slane %v1173_v25, 4 }
 0x208   :  { %2583 = vmatprep.subr.bf16.mxu1 %v3459_v1  ;;  %v1179_v57 = vpop.permute.xlu0 %1178  ;;  %v1208_v32 = vsel %vm128_vm10, %v1196_v5, %v1197_v50 }
 0x209   :  { %v1199_v21 = vrot.slane %v1179_v57, 4  ;;  %v1177_v2 = vpop.permute.xlu1 %1176  ;;  %2584 = vmatpush2.bf16.msra.mxu1 %v3458_v56  ;;  %v1209_v42 = vsel %vm5914_vm0, %v1173_v25, %v1208_v32 }
 0x20a   :  { %v1198_v63 = vrot.slane %v1177_v2, 4 }
 0x20c   :  { %v1210_v31 = vsel %vm128_vm10, %v1198_v63, %v1199_v21  ;;  %v879_v4 = vpop.permute.xlu0 %878 }
 0x20d   :  { %v1211_v12 = vsel %vm5915_vm6, %v1177_v2, %v1210_v31  ;;  %v877_v54 = vpop.permute.xlu1 %876  ;;  %v893_v37 = vrot.slane %v879_v4, 4 }
 0x20e   :  { %v5406_v0 = vcombine.low %v1209_v42, %v1211_v12  ;;  %v5408_v13 = vcombine.high %v1209_v42, %v1211_v12  ;;  %v892_v27 = vrot.slane %v877_v54, 4 }
 0x210   :  { %v883_v19 = vpop.permute.xlu0 %882  ;;  %2678 = vmatprep.subr.bf16.mxu0 %v5408_v13  ;;  %v904_v55 = vsel %vm128_vm10, %v892_v27, %v893_v37 }
 0x211   :  { %v895_v16 = vrot.slane %v883_v19, 4  ;;  %v881_v36 = vpop.permute.xlu1 %880  ;;  %2679 = vmatpush1.bf16.msra.mxu0 %v5406_v0  ;;  %v905_v6 = vsel %vm224_vm1, %v877_v54, %v904_v55 }
 0x212   :  { %v894_v58 = vrot.slane %v881_v36, 4 }
 0x214   :  { %v906_v20 = vsel %vm128_vm10, %v894_v58, %v895_v16  ;;  %v1107_v61 = vpop.permute.xlu0 %1106 }
 0x215   :  { %v907_v41 = vsel %vm224_vm1, %v881_v36, %v906_v20  ;;  %v1105_v9 = vpop.permute.xlu1 %1104  ;;  %v1121_v33 = vrot.slane %v1107_v61, 4  ;;  %vm5917_vm1 = vmmov %vm5916_vm11 }
 0x216   :  { %v3454_v39 = vcombine.low %v905_v6, %v907_v41  ;;  %v3455_v7 = vcombine.high %v905_v6, %v907_v41  ;;  %v1120_v15 = vrot.slane %v1105_v9, 4  ;;  %vm5918_vm9 = vmmov %vm5917_vm1 }
 0x217   :  { %vm5919_vm4 = vmmov %vm5917_vm1 }
 0x218   :  { %2585 = vmatprep.subr.bf16.mxu1 %v3455_v7  ;;  %v1111_v45 = vpop.permute.xlu0 %1110  ;;  %v1132_v18 = vsel %vm128_vm10, %v1120_v15, %v1121_v33 }
 0x219   :  { %v1123_v47 = vrot.slane %v1111_v45, 4  ;;  %v1109_v51 = vpop.permute.xlu1 %1108  ;;  %2586 = vmatpush2.bf16.msra.mxu1 %v3454_v39  ;;  %v1133_v56 = vsel %vm5916_vm11, %v1105_v9, %v1132_v18 }
 0x21a   :  { %v1122_v44 = vrot.slane %v1109_v51, 4  ;;  %3600 = vmatprep.subr.bf16.mxu1 %v5236_v28 }
 0x21c   :  { %v1134_v49 = vsel %vm128_vm10, %v1122_v44, %v1123_v47  ;;  %2588 = vmatmul.mubr.bf16.vlgmr.msra.gmra.mxu1 %v5015_v43  ;;  %v1099_v25 = vpop.permute.xlu0 %1098 }
 0x21d   :  { %v1135_v1 = vsel %vm5917_vm1, %v1109_v51, %v1134_v49  ;;  %v1097_v50 = vpop.permute.xlu1 %1096  ;;  %3611 = vmatpush1.bf16.msra.mxu1 %v5234_v8  ;;  %2597 = vmatprep.mubr.bf16.mxu1 %v5026_v34  ;;  %v1117_v21 = vrot.slane %v1099_v25, 4 }
 0x21e   :  { %v5424_v5 = vcombine.low %v1133_v56, %v1135_v1  ;;  %v3491_v57 = vcombine.high %v1133_v56, %v1135_v1  ;;  %v1116_v2 = vrot.slane %v1097_v50, 4  ;;  %3601 = vmatprep.subr.bf16.mxu1 %v5306_v14 }
 0x220   :  { %v1103_v28 = vpop.permute.xlu0 %1102  ;;  %2680 = vmatprep.subr.bf16.mxu0 %v3491_v57  ;;  %v1128_v63 = vsel %vm128_vm10, %v1116_v2, %v1117_v21 }
 0x221   :  { %v1119_v43 = vrot.slane %v1103_v28, 4  ;;  %v1101_v32 = vpop.permute.xlu1 %1100  ;;  %3612 = vmatpush1.bf16.msra.mxu1 %v5304_v24  ;;  %2681 = vmatpush1.bf16.msra.mxu0 %v5424_v5  ;;  %v1129_v14 = vsel %vm5918_vm9, %v1097_v50, %v1128_v63 }
 0x222   :  { %v1118_v8 = vrot.slane %v1101_v32, 4  ;;  %3602 = vmatprep.subr.bf16.mxu1 %v5354_v3 }
 0x224   :  { %v1130_v34 = vsel %vm128_vm10, %v1118_v8, %v1119_v43  ;;  %2598 = vmatmul.mubr.bf16.gmra.mxu1 %v5051_v26  ;;  %v1335_v31 = vpop.permute.xlu0 %1334  ;;  %v5433_v4 = vpop.f32.mrf.mxu1 }
 0x225   :  { %v1131_v42 = vsel %vm5919_vm4, %v1101_v32, %v1130_v34  ;;  %v1333_v12 = vpop.permute.xlu1 %1332  ;;  %3613 = vmatpush1.bf16.msra.mxu1 %v5352_v46  ;;  %2607 = vmatprep.mubr.bf16.mxu1 %v5059_v11  ;;  %v1349_v37 = vrot.slane %v1335_v31, 4 }
 0x226   :  { %v3486_v24 = vcombine.low %v1129_v14, %v1131_v42  ;;  %v3487_v54 = vcombine.high %v1129_v14, %v1131_v42  ;;  %v1348_v3 = vrot.slane %v1333_v12, 4  ;;  %3603 = vmatprep.subr.bf16.mxu1 %v5380_v23  ;;  %v5440_v27 = vpop.f32.mrf.mxu1 }
 0x228   :  { %v1339_v26 = vpop.permute.xlu0 %1338  ;;  %2682 = vmatprep.subr.bf16.mxu0 %v3487_v54  ;;  %v5442_v19 = vpop.f32.mrf.mxu1  ;;  %v1360_v46 = vsel %vm128_vm10, %v1348_v3, %v1349_v37  ;;  %v3966_v37 = vld [vmem:[%s5875_s2 + $0xe8] ss:$16 sps:$4 sm:$0xff]  }
 0x229   :  { %v1351_v16 = vrot.slane %v1339_v26, 4  ;;  %v1337_v36 = vpop.permute.xlu1 %1336  ;;  %3614 = vmatpush1.bf16.msra.mxu1 %v5378_v35  ;;  %2683 = vmatpush1.bf16.msra.mxu0 %v3486_v24  ;;  %v1361_v20 = vsel %vm5920_vm2, %v1333_v12, %v1360_v46  ;;  %v3964_v12 = vld [vmem:[%s5875_s2 + $0xec] ss:$16 sps:$4 sm:$0xff]  }
 0x22a   :  { %v1350_v11 = vrot.slane %v1337_v36, 4  ;;  %3604 = vmatprep.subr.bf16.mxu1 %v5394_v62  ;;  %v5447_v55 = vpop.f32.mrf.mxu1 }
 0x22c   :  { %v1362_v23 = vsel %vm128_vm10, %v1350_v11, %v1351_v16  ;;  %2608 = vmatmul.mubr.bf16.gmra.mxu1 %v5107_v10  ;;  %v1327_v58 = vpop.permute.xlu0 %1326  ;;  %v5456_v39 = vpop.f32.mrf.mxu1  ;;  %v3967_v16 = vld [vmem:[%s5875_s2 + $0x8c] ss:$16 sps:$4 sm:$0xff]  }
 0x22d   :  { %v1363_v61 = vsel %vm5921_vm5, %v1337_v36, %v1362_v23  ;;  %v1325_v6 = vpop.permute.xlu1 %1324  ;;  %3615 = vmatpush1.bf16.msra.mxu1 %v5392_v60  ;;  %2617 = vmatprep.mubr.bf16.mxu1 %v5120_v29  ;;  %v1345_v9 = vrot.slane %v1327_v58, 4 }
 0x22e   :  { %v3526_v35 = vcombine.low %v1361_v20, %v1363_v61  ;;  %v3527_v41 = vcombine.high %v1361_v20, %v1363_v61  ;;  %v1344_v62 = vrot.slane %v1325_v6, 4  ;;  %3605 = vmatprep.subr.bf16.mxu1 %v5408_v13  ;;  %v5460_v29 = vpop.f32.mrf.mxu1 }
 0x230   :  { %v1331_v7 = vpop.permute.xlu0 %1330  ;;  %2694 = vmatprep.subr.bf16.mxu0 %v3527_v41  ;;  %v1356_v15 = vsel %vm128_vm10, %v1344_v62, %v1345_v9  ;;  %v5468_v56 = vpop.f32.mrf.mxu1 }
 0x231   :  { %v1347_v10 = vrot.slane %v1331_v7, 4  ;;  %v1329_v33 = vpop.permute.xlu1 %1328  ;;  %3616 = vmatpush1.bf16.msra.mxu1 %v5406_v0  ;;  %2695 = vmatpush2.bf16.msra.mxu0 %v3526_v35  ;;  %v1357_v47 = vsel %vm5922_vm3, %v1325_v6, %v1356_v15  ;;  %v3968_v7 = vld [vmem:[%s5875_s2 + $0x88] ss:$16 sps:$4 sm:$0xff]   ;;  %v3969_v15 = vld [vmem:[%s5875_s2 + $0xac] ss:$16 sps:$4 sm:$0xff]  }
 0x232   :  { %v1346_v60 = vrot.slane %v1329_v33, 4  ;;  %3606 = vmatprep.subr.bf16.mxu1 %v3491_v57 }
 0x234   :  { %v1358_v45 = vsel %vm128_vm10, %v1346_v60, %v1347_v10  ;;  %2618 = vmatmul.mubr.bf16.gmra.mxu1 %v5164_v48  ;;  %v1319_v13 = vpop.permute.xlu0 %1318 }
 0x235   :  { %v1359_v51 = vsel %vm5923_vm7, %v1329_v33, %v1358_v45  ;;  %v1317_v18 = vpop.permute.xlu1 %1316  ;;  %3617 = vmatpush1.bf16.msra.mxu1 %v5424_v5  ;;  %2627 = vmatprep.mubr.bf16.mxu1 %v5175_v52  ;;  %v1341_v49 = vrot.slane %v1319_v13, 4  ;;  %v5471_v5 = vpop.f32.mrf.mxu1 }
 0x236   :  { %v3522_v0 = vcombine.low %v1357_v47, %v1359_v51  ;;  %v3523_v44 = vcombine.high %v1357_v47, %v1359_v51  ;;  %v1340_v25 = vrot.slane %v1317_v18, 4  ;;  %3607 = vmatprep.subr.bf16.mxu1 %v3487_v54  ;;  %v3965_v54 = vld [vmem:[%s5875_s2 + $0x68] ss:$16 sps:$4 sm:$0xff]  }
 0x237   :  { %v5478_v63 = vpop.f32.mrf.mxu1 }
 0x238   :  { %v1323_v1 = vpop.permute.xlu0 %1322  ;;  %2696 = vmatprep.subr.bf16.mxu0 %v3523_v44  ;;  %v1352_v57 = vsel %vm128_vm10, %v1340_v25, %v1341_v49 }
 0x239   :  { %v1343_v48 = vrot.slane %v1323_v1, 4  ;;  %v1321_v50 = vpop.permute.xlu1 %1320  ;;  %3618 = vmatpush1.bf16.msra.mxu1 %v3486_v24  ;;  %2697 = vmatpush2.bf16.msra.mxu0 %v3522_v0  ;;  %v1353_v2 = vsel %vm5924_vm8, %v1317_v18, %v1352_v57  ;;  %v5480_v8 = vpop.f32.mrf.mxu1 }
 0x23a   :  { %v1342_v21 = vrot.slane %v1321_v50, 4  ;;  %3608 = vmatprep.subr.bf16.mxu1 %v3527_v41 }
 0x23b   :  { %v5491_v34 = vpop.f32.mrf.mxu1 }
 0x23c   :  { %v1354_v52 = vsel %vm128_vm10, %v1342_v21, %v1343_v48  ;;  %2628 = vmatmul.mubr.bf16.gmra.mxu1 %v5207_v38  ;;  %v3958_v38 = vld [vmem:[%s5875_s2 + $0x8] ss:$16 sps:$4 sm:$0xff]  }
 0x23d   :  { %v1355_v28 = vsel %vm5925_vm12, %v1321_v50, %v1354_v52  ;;  %3619 = vmatpush2.bf16.msra.mxu1 %v3526_v35  ;;  %2637 = vmatprep.mubr.bf16.mxu1 %v5215_v22  ;;  %v3959_v22 = vld [vmem:[%s5875_s2 + $0x2c] ss:$16 sps:$4 sm:$0xff]   ;;  %v5493_v31 = vpop.f32.mrf.mxu1 }
 0x23e   :  { %v3518_v43 = vcombine.low %v1353_v2, %v1355_v28  ;;  %v3519_v32 = vcombine.high %v1353_v2, %v1355_v28  ;;  %3609 = vmatprep.subr.bf16.mxu1 %v3523_v44  ;;  %v3971_v2 = vld [vmem:[%s5875_s2 + $0xcc] ss:$16 sps:$4 sm:$0xff]  }
 0x23f   :  { %v5504_v14 = vpop.f32.mrf.mxu1 }
 0x240   :  { %2698 = vmatprep.subr.bf16.mxu0 %v3519_v32 }
 0x241   :  { %3620 = vmatpush2.bf16.msra.mxu1 %v3522_v0  ;;  %2699 = vmatpush2.bf16.msra.mxu0 %v3518_v43  ;;  %v5506_v42 = vpop.f32.mrf.mxu1 }
 0x242   :  { %3610 = vmatprep.subr.bf16.mxu1 %v3519_v32 }
 0x243   :  { %v5520_v24 = vpop.f32.mrf.mxu1 }
 0x244   :  { %2638 = vmatmul.mubr.bf16.gmra.mxu1 %v5244_v53  ;;  %2701 = vmatmul.mubr.bf16.vlgmr.msra.gmra.mxu0 %v3958_v38  ;;  %v3960_v53 = vld [vmem:[%s5875_s2 + $0x28] ss:$16 sps:$4 sm:$0xff]  }
 0x245   :  { %3621 = vmatpush2.bf16.msra.mxu1 %v3518_v43  ;;  %2647 = vmatprep.mubr.bf16.mxu1 %v5255_v17  ;;  %v3961_v17 = vld [vmem:[%s5875_s2 + $0x4c] ss:$16 sps:$4 sm:$0xff]   ;;  %v5540_v20 = vpop.permute.xlu0 %1539 }
 0x246   :  { %3537 = vmatprep.mubr.msk.bf16.mxu0 %vm2304_vm14, %v3959_v22  ;;  %v5530_v26 = vpop.permute.xlu1 %1534 }
 0x249   :  { %v5568_v57 = vpop.permute.xlu0 %1554 }
 0x24a   :  { %v5544_v41 = vpop.permute.xlu1 %1544 }
 0x24c   :  { %2648 = vmatmul.mubr.bf16.gmra.mxu1 %v5282_v30  ;;  %2711 = vmatmul.mubr.bf16.gmra.mxu0 %v3960_v53  ;;  %v3962_v30 = vld [vmem:[%s5875_s2 + $0x48] ss:$16 sps:$4 sm:$0xff]  }
 0x24d   :  { %2657 = vmatprep.mubr.bf16.mxu1 %v5290_v59  ;;  %3538 = vmatprep.mubr.msk.bf16.mxu0 %vm2304_vm14, %v3961_v17  ;;  %v3963_v59 = vld [vmem:[%s5875_s2 + $0x6c] ss:$16 sps:$4 sm:$0xff]  }
 0x24e   :  { %v5564_v49 = vpop.permute.xlu1 %1549 }
 0x252   :  { %v5581_v38 = vpop.permute.xlu1 %1559 }
 0x254   :  { %2658 = vmatmul.mubr.bf16.gmra.mxu1 %v5315_v40  ;;  %2721 = vmatmul.mubr.bf16.gmra.mxu0 %v3962_v30  ;;  %v5522_v40 = vpop.f32.mrf.mxu1 }
 0x255   :  { %3539 = vmatprep.mubr.msk.bf16.mxu0 %vm2304_vm14, %v3963_v59  ;;  %3543 = vmatprep.mubr.msk.bf16.mxu1 %vm2304_vm14, %v3964_v12 }
 0x256   :  { %v5537_v11 = vpop.f32.mrf.mxu1 }
 0x258   :  { %v5547_v62 = vpop.f32.mrf.mxu1 }
 0x25a   :  { %v5561_v18 = vpop.f32.mrf.mxu1 }
 0x25c   :  { %2731 = vmatmul.mubr.bf16.gmra.mxu0 %v3965_v54  ;;  %2771 = vmatmul.mubr.bf16.vlgmr.msra.gmra.mxu1 %v3966_v37  ;;  %v2363_v3 = vpop.f32.mrf.mxu0  ;;  %v5571_v21 = vpop.f32.mrf.mxu1 }
 0x25d   :  { %3540 = vmatprep.mubr.msk.bf16.mxu0 %vm2304_vm14, %v3967_v16  ;;  %v2364_v46 = vadd.f32 %v2363_v3, %v5530_v26 }
 0x25e   :  { %v2365_v36 = vpop.f32.mrf.mxu0  ;;  %v5585_v17 = vpop.f32.mrf.mxu1 }
 0x25f   :  { %v2366_v58 = vadd.f32 %v2365_v36, %v5530_v26  ;;  %v2477_v35 = vadd.f32 %v5433_v4, %v2364_v46 }
 0x260   :  { %v2367_v23 = vpop.f32.mrf.mxu0  ;;  %v5592_v46 = vpop.f32.mrf.mxu1 }
 0x261   :  { %v2368_v61 = vadd.f32 %v2367_v23, %v5540_v20  ;;  %v2479_v33 = vadd.f32 %v5440_v27, %v2366_v58  ;;  %v3544_v13 = vmul.f32 -1.442695, %v2477_v35  ;;  %v5599_v35 = vpop.permute.xlu0 %1564 }
 0x262   :  { %v2369_v6 = vpop.f32.mrf.mxu0 }
 0x263   :  { %v2370_v9 = vadd.f32 %v2369_v6, %v5540_v20  ;;  %v2481_v60 = vadd.f32 %v5442_v19, %v2368_v61  ;;  %v3556_v27 = vmul.f32 -1.442695, %v2479_v33  ;;  %3689 = vpow2.f32 %v3544_v13 }
 0x264   :  { %2741 = vmatmul.mubr.bf16.gmra.mxu0 %v3968_v7  ;;  %v2373_v10 = vpop.f32.mrf.mxu0 }
 0x265   :  { %3541 = vmatprep.mubr.msk.bf16.mxu0 %vm2304_vm14, %v3969_v15  ;;  %v2374_v4 = vadd.f32 %v2373_v10, %v5544_v41  ;;  %v2483_v47 = vadd.f32 %v5447_v55, %v2370_v9  ;;  %v3545_v48 = vmul.f32 -1.442695, %v2481_v60  ;;  %3691 = vpow2.f32 %v3556_v27  ;;  %v5603_v15 = vpop.f32.mrf.mxu1 }
 0x266   :  { %v2375_v45 = vpop.f32.mrf.mxu0 }
 0x267   :  { %v2376_v51 = vadd.f32 %v2375_v45, %v5544_v41  ;;  %v2487_v44 = vadd.f32 %v5456_v39, %v2374_v4  ;;  %v3557_v50 = vmul.f32 -1.442695, %v2483_v47  ;;  %v3970_v39 = vld [vmem:[%s5875_s2 + $0xa8] ss:$16 sps:$4 sm:$0xff]   ;;  %3693 = vpow2.f32 %v3545_v48 }
 0x268   :  { %v2377_v0 = vpop.f32.mrf.mxu0 }
 0x269   :  { %v2489_v25 = vadd.f32 %v5460_v29, %v2376_v51  ;;  %v2378_v1 = vadd.f32 %v2377_v0, %v5564_v49  ;;  %v3546_v29 = vmul.f32 -1.442695, %v2487_v44  ;;  %3695 = vpow2.f32 %v3557_v50 }
 0x26a   :  { %v2379_v19 = vpop.f32.mrf.mxu0 }
 0x26b   :  { %v2491_v55 = vadd.f32 %v5468_v56, %v2378_v1  ;;  %v3558_v28 = vmul.f32 -1.442695, %v2489_v25  ;;  %3697 = vpow2.f32 %v3546_v29  ;;  %v2380_v59 = vadd.f32 %v2379_v19, %v5564_v49  ;;  %v5612_v19 = vpop.f32.mrf.mxu1 }
 0x26c   :  { %2751 = vmatmul.mubr.bf16.gmra.mxu0 %v3970_v39  ;;  %v2383_v52 = vpop.f32.mrf.mxu0 }
 0x26d   :  { %3542 = vmatprep.mubr.msk.bf16.mxu0 %vm2304_vm14, %v3971_v2  ;;  %v2384_v56 = vadd.f32 %v2383_v52, %v5568_v57  ;;  %v3547_v32 = vmul.f32 -1.442695, %v2491_v55  ;;  %3699 = vpow2.f32 %v3558_v28  ;;  %v2493_v58 = vadd.f32 %v5471_v5, %v2380_v59  ;;  %v5605_v5 = vpop.permute.xlu1 %1569 }
 0x26e   :  { %v2385_v43 = vpop.f32.mrf.mxu0 }
 0x26f   :  { %v2386_v22 = vadd.f32 %v2385_v43, %v5568_v57  ;;  %v2497_v53 = vadd.f32 %v5478_v63, %v2384_v56  ;;  %3701 = vpow2.f32 %v3547_v32  ;;  %v3972_v63 = vld [vmem:[%s5875_s2 + $0xc8] ss:$16 sps:$4 sm:$0xff]   ;;  %v3559_v60 = vmul.f32 -1.442695, %v2493_v58 }
 0x270   :  { %v2387_v30 = vpop.f32.mrf.mxu0  ;;  %v3690_v7 = vpop.eup %3689 }
 0x271   :  { %v2388_v12 = vadd.f32 %v2387_v30, %v5581_v38  ;;  %v2499_v54 = vadd.f32 %v5480_v8, %v2386_v22  ;;  %v3548_v3 = vmul.f32 -1.442695, %v2497_v53  ;;  %v2897_v0 = vadd.f32 1.0, %v3690_v7  ;;  %v5618_v22 = vpop.f32.mrf.mxu1  ;;  %v5620_v59 = vpop.permute.xlu1 %1579 }
 0x272   :  { %v2389_v37 = vpop.f32.mrf.mxu0  ;;  %v3692_v45 = vpop.eup %3691 }
 0x273   :  { %v2390_v16 = vadd.f32 %v2389_v37, %v5581_v38  ;;  %v2501_v36 = vadd.f32 %v5491_v34, %v2388_v12  ;;  %3703 = vpow2.f32 %v3548_v3  ;;  %v3560_v61 = vmul.f32 -1.442695, %v2499_v54 }
 0x274   :  { %2761 = vmatmul.mubr.bf16.gmra.mxu0 %v3972_v63  ;;  %v2393_v23 = vpop.f32.mrf.mxu0  ;;  %v3694_v51 = vpop.eup %3693  ;;  %v3021_v50 = vadd.f32 1.0, %v3692_v45 }
 0x275   :  { %v2503_v8 = vadd.f32 %v5493_v31, %v2390_v16  ;;  %v3549_v6 = vmul.f32 -1.442695, %v2501_v36  ;;  %3705 = vpow2.f32 %v3560_v61  ;;  %v2394_v34 = vadd.f32 %v2393_v23, %v5599_v35  ;;  %v5626_v61 = vpop.f32.mrf.mxu1 }
 0x276   :  { %v2395_v9 = vpop.f32.mrf.mxu0  ;;  %v3696_v25 = vpop.eup %3695  ;;  %v2898_v52 = vadd.f32 1.0, %v3694_v51 }
 0x277   :  { %v3561_v10 = vmul.f32 -1.442695, %v2503_v8  ;;  %v2396_v33 = vadd.f32 %v2395_v9, %v5599_v35  ;;  %3707 = vpow2.f32 %v3549_v6  ;;  %v2507_v31 = vadd.f32 %v5504_v14, %v2394_v34 }
 0x278   :  { %v2397_v4 = vpop.f32.mrf.mxu0  ;;  %v3698_v39 = vpop.eup %3697  ;;  %v3022_v2 = vadd.f32 1.0, %v3696_v25 }
 0x279   :  { %v2398_v13 = vadd.f32 %v2397_v4, %v5605_v5  ;;  %v2509_v47 = vadd.f32 %v5506_v42, %v2396_v33  ;;  %v3550_v44 = vmul.f32 -1.442695, %v2507_v31  ;;  %3709 = vpow2.f32 %v3561_v10  ;;  %v5614_v42 = vpop.permute.xlu0 %1574  ;;  %v2540_v31 = vpop.f32.mrf.mxu1 }
 0x27a   :  { %v2399_v27 = vpop.f32.mrf.mxu0  ;;  %3711 = vpow2.f32 %v3559_v60  ;;  %v3700_v29 = vpop.eup %3699  ;;  %v2899_v53 = vadd.f32 1.0, %v3698_v39 }
 0x27b   :  { %v2400_v1 = vadd.f32 %v2399_v27, %v5605_v5  ;;  %v2511_v48 = vadd.f32 %v5520_v24, %v2398_v13  ;;  %v3562_v55 = vmul.f32 -1.442695, %v2509_v47  ;;  %3713 = vpow2.f32 %v3550_v44 }
 0x27c   :  { %v2403_v14 = vpop.f32.mrf.mxu0  ;;  %3715 = vrcp.f32 %v2897_v0  ;;  %v3702_v43 = vpop.eup %3701  ;;  %v3023_v54 = vadd.f32 1.0, %v3700_v29 }
 0x27d   :  { %v2404_v56 = vadd.f32 %v2403_v14, %v5614_v42  ;;  %v2513_v24 = vadd.f32 %v5522_v40, %v2400_v1  ;;  %v3551_v32 = vmul.f32 -1.442695, %v2511_v48  ;;  %3717 = vpow2.f32 %v3562_v55  ;;  %v5629_v34 = vpop.permute.xlu0 %1584  ;;  %v5634_v0 = vpop.permute.xlu1 %1589 }
 0x27e   :  { %v2405_v28 = vpop.f32.mrf.mxu0  ;;  %3719 = vrcp.f32 %v3021_v50  ;;  %v2900_v16 = vadd.f32 1.0, %v3702_v43 }
 0x27f   :  { %3721 = vrcp.f32 %v2898_v52  ;;  %v2517_v3 = vadd.f32 %v5537_v11, %v2404_v56  ;;  %v3563_v63 = vmul.f32 -1.442695, %v2513_v24  ;;  %v2406_v9 = vadd.f32 %v2405_v28, %v5614_v42 }
 0x280   :  { %v2407_v30 = vpop.f32.mrf.mxu0  ;;  %v3704_v12 = vpop.eup %3703  ;;  %3723 = vrcp.f32 %v3022_v2 }
 0x281   :  { %v2408_v37 = vadd.f32 %v2407_v30, %v5620_v59  ;;  %3725 = vpow2.f32 %v3551_v32  ;;  %v2901_v8 = vadd.f32 1.0, %v3704_v12  ;;  %v3552_v7 = vmul.f32 -1.442695, %v2517_v3  ;;  %v5640_v50 = vpop.permute.xlu0 %1594  ;;  %v5652_v12 = vpop.permute.xlu1 %1599 }
 0x282   :  { %v2409_v36 = vpop.f32.mrf.mxu0  ;;  %v3706_v40 = vpop.eup %3705  ;;  %3727 = vrcp.f32 %v2899_v53  ;;  %v2519_v51 = vadd.f32 %v5547_v62, %v2406_v9 }
 0x283   :  { %v2410_v23 = vadd.f32 %v2409_v36, %v5620_v59  ;;  %v2521_v58 = vadd.f32 %v5561_v18, %v2408_v37  ;;  %3729 = vrcp.f32 %v3023_v54  ;;  %v3025_v10 = vadd.f32 1.0, %v3706_v40  ;;  %v2542_v62 = vpop.f32.mrf.mxu1 }
 0x284   :  { %v2413_v6 = vpop.f32.mrf.mxu0  ;;  %v3708_v11 = vpop.eup %3707  ;;  %3731 = vrcp.f32 %v2900_v16  ;;  %v3564_v52 = vmul.f32 -1.442695, %v2519_v51 }
 0x285   :  { %v2523_v4 = vadd.f32 %v5571_v21, %v2410_v23  ;;  %v2414_v60 = vadd.f32 %v2413_v6, %v5629_v34  ;;  %3733 = vpow2.f32 %v3563_v63  ;;  %v3553_v18 = vmul.f32 -1.442695, %v2521_v58  ;;  %v2546_v3 = vpop.f32.mrf.mxu1 }
 0x286   :  { %v2415_v33 = vpop.f32.mrf.mxu0  ;;  %v3710_v45 = vpop.eup %3709  ;;  %v2902_v13 = vadd.f32 1.0, %v3708_v11  ;;  %3735 = vrcp.f32 %v2901_v8 }
 0x287   :  { %v5636_v27 = vpop.eup %3711  ;;  %3737 = vpow2.f32 %v3552_v7  ;;  %v3565_v21 = vmul.f32 -1.442695, %v2523_v4  ;;  %v2527_v48 = vadd.f32 %v5585_v17, %v2414_v60  ;;  %v3026_v55 = vadd.f32 1.0, %v3710_v45  ;;  %v5665_v7 = vpop.permute.xlu0 %1604 }
 0x288   :  { %v2417_v47 = vpop.f32.mrf.mxu0  ;;  %v3714_v25 = vpop.eup %3713  ;;  %3739 = vrcp.f32 %v3025_v10  ;;  %v2416_v32 = vadd.f32 %v2415_v33, %v5629_v34 }
 0x289   :  { %v2418_v44 = vadd.f32 %v2417_v47, %v5634_v0  ;;  %v5642_v14 = vpop.eup %3715  ;;  %3741 = vpow2.f32 %v3553_v18  ;;  %v2903_v28 = vadd.f32 1.0, %v3714_v25  ;;  %v3554_v53 = vmul.f32 -1.442695, %v2527_v48  ;;  %v2548_v60 = vpop.f32.mrf.mxu1 }
 0x28a   :  { %v2419_v1 = vpop.f32.mrf.mxu0  ;;  %v3718_v39 = vpop.eup %3717  ;;  %3743 = vrcp.f32 %v2902_v13  ;;  %v2529_v9 = vadd.f32 %v5592_v46, %v2416_v32 }
 0x28b   :  { %v5644_v2 = vpop.eup %3719  ;;  %v2420_v56 = vadd.f32 %v2419_v1, %v5634_v0  ;;  %v2531_v43 = vadd.f32 %v5603_v15, %v2418_v44  ;;  %3745 = vpow2.f32 %v3565_v21  ;;  %v3027_v37 = vadd.f32 1.0, %v3718_v39  ;;  %v5672_v21 = vpop.permute.xlu1 %1609 }
 0x28c   :  { %v2423_v29 = vpop.f32.mrf.mxu0  ;;  %v5649_v24 = vpop.eup %3721  ;;  %3747 = vrcp.f32 %v3026_v55  ;;  %v3566_v1 = vmul.f32 -1.442695, %v2529_v9 }
 0x28d   :  { %v2424_v17 = vadd.f32 %v2423_v29, %v5640_v50  ;;  %v5654_v54 = vpop.eup %3723  ;;  %3749 = vpow2.f32 %v3564_v52  ;;  %v2533_v23 = vadd.f32 %v5612_v19, %v2420_v56  ;;  %v3555_v58 = vmul.f32 -1.442695, %v2531_v43  ;;  %v2550_v48 = vpop.f32.mrf.mxu1 }
 0x28e   :  { %v2425_v30 = vpop.f32.mrf.mxu0  ;;  %v3726_v16 = vpop.eup %3725  ;;  %3751 = vrcp.f32 %v2903_v28 }
 0x28f   :  { %v2426_v15 = vadd.f32 %v2425_v30, %v5640_v50  ;;  %v2537_v40 = vadd.f32 %v5618_v22, %v2424_v17  ;;  %v5658_v63 = vpop.eup %3727  ;;  %3753 = vpow2.f32 %v3554_v53  ;;  %v2904_v33 = vadd.f32 1.0, %v3726_v16  ;;  %v2552_v30 = vpop.f32.mrf.mxu1 }
 0x290   :  { %v2427_v36 = vpop.f32.mrf.mxu0  ;;  %v5662_v6 = vpop.eup %3729  ;;  %3755 = vrcp.f32 %v3027_v37  ;;  %v3567_v46 = vmul.f32 -1.442695, %v2533_v23  ;;  %v3024_v17 = vadd.f32 1.0, %v5636_v27  ;;  %v2938_v27 = vld [vmem:[%s5874_s1 + $0x10] sm:$0xff] }
 0x291   :  { %v2428_v8 = vadd.f32 %v2427_v36, %v5652_v12  ;;  %v5667_v10 = vpop.eup %3731  ;;  %v2539_v18 = vadd.f32 %v5626_v61, %v2426_v15  ;;  %3757 = vtanh.f32 %v2537_v40 }
 0x292   :  { %v2429_v11 = vpop.f32.mrf.mxu0  ;;  %v3734_v19 = vpop.eup %3733  ;;  %3759 = vpow2.f32 %v3555_v58 }
 0x293   :  { %v2541_v22 = vadd.f32 %v2540_v31, %v2428_v8  ;;  %v2430_v4 = vadd.f32 %v2429_v11, %v5652_v12  ;;  %v3736_v13 = vpop.eup %3735  ;;  %v3028_v28 = vadd.f32 1.0, %v3734_v19 }
 0x294   :  { %v2433_v45 = vpop.f32.mrf.mxu0  ;;  %v3738_v51 = vpop.eup %3737 }
 0x295   :  { %v2434_v47 = vadd.f32 %v2433_v45, %v5665_v7  ;;  %3761 = vtanh.f32 %v2541_v22  ;;  %v2543_v44 = vadd.f32 %v2542_v62, %v2430_v4  ;;  %v3740_v31 = vpop.eup %3739  ;;  %v2905_v8 = vadd.f32 1.0, %v3738_v51  ;;  %v3061_v22 = vld [vmem:[%s5874_s1 + $0x8] sm:$0xff] }
 0x296   :  { %v2435_v25 = vpop.f32.mrf.mxu0  ;;  %3763 = vrcp.f32 %v2904_v33  ;;  %v3742_v55 = vpop.eup %3741 }
 0x297   :  { %3765 = vtanh.f32 %v2539_v18  ;;  %v2436_v39 = vadd.f32 %v2435_v25, %v5665_v7  ;;  %v2547_v52 = vadd.f32 %v2546_v3, %v2434_v47  ;;  %v3744_v29 = vpop.eup %3743  ;;  %v2937_v3 = vld [vmem:[%s5874_s1] sm:$0xff]  ;;  %v2906_v33 = vadd.f32 1.0, %v3742_v55 }
 0x298   :  { %v2437_v61 = vpop.f32.mrf.mxu0  ;;  %3767 = vpow2.f32 %v3567_v46  ;;  %v3746_v43 = vpop.eup %3745  ;;  %v2941_v9 = vmul.f32 %v3736_v13, %v2937_v3  ;;  %v3062_v46 = vld [vmem:[%s5874_s1 + $0x18] sm:$0xff] }
 0x299   :  { %v2438_v56 = vadd.f32 %v2437_v61, %v5672_v21  ;;  %3769 = vtanh.f32 %v2543_v44  ;;  %v3748_v37 = vpop.eup %3747  ;;  %v2549_v16 = vadd.f32 %v2548_v60, %v2436_v39  ;;  %v2942_v60 = vmul.f32 %v3744_v29, %v2938_v27 }
 0x29a   :  { %v2439_v62 = vpop.f32.mrf.mxu0  ;;  %3771 = vpow2.f32 %v3566_v1  ;;  %v3750_v36 = vpop.eup %3749  ;;  %v3065_v44 = vmul.f32 %v3740_v31, %v3061_v22  ;;  %v3030_v1 = vadd.f32 1.0, %v3746_v43  ;;  %v3066_v39 = vmul.f32 %v3748_v37, %v3062_v46 }
 0x29b   :  { %v2551_v32 = vadd.f32 %v2550_v48, %v2438_v56  ;;  %v2440_v53 = vadd.f32 %v2439_v62, %v5672_v21  ;;  %3773 = vtanh.f32 %v2547_v52  ;;  %v3752_v15 = vpop.eup %3751  ;;  %v3029_v45 = vadd.f32 1.0, %v3750_v36 }
 0x29c   :  { %3775 = vrcp.f32 %v3028_v28  ;;  %v3754_v23 = vpop.eup %3753 }
 0x29d   :  { %3777 = vtanh.f32 %v2551_v32  ;;  %v2553_v40 = vadd.f32 %v2552_v30, %v2440_v53  ;;  %v3756_v58 = vpop.eup %3755  ;;  %v2907_v29 = vadd.f32 1.0, %v3754_v23 }
 0x29e   :  { %3779 = vrcp.f32 %v3024_v17  ;;  %v3758_v11 = vpop.eup %3757 }
 0x29f   :  { %3781 = vtanh.f32 %v2549_v16  ;;  %v3760_v4 = vpop.eup %3759  ;;  %v2945_v19 = vmul.f32 %v3758_v11, %v5642_v14  ;;  %v2939_v14 = vld [vmem:[%s5874_s1 + $0x20] sm:$0xff] }
 0x2a0   :  { %3783 = vtanh.f32 %v2553_v40  ;;  %v2943_v62 = vmul.f32 %v3752_v15, %v2939_v14  ;;  %v2908_v17 = vadd.f32 1.0, %v3760_v4 }
 0x2a1   :  { %3785 = vrcp.f32 %v2905_v8  ;;  %v2949_v51 = vadd.f32 %v2945_v19, %v2941_v9 }
 0x2a2   :  { %v3762_v18 = vpop.eup %3761  ;;  %3787 = vrcp.f32 %v2906_v33 }
 0x2a3   :  { %v3764_v47 = vpop.eup %3763  ;;  %v2946_v13 = vmul.f32 %v3762_v18, %v5649_v24  ;;  %2953 = vst [vmem:[#allocation6] sm:$0xff] %v2949_v51  ;;  %3789 = vtanh.f32 %v2949_v51  ;;  %v2940_v24 = vld [vmem:[%s5874_s1 + $0x30] sm:$0xff] }
 0x2a4   :  { %v3766_v25 = vpop.eup %3765  ;;  %3791 = vrcp.f32 %v3029_v45  ;;  %v2944_v30 = vmul.f32 %v3764_v47, %v2940_v24 }
 0x2a5   :  { %v3768_v48 = vpop.eup %3767  ;;  %v2950_v55 = vadd.f32 %v2946_v13, %v2942_v60  ;;  %v3069_v61 = vmul.f32 %v3766_v25, %v5644_v2  ;;  %v3063_v2 = vld [vmem:[%s5874_s1 + $0x28] sm:$0xff] }
 0x2a6   :  { %v3770_v52 = vpop.eup %3769  ;;  %v3067_v23 = vmul.f32 %v3756_v58, %v3063_v2  ;;  %v3032_v8 = vadd.f32 1.0, %v3768_v48 }
 0x2a7   :  { %v3772_v31 = vpop.eup %3771  ;;  %2954 = vst [vmem:[#allocation6 + $0x10] sm:$0xff] %v2950_v55  ;;  %3793 = vtanh.f32 %v2950_v55  ;;  %v3073_v28 = vadd.f32 %v3069_v61, %v3065_v44  ;;  %v3070_v56 = vmul.f32 %v3770_v52, %v5654_v54  ;;  %v3064_v54 = vld [vmem:[%s5874_s1 + $0x38] sm:$0xff] }
 0x2a8   :  { %v3774_v43 = vpop.eup %3773  ;;  %3795 = vrcp.f32 %v3030_v1  ;;  %v3031_v36 = vadd.f32 1.0, %v3772_v31 }
 0x2a9   :  { %v3776_v32 = vpop.eup %3775  ;;  %3077 = vst [vmem:[#allocation6 + $0x8] sm:$0xff] %v3073_v28  ;;  %3797 = vtanh.f32 %v3073_v28  ;;  %v3074_v53 = vadd.f32 %v3070_v56, %v3066_v39  ;;  %v2947_v37 = vmul.f32 %v3774_v43, %v5658_v63 }
 0x2aa   :  { %v3778_v16 = vpop.eup %3777  ;;  %3799 = vrcp.f32 %v2907_v29  ;;  %v3068_v11 = vmul.f32 %v3776_v32, %v3064_v54 }
 0x2ab   :  { %v3780_v3 = vpop.eup %3779  ;;  %3078 = vst [vmem:[#allocation6 + $0x18] sm:$0xff] %v3074_v53  ;;  %3801 = vtanh.f32 %v3074_v53  ;;  %v2948_v15 = vmul.f32 %v3778_v16, %v5667_v10  ;;  %v2951_v40 = vadd.f32 %v2947_v37, %v2943_v62 }
 0x2ac   :  { %v3782_v27 = vpop.eup %3781  ;;  %3803 = vrcp.f32 %v2908_v17 }
 0x2ad   :  { %v2952_v9 = vadd.f32 %v2948_v15, %v2944_v30  ;;  %2955 = vst [vmem:[#allocation6 + $0x20] sm:$0xff] %v2951_v40  ;;  %3805 = vtanh.f32 %v2951_v40  ;;  %v3071_v63 = vmul.f32 %v3782_v27, %v5662_v6  ;;  %v3784_v33 = vpop.eup %3783 }
 0x2ae   :  { %3807 = vrcp.f32 %v3031_v36  ;;  %v3072_v4 = vmul.f32 %v3784_v33, %v3780_v3  ;;  %v3786_v60 = vpop.eup %3785 }
 0x2af   :  { %2956 = vst [vmem:[#allocation6 + $0x30] sm:$0xff] %v2952_v9  ;;  %3809 = vtanh.f32 %v2952_v9  ;;  %v3075_v22 = vadd.f32 %v3071_v63, %v3067_v23  ;;  %v3788_v10 = vpop.eup %3787 }
 0x2b0   :  { %3811 = vrcp.f32 %v3032_v8  ;;  %v3076_v58 = vadd.f32 %v3072_v4, %v3068_v11  ;;  %v3790_v19 = vpop.eup %3789 }
 0x2b1   :  { %3079 = vst [vmem:[#allocation6 + $0x28] sm:$0xff] %v3075_v22  ;;  %3813 = vtanh.f32 %v3075_v22  ;;  %v3792_v18 = vpop.eup %3791  ;;  %v2961_v45 = vmul.f32 %v3790_v19, %v3786_v60 }
 0x2b2   :  { %3080 = vst [vmem:[#allocation6 + $0x38] sm:$0xff] %v3076_v58  ;;  %3815 = vtanh.f32 %v3076_v58 }
 0x2b3   :  { %2965 = vst [vmem:[#allocation4] sm:$0xff] %v2961_v45 }
 0x2b4   :  { %v3794_v46 = vpop.eup %3793 }
 0x2b5   :  { %v3796_v6 = vpop.eup %3795  ;;  %v2962_v47 = vmul.f32 %v3794_v46, %v3788_v10 }
 0x2b6   :  { %v3798_v13 = vpop.eup %3797 }
 0x2b7   :  { %v3800_v51 = vpop.eup %3799  ;;  %2966 = vst [vmem:[#allocation4 + $0x10] sm:$0xff] %v2962_v47  ;;  %v3085_v44 = vmul.f32 %v3798_v13, %v3792_v18 }
 0x2b8   :  { %v3802_v25 = vpop.eup %3801 }
 0x2b9   :  { %v3804_v1 = vpop.eup %3803  ;;  %3089 = vst [vmem:[#allocation4 + $0x8] sm:$0xff] %v3085_v44  ;;  %v3086_v14 = vmul.f32 %v3802_v25, %v3796_v6 }
 0x2ba   :  { %v3806_v48 = vpop.eup %3805 }
 0x2bb   :  { %v3808_v55 = vpop.eup %3807  ;;  %3090 = vst [vmem:[#allocation4 + $0x18] sm:$0xff] %v3086_v14  ;;  %v2963_v61 = vmul.f32 %v3806_v48, %v3800_v51 }
 0x2bc   :  { %v3810_v39 = vpop.eup %3809 }
 0x2bd   :  { %v3812_v52 = vpop.eup %3811  ;;  %v2964_v29 = vmul.f32 %v3810_v39, %v3804_v1  ;;  %2967 = vst [vmem:[#allocation4 + $0x20] sm:$0xff] %v2963_v61 }
 0x2be   :  { %v3814_v24 = vpop.eup %3813 }
 0x2bf   :  { %2968 = vst [vmem:[#allocation4 + $0x30] sm:$0xff] %v2964_v29  ;;  %v3087_v31 = vmul.f32 %v3814_v24, %v3808_v55  ;;  %v3816_v28 = vpop.eup %3815 }
 0x2c0   :  { %v3088_v56 = vmul.f32 %v3816_v28, %v3812_v52 }
 0x2c1   :  { %3091 = vst [vmem:[#allocation4 + $0x28] sm:$0xff] %v3087_v31 }
 0x2c2   :  { %3092 = vst [vmem:[#allocation4 + $0x38] sm:$0xff] %v3088_v56 }
 0x2dc   :  { %v2589_v62 = vpop.f32.mrf.mxu1 }
 0x2dd   :  { %v2590_v33 = vadd.f32 %v2589_v62, %v5530_v26 }
 0x2de   :  { %v2591_v43 = vpop.f32.mrf.mxu1 }
 0x2df   :  { %v2592_v60 = vadd.f32 %v2591_v43, %v5530_v26 }
 0x2e0   :  { %v2593_v17 = vpop.f32.mrf.mxu1 }
 0x2e1   :  { %v2594_v18 = vadd.f32 %v2593_v17, %v5540_v20 }
 0x2e2   :  { %v2595_v2 = vpop.f32.mrf.mxu1 }
 0x2e3   :  { %v2596_v13 = vadd.f32 %v2595_v2, %v5540_v20 }
 0x2e4   :  { %v2599_v32 = vpop.f32.mrf.mxu1 }
 0x2e5   :  { %v2600_v26 = vadd.f32 %v2599_v32, %v5544_v41 }
 0x2e6   :  { %v2601_v53 = vpop.f32.mrf.mxu1 }
 0x2e7   :  { %v2602_v39 = vadd.f32 %v2601_v53, %v5544_v41 }
 0x2e8   :  { %v2603_v30 = vpop.f32.mrf.mxu1 }
 0x2e9   :  { %v2604_v31 = vadd.f32 %v2603_v30, %v5564_v49 }
 0x2ea   :  { %v2605_v37 = vpop.f32.mrf.mxu1 }
 0x2eb   :  { %v2606_v17 = vadd.f32 %v2605_v37, %v5564_v49 }
 0x2ec   :  { %v2609_v16 = vpop.f32.mrf.mxu1 }
 0x2ee   :  { %v5709_v36 = vpop.f32.mrf.mxu1 }
 0x2ef   :  { %v2612_v49 = vadd.f32 %v5709_v36, %v5568_v57 }
 0x2f0   :  { %v5711_v54 = vpop.f32.mrf.mxu1 }
 0x2f2   :  { %v5713_v3 = vpop.f32.mrf.mxu1 }
 0x2f4   :  { %v5715_v15 = vpop.f32.mrf.mxu1 }
 0x2f6   :  { %v5717_v40 = vpop.f32.mrf.mxu1 }
 0x2f8   :  { %v5719_v23 = vpop.f32.mrf.mxu1 }
 0x2fa   :  { %v5721_v27 = vpop.f32.mrf.mxu1 }
 0x2fc   :  { %v5723_v8 = vpop.f32.mrf.mxu1 }
 0x2fe   :  { %v5725_v9 = vpop.f32.mrf.mxu1 }
 0x300   :  { %v5727_v63 = vpop.f32.mrf.mxu1 }
 0x302   :  { %v5729_v11 = vpop.f32.mrf.mxu1 }
 0x304   :  { %v5732_v22 = vpop.f32.mrf.mxu1  ;;  %v2702_v4 = vpop.f32.mrf.mxu0 }
 0x305   :  { %v2703_v10 = vadd.f32 %v2702_v4, %v2590_v33  ;;  %v2610_v33 = vadd.f32 %v2609_v16, %v5568_v57 }
 0x306   :  { %v5735_v58 = vpop.f32.mrf.mxu1  ;;  %v2704_v19 = vpop.f32.mrf.mxu0 }
 0x307   :  { %v3568_v45 = vmul.f32 -1.442695, %v2703_v10  ;;  %v2705_v46 = vadd.f32 %v2704_v19, %v2592_v60 }
 0x308   :  { %v5738_v6 = vpop.f32.mrf.mxu1  ;;  %v2706_v47 = vpop.f32.mrf.mxu0 }
 0x309   :  { %3817 = vpow2.f32 %v3568_v45  ;;  %v3584_v51 = vmul.f32 -1.442695, %v2705_v46  ;;  %v2707_v44 = vadd.f32 %v2706_v47, %v2594_v18  ;;  %v2614_v47 = vadd.f32 %v5711_v54, %v5581_v38 }
 0x30a   :  { %v5741_v25 = vpop.f32.mrf.mxu1  ;;  %v2708_v1 = vpop.f32.mrf.mxu0  ;;  %v2620_v54 = vadd.f32 %v5715_v15, %v5599_v35  ;;  %v2624_v15 = vadd.f32 %v5719_v23, %v5605_v5 }
 0x30b   :  { %3819 = vpow2.f32 %v3584_v51  ;;  %v3569_v14 = vmul.f32 -1.442695, %v2707_v44  ;;  %v2709_v48 = vadd.f32 %v2708_v1, %v2596_v13 }
 0x30c   :  { %v5744_v55 = vpop.f32.mrf.mxu1  ;;  %v2712_v61 = vpop.f32.mrf.mxu0 }
 0x30d   :  { %3821 = vpow2.f32 %v3569_v14  ;;  %v3585_v52 = vmul.f32 -1.442695, %v2709_v48  ;;  %v2713_v29 = vadd.f32 %v2712_v61, %v2600_v26 }
 0x30e   :  { %v5747_v20 = vpop.f32.mrf.mxu1  ;;  %v2714_v24 = vpop.f32.mrf.mxu0 }
 0x30f   :  { %3823 = vpow2.f32 %v3585_v52  ;;  %v3570_v28 = vmul.f32 -1.442695, %v2713_v29  ;;  %v2715_v56 = vadd.f32 %v2714_v24, %v2602_v39  ;;  %v2616_v39 = vadd.f32 %v5713_v3, %v5581_v38 }
 0x310   :  { %v5750_v62 = vpop.f32.mrf.mxu1  ;;  %v2716_v43 = vpop.f32.mrf.mxu0  ;;  %v2622_v38 = vadd.f32 %v5717_v40, %v5599_v35 }
 0x311   :  { %3825 = vpow2.f32 %v3570_v28  ;;  %v3586_v2 = vmul.f32 -1.442695, %v2715_v56  ;;  %v2717_v32 = vadd.f32 %v2716_v43, %v2604_v31 }
 0x312   :  { %v5753_v41 = vpop.f32.mrf.mxu1  ;;  %v2718_v53 = vpop.f32.mrf.mxu0 }
 0x313   :  { %3827 = vpow2.f32 %v3586_v2  ;;  %v3571_v4 = vmul.f32 -1.442695, %v2717_v32  ;;  %v2719_v60 = vadd.f32 %v2718_v53, %v2606_v17 }
 0x314   :  { %v2659_v30 = vpop.f32.mrf.mxu1  ;;  %v2722_v10 = vpop.f32.mrf.mxu0 }
 0x315   :  { %3829 = vpow2.f32 %v3571_v4  ;;  %v3587_v19 = vmul.f32 -1.442695, %v2719_v60  ;;  %v2723_v18 = vadd.f32 %v2722_v10, %v2610_v33  ;;  %v2660_v28 = vadd.f32 %v2659_v30, %v5665_v7 }
 0x316   :  { %v3818_v45 = vpop.eup %3817  ;;  %v2661_v37 = vpop.f32.mrf.mxu1 }
 0x317   :  { %v2724_v46 = vpop.f32.mrf.mxu0  ;;  %v3145_v13 = vadd.f32 1.0, %v3818_v45  ;;  %3831 = vpow2.f32 %v3587_v19  ;;  %v3572_v16 = vmul.f32 -1.442695, %v2723_v18  ;;  %v2662_v19 = vadd.f32 %v2661_v37, %v5665_v7 }
 0x318   :  { %v3820_v51 = vpop.eup %3819  ;;  %v2725_v44 = vadd.f32 %v2724_v46, %v2612_v49  ;;  %v2663_v1 = vpop.f32.mrf.mxu1 }
 0x319   :  { %v2726_v26 = vpop.f32.mrf.mxu0  ;;  %3833 = vrcp.f32 %v3145_v13  ;;  %v3272_v14 = vadd.f32 1.0, %v3820_v51  ;;  %v2626_v13 = vadd.f32 %v5721_v27, %v5605_v5  ;;  %v2630_v5 = vadd.f32 %v5723_v8, %v5614_v42 }
 0x31a   :  { %v2727_v48 = vadd.f32 %v2726_v26, %v2614_v47  ;;  %v3822_v61 = vpop.eup %3821  ;;  %3835 = vpow2.f32 %v3572_v16  ;;  %v3588_v57 = vmul.f32 -1.442695, %v2725_v44  ;;  %v5762_v36 = vpop.f32.mrf.mxu1  ;;  %v2664_v44 = vadd.f32 %v2663_v1, %v5672_v21 }
 0x31b   :  { %v2728_v52 = vpop.f32.mrf.mxu0  ;;  %3837 = vrcp.f32 %v3272_v14  ;;  %v3146_v29 = vadd.f32 1.0, %v3822_v61  ;;  %v2632_v1 = vadd.f32 %v5725_v9, %v5614_v42  ;;  %v2634_v8 = vadd.f32 %v5727_v63, %v5620_v59 }
 0x31c   :  { %v3573_v24 = vmul.f32 -1.442695, %v2727_v48  ;;  %v3824_v31 = vpop.eup %3823  ;;  %3839 = vpow2.f32 %v3588_v57  ;;  %v2729_v56 = vadd.f32 %v2728_v52, %v2616_v39  ;;  %v2772_v17 = vpop.f32.mrf.mxu1  ;;  %v2636_v9 = vadd.f32 %v5729_v11, %v5620_v59 }
 0x31d   :  { %v2732_v43 = vpop.f32.mrf.mxu0  ;;  %3841 = vrcp.f32 %v3146_v29  ;;  %v3273_v3 = vadd.f32 1.0, %v3824_v31  ;;  %v2773_v18 = vadd.f32 %v2772_v17, %v2660_v28  ;;  %v2640_v63 = vadd.f32 %v5732_v22, %v5629_v34 }
 0x31e   :  { %v2733_v2 = vadd.f32 %v2732_v43, %v2620_v54  ;;  %v3826_v32 = vpop.eup %3825  ;;  %3843 = vpow2.f32 %v3573_v24  ;;  %v3589_v53 = vmul.f32 -1.442695, %v2729_v56  ;;  %v2774_v35 = vpop.f32.mrf.mxu1  ;;  %v2666_v56 = vadd.f32 %v5762_v36, %v5672_v21 }
 0x31f   :  { %v2734_v33 = vpop.f32.mrf.mxu0  ;;  %3845 = vrcp.f32 %v3273_v3  ;;  %v3147_v4 = vadd.f32 1.0, %v3826_v32  ;;  %v2775_v7 = vadd.f32 %v2774_v35, %v2662_v19  ;;  %v2642_v59 = vadd.f32 %v5735_v58, %v5629_v34 }
 0x320   :  { %v3574_v60 = vmul.f32 -1.442695, %v2733_v2  ;;  %v2735_v30 = vadd.f32 %v2734_v33, %v2622_v38  ;;  %v3828_v10 = vpop.eup %3827  ;;  %3847 = vpow2.f32 %v3589_v53  ;;  %v2776_v37 = vpop.f32.mrf.mxu1  ;;  %v2644_v35 = vadd.f32 %v5738_v6, %v5634_v0 }
 0x321   :  { %v2736_v40 = vpop.f32.mrf.mxu0  ;;  %3849 = vrcp.f32 %v3147_v4  ;;  %v3274_v45 = vadd.f32 1.0, %v3828_v10  ;;  %v2777_v27 = vadd.f32 %v2776_v37, %v2664_v44  ;;  %v2646_v34 = vadd.f32 %v5741_v25, %v5634_v0 }
 0x322   :  { %v2737_v49 = vadd.f32 %v2736_v40, %v2624_v15  ;;  %v3830_v46 = vpop.eup %3829  ;;  %3851 = vpow2.f32 %v3574_v60  ;;  %v3590_v23 = vmul.f32 -1.442695, %v2735_v30  ;;  %v2778_v24 = vpop.f32.mrf.mxu1  ;;  %v2650_v25 = vadd.f32 %v5744_v55, %v5640_v50 }
 0x323   :  { %v2738_v47 = vpop.f32.mrf.mxu0  ;;  %3853 = vrcp.f32 %v3274_v45  ;;  %v3148_v16 = vadd.f32 1.0, %v3830_v46  ;;  %v2779_v32 = vadd.f32 %v2778_v24, %v2666_v56  ;;  %v2654_v55 = vadd.f32 %v5750_v62, %v5652_v12  ;;  %v3582_v62 = vld [vmem:[%s5874_s1 + $0x60] sm:$0xff] }
 0x324   :  { %v3832_v51 = vpop.eup %3831  ;;  %3855 = vtanh.f32 %v2773_v18  ;;  %v3575_v48 = vmul.f32 -1.442695, %v2737_v49  ;;  %v2739_v61 = vadd.f32 %v2738_v47, %v2626_v13 }
 0x325   :  { %v2742_v26 = vpop.f32.mrf.mxu0  ;;  %3857 = vrcp.f32 %v3148_v16  ;;  %v3275_v14 = vadd.f32 1.0, %v3832_v51 }
 0x326   :  { %v5775_v39 = vpop.eup %3833  ;;  %3859 = vpow2.f32 %v3590_v23  ;;  %v3591_v43 = vmul.f32 -1.442695, %v2739_v61  ;;  %v2743_v17 = vadd.f32 %v2742_v26, %v2630_v5 }
 0x327   :  { %v2744_v57 = vpop.f32.mrf.mxu0  ;;  %v3836_v52 = vpop.eup %3835  ;;  %3861 = vrcp.f32 %v3275_v14 }
 0x328   :  { %v5779_v54 = vpop.eup %3837  ;;  %v3149_v29 = vadd.f32 1.0, %v3836_v52  ;;  %3863 = vtanh.f32 %v2775_v7  ;;  %v2745_v15 = vadd.f32 %v2744_v57, %v2632_v1  ;;  %v3576_v60 = vmul.f32 -1.442695, %v2743_v17 }
 0x329   :  { %v2746_v31 = vpop.f32.mrf.mxu0  ;;  %v3840_v28 = vpop.eup %3839  ;;  %3865 = vpow2.f32 %v3575_v48 }
 0x32a   :  { %v5785_v38 = vpop.eup %3841  ;;  %3867 = vrcp.f32 %v3149_v29  ;;  %v3276_v3 = vadd.f32 1.0, %v3840_v28  ;;  %v2747_v36 = vadd.f32 %v2746_v31, %v2634_v8  ;;  %v3592_v40 = vmul.f32 -1.442695, %v2745_v15 }
 0x32b   :  { %v2748_v2 = vpop.f32.mrf.mxu0  ;;  %v3844_v42 = vpop.eup %3843  ;;  %3869 = vtanh.f32 %v2777_v27  ;;  %v2652_v31 = vadd.f32 %v5747_v20, %v5640_v50  ;;  %v2656_v8 = vadd.f32 %v5753_v41, %v5652_v12 }
 0x32c   :  { %v5791_v53 = vpop.eup %3845  ;;  %3871 = vrcp.f32 %v3276_v3  ;;  %v3150_v21 = vadd.f32 1.0, %v3844_v42  ;;  %v2749_v30 = vadd.f32 %v2748_v2, %v2636_v9  ;;  %v3577_v46 = vmul.f32 -1.442695, %v2747_v36 }
 0x32d   :  { %v2752_v33 = vpop.f32.mrf.mxu0  ;;  %v3848_v4 = vpop.eup %3847  ;;  %3873 = vpow2.f32 %v3591_v43 }
 0x32e   :  { %v5795_v10 = vpop.eup %3849  ;;  %3875 = vrcp.f32 %v3150_v21  ;;  %v3277_v11 = vadd.f32 1.0, %v3848_v4  ;;  %v2753_v45 = vadd.f32 %v2752_v33, %v2640_v63  ;;  %v3593_v58 = vmul.f32 -1.442695, %v2749_v30 }
 0x32f   :  { %v2754_v19 = vpop.f32.mrf.mxu0  ;;  %v3852_v18 = vpop.eup %3851  ;;  %3877 = vtanh.f32 %v2779_v32 }
 0x330   :  { %v5801_v49 = vpop.eup %3853  ;;  %3879 = vrcp.f32 %v3277_v11  ;;  %v3151_v22 = vadd.f32 1.0, %v3852_v18  ;;  %v2755_v23 = vadd.f32 %v2754_v19, %v2642_v59  ;;  %v3578_v7 = vmul.f32 -1.442695, %v2753_v45 }
 0x331   :  { %v2756_v47 = vpop.f32.mrf.mxu0  ;;  %v3856_v13 = vpop.eup %3855  ;;  %3881 = vpow2.f32 %v3576_v60  ;;  %v3598_v60 = vld [vmem:[%s5874_s1 + $0x68] sm:$0xff] }
 0x332   :  { %v5805_v16 = vpop.eup %3857  ;;  %3883 = vrcp.f32 %v3151_v22  ;;  %v2757_v6 = vadd.f32 %v2756_v47, %v2644_v35  ;;  %v3594_v48 = vmul.f32 -1.442695, %v2755_v23  ;;  %v3196_v4 = vmul.f32 %v3856_v13, %v5795_v10  ;;  %v3583_v10 = vld [vmem:[%s5874_s1 + $0x70] sm:$0xff] }
 0x333   :  { %v2758_v51 = vpop.f32.mrf.mxu0  ;;  %v3860_v44 = vpop.eup %3859  ;;  %3885 = vpow2.f32 %v3592_v40 }
 0x334   :  { %v2759_v37 = vadd.f32 %v2758_v51, %v2646_v34  ;;  %v5807_v26 = vpop.eup %3861  ;;  %v3278_v14 = vadd.f32 1.0, %v3860_v44  ;;  %3887 = vpow2.f32 %v3577_v46  ;;  %v3579_v52 = vmul.f32 -1.442695, %v2757_v6  ;;  %v3599_v44 = vld [vmem:[%s5874_s1 + $0x78] sm:$0xff] }
 0x335   :  { %v2762_v61 = vpop.f32.mrf.mxu0  ;;  %v3864_v57 = vpop.eup %3863  ;;  %3889 = vpow2.f32 %v3593_v58 }
 0x336   :  { %v3866_v0 = vpop.eup %3865  ;;  %3891 = vrcp.f32 %v3278_v14  ;;  %v3595_v29 = vmul.f32 -1.442695, %v2759_v37  ;;  %v2763_v28 = vadd.f32 %v2762_v61, %v2650_v25  ;;  %v3322_v45 = vmul.f32 %v3864_v57, %v5801_v49  ;;  %v3580_v49 = vld [vmem:[%s5874_s1 + $0x40] sm:$0xff] }
 0x337   :  { %v2764_v5 = vpop.f32.mrf.mxu0  ;;  %v5811_v27 = vpop.eup %3867  ;;  %v3152_v1 = vadd.f32 1.0, %v3866_v0  ;;  %3893 = vpow2.f32 %v3578_v7 }
 0x338   :  { %v3870_v24 = vpop.eup %3869  ;;  %3895 = vpow2.f32 %v3594_v48  ;;  %v2765_v3 = vadd.f32 %v2764_v5, %v2652_v31  ;;  %v3190_v0 = vmul.f32 %v5811_v27, %v3580_v49 }
 0x339   :  { %v2766_v56 = vpop.f32.mrf.mxu0  ;;  %v5815_v43 = vpop.eup %3871  ;;  %3897 = vrcp.f32 %v3152_v1  ;;  %v3197_v6 = vmul.f32 %v3870_v24, %v5805_v16  ;;  %v3596_v16 = vld [vmem:[%s5874_s1 + $0x48] sm:$0xff]  ;;  %v3597_v24 = vld [vmem:[%s5874_s1 + $0x58] sm:$0xff] }
 0x33a   :  { %v3874_v17 = vpop.eup %3873  ;;  %3899 = vpow2.f32 %v3579_v52  ;;  %v2767_v50 = vadd.f32 %v2766_v56, %v2654_v55  ;;  %v3581_v52 = vld [vmem:[%s5874_s1 + $0x50] sm:$0xff]  ;;  %v3316_v27 = vmul.f32 %v5815_v43, %v3596_v16  ;;  %s3973_s1 = scalar_lea.vmem %s3362_s12, 2048 }
 0x33b   :  { %v2768_v2 = vpop.f32.mrf.mxu0  ;;  %v5821_v42 = vpop.eup %3875  ;;  %v3279_v9 = vadd.f32 1.0, %v3874_v17  ;;  %3901 = vpow2.f32 %v3595_v29  ;;  %p3974_p0 = scmp.ne.s32.totalorder %s3362_s12, %s3973_s1  ;;  %p3979_p2 = scmp.lt.s32.totalorder %s3973_s1, %s3973_s1 }
 0x33c   :  { %v3878_v20 = vpop.eup %3877  ;;  %3903 = vtanh.f32 %v2763_v28  ;;  %v2769_v32 = vadd.f32 %v2768_v2, %v2656_v8  ;;  %v3191_v17 = vmul.f32 %v5821_v42, %v3581_v52 }
 0x33d   :  { %v5823_v15 = vpop.eup %3879  ;;  %3905 = vrcp.f32 %v3279_v9  ;;  %v3323_v29 = vmul.f32 %v3878_v20, %v5807_v26  ;;  %p3980_p3 = por %p3979_p2, %p3978_p1 }
 0x33e   :  { %v3882_v21 = vpop.eup %3881  ;;  %3907 = vtanh.f32 %v2765_v3  ;;  %v3317_v3 = vmul.f32 %v5823_v15, %v3597_v24 }
 0x33f   :  { %v3884_v12 = vpop.eup %3883  ;;  %v3153_v41 = vadd.f32 1.0, %v3882_v21  ;;  %3909 = vtanh.f32 %v2767_v50  ;;  %p3981_p4 = pnand %p3980_p3, %p3974_p0 }
 0x340   :  { %v3886_v36 = vpop.eup %3885  ;;  %v3192_v33 = vmul.f32 %v3884_v12, %v3582_v62  ;;  %3911 = vtanh.f32 %v2769_v32 }
 0x341   :  { %v3888_v63 = vpop.eup %3887  ;;  %v3280_v30 = vadd.f32 1.0, %v3886_v36  ;;  %3913 = vrcp.f32 %v3153_v41 }
 0x342   :  { %v3890_v59 = vpop.eup %3889  ;;  %v3200_v11 = vadd.f32 %v3196_v4, %v3192_v33  ;;  %v3154_v19 = vadd.f32 1.0, %v3888_v63 }
 0x343   :  { %v3892_v18 = vpop.eup %3891  ;;  %3915 = vrcp.f32 %v3280_v30  ;;  %v3281_v7 = vadd.f32 1.0, %v3890_v59 }
 0x344   :  { %v3894_v35 = vpop.eup %3893  ;;  %3205 = vst [vmem:[#allocation6 + $0x60] sm:$0xff] %v3200_v11  ;;  %v3318_v40 = vmul.f32 %v3892_v18, %v3598_v60  ;;  %3917 = vtanh.f32 %v3200_v11 }
 0x345   :  { %v3896_v22 = vpop.eup %3895  ;;  %v3155_v46 = vadd.f32 1.0, %v3894_v35  ;;  %3919 = vrcp.f32 %v3154_v19 }
 0x346   :  { %v3898_v23 = vpop.eup %3897  ;;  %v3326_v47 = vadd.f32 %v3322_v45, %v3318_v40  ;;  %v3282_v13 = vadd.f32 1.0, %v3896_v22 }
 0x347   :  { %v3900_v34 = vpop.eup %3899  ;;  %v3193_v58 = vmul.f32 %v3898_v23, %v3583_v10  ;;  %3921 = vrcp.f32 %v3155_v46 }
 0x348   :  { %v3902_v51 = vpop.eup %3901  ;;  %3330 = vst [vmem:[#allocation6 + $0x68] sm:$0xff] %v3326_v47  ;;  %3923 = vtanh.f32 %v3326_v47  ;;  %v3156_v37 = vadd.f32 1.0, %v3900_v34 }
 0x349   :  { %v3904_v14 = vpop.eup %3903  ;;  %v3201_v48 = vadd.f32 %v3197_v6, %v3193_v58  ;;  %3925 = vrcp.f32 %v3282_v13  ;;  %v3283_v61 = vadd.f32 1.0, %v3902_v51 }
 0x34a   :  { %v3906_v57 = vpop.eup %3905  ;;  %3927 = vrcp.f32 %v3156_v37  ;;  %v3194_v25 = vmul.f32 %v3904_v14, %v5775_v39 }
 0x34b   :  { %v3908_v5 = vpop.eup %3907  ;;  %3206 = vst [vmem:[#allocation6 + $0x70] sm:$0xff] %v3201_v48  ;;  %3929 = vtanh.f32 %v3201_v48  ;;  %v3319_v1 = vmul.f32 %v3906_v57, %v3599_v44 }
 0x34c   :  { %v3910_v31 = vpop.eup %3909  ;;  %3931 = vrcp.f32 %v3281_v7  ;;  %v3198_v28 = vadd.f32 %v3194_v25, %v3190_v0  ;;  %v3320_v39 = vmul.f32 %v3908_v5, %v5779_v54 }
 0x34d   :  { %v3912_v56 = vpop.eup %3911  ;;  %v3327_v55 = vadd.f32 %v3323_v29, %v3319_v1  ;;  %3933 = vrcp.f32 %v3283_v61  ;;  %v3195_v8 = vmul.f32 %v3910_v31, %v5785_v38 }
 0x34e   :  { %3203 = vst [vmem:[#allocation6 + $0x40] sm:$0xff] %v3198_v28  ;;  %3935 = vtanh.f32 %v3198_v28  ;;  %v3324_v26 = vadd.f32 %v3320_v39, %v3316_v27  ;;  %v3321_v2 = vmul.f32 %v3912_v56, %v5791_v53  ;;  %v3914_v54 = vpop.eup %3913 }
 0x34f   :  { %3331 = vst [vmem:[#allocation6 + $0x78] sm:$0xff] %v3327_v55  ;;  %3937 = vtanh.f32 %v3327_v55  ;;  %v3199_v43 = vadd.f32 %v3195_v8, %v3191_v17 }
 0x350   :  { %3328 = vst [vmem:[#allocation6 + $0x48] sm:$0xff] %v3324_v26  ;;  %3939 = vtanh.f32 %v3324_v26  ;;  %v3325_v9 = vadd.f32 %v3321_v2, %v3317_v3  ;;  %v3916_v42 = vpop.eup %3915 }
 0x351   :  { %3204 = vst [vmem:[#allocation6 + $0x50] sm:$0xff] %v3199_v43  ;;  %3941 = vtanh.f32 %v3199_v43  ;;  %v3918_v38 = vpop.eup %3917 }
 0x352   :  { %3329 = vst [vmem:[#allocation6 + $0x58] sm:$0xff] %v3325_v9  ;;  %3943 = vtanh.f32 %v3325_v9  ;;  %v3920_v50 = vpop.eup %3919 }
 0x353   :  { %3984 = shalt.err (!%p3981_p4)
}
 0x354   :  { %s4032_s13 = smov 256   ;;  %v3922_v53 = vpop.eup %3921  ;;  %s4033_s15 = smov [#allocation4]  }
 0x355   :  { %3367 = dma.vmem_to_hbm [thread:$0]  %s3362_s12, 2048, %s5878_s5, [#allocation7], %s4032_s13, %s4032_s13, %s4023_s27   ;;  %v3924_v20 = vpop.eup %3923  ;;  %v3213_v32 = vmul.f32 %v3922_v53, %v3918_v38 }
 0x356   :  { %v3926_v15 = vpop.eup %3925  ;;  %s3349_s5 = sshll.u32 %s4033_s15, 4  ;;  %s3350_s5 = int_to_ptr.vmem [resolvable:$true] %s3349_s5 }
 0x357   :  { %v3928_v62 = vpop.eup %3927  ;;  %3218 = vst [vmem:[#allocation4 + $0x60] sm:$0xff] %v3213_v32  ;;  %v3338_v21 = vmul.f32 %v3926_v15, %v3924_v20  ;;  %s3993_s28 = scalar_lea.vmem %s3350_s5, 2048  ;;  %p3998_p6 = scmp.lt.s32.totalorder %s3350_s5, %s3350_s5 }
 0x358   :  { %v3930_v12 = vpop.eup %3929  ;;  %p3994_p5 = scmp.ne.s32.totalorder %s3350_s5, %s3993_s28  ;;  %p3999_p7 = scmp.lt.s32.totalorder %s3993_s28, %s3993_s28 }
 0x359   :  { %v3932_v41 = vpop.eup %3931  ;;  %3342 = vst [vmem:[#allocation4 + $0x68] sm:$0xff] %v3338_v21  ;;  %v3214_v36 = vmul.f32 %v3930_v12, %v3928_v62 }
 0x35a   :  { %v3934_v33 = vpop.eup %3933  ;;  %p4000_p8 = por %p3999_p7, %p3998_p6 }
 0x35b   :  { %v3936_v4 = vpop.eup %3935  ;;  %3219 = vst [vmem:[#allocation4 + $0x70] sm:$0xff] %v3214_v36 }
 0x35c   :  { %v3938_v63 = vpop.eup %3937  ;;  %v3211_v60 = vmul.f32 %v3936_v4, %v3914_v54  ;;  %p4001_p9 = pnand %p4000_p8, %p3994_p5 }
 0x35d   :  { %v3940_v30 = vpop.eup %3939  ;;  %v3339_v59 = vmul.f32 %v3938_v63, %v3934_v33 }
 0x35e   :  { %v3942_v11 = vpop.eup %3941  ;;  %3216 = vst [vmem:[#allocation4 + $0x40] sm:$0xff] %v3211_v60  ;;  %v3336_v19 = vmul.f32 %v3940_v30, %v3916_v42 }
 0x35f   :  { %v3944_v18 = vpop.eup %3943  ;;  %3343 = vst [vmem:[#allocation4 + $0x78] sm:$0xff] %v3339_v59  ;;  %v3212_v35 = vmul.f32 %v3942_v11, %v3920_v50 }
 0x360   :  { %3340 = vst [vmem:[#allocation4 + $0x48] sm:$0xff] %v3336_v19  ;;  %v3337_v40 = vmul.f32 %v3944_v18, %v3932_v41 }
 0x361   :  { %3217 = vst [vmem:[#allocation4 + $0x50] sm:$0xff] %v3212_v35 }
 0x362   :  { %3341 = vst [vmem:[#allocation4 + $0x58] sm:$0xff] %v3337_v40 }
 0x363   :  { %4004 = shalt.err (!%p4001_p9)
}
 0x364   :  { %3355 = dma.vmem_to_hbm [thread:$0]  %s3350_s5, 2048, %s5877_s4, [#allocation5], %s4032_s13, %s4032_s13, %s4023_s27  }
 0x365   :  { %4013 = dma.done.wait [#allocation5], 2048  }
 0x366   :  { %4014 = vsyncadd [#allocation5], 4294965248 }
 0x367   :  { %4015 = dma.done.wait [#allocation7], 2048  }
 0x368   :  { %4016 = vsyncadd [#allocation7], 4294965248 }
 0x369   :  { %3374 = vsyncpa [#allocation5], 1 }
 0x36a   :  { %3375 = vsyncpa [#allocation7], 1 }

</bundles_post_ra>
